<compile_context>
chip_gen: v7x
topology: tpu7x:2x2x1
jax: 0.10.0
libtpu: 0.0.40
codegen_flags: <defaults>
</compile_context>

<pallas_src>
import jax
import jax.numpy as jnp
from jax.experimental import pallas as pl
from jax.experimental.pallas import tpu as pltpu


def _round_up(n, m):
    return ((n + m - 1) // m) * m


def _choose_row_tile(batch, block_b):
    """Row tile: big enough to amortize ~0.35 us/step grid overhead and fill
    the 256-row MXU, small enough that the grid has >= 2 steps (both v7x
    TensorCores engage) whenever the batch allows."""
    b8 = _round_up(max(int(batch), 1), 8)
    if b8 <= 16:
        return b8                              # tiny batch: one step is best
    half = _round_up((b8 + 1) // 2, 8)         # ceil(B/2) -> guarantees >= 2 steps
    return min(_round_up(block_b, 256), half)


def _resident_spec(shape):
    """Weights/biases: constant index_map (VMEM-resident across grid steps),
    single-buffered -- no need to double-buffer a block that never changes."""
    try:
        return pl.BlockSpec(shape, lambda i: (0, 0), pipeline_mode=pl.Buffered(1))
    except TypeError:  # fallback for jax versions without pipeline_mode kwarg
        return pl.BlockSpec(shape, lambda i: (0, 0))


def _dense_tail_kernel(fp_ref, d3_ref,
                       wf1_ref, bf1_ref, wf2_ref, bf2_ref,
                       wd1_ref, bd1_ref, wd2_ref, bd2_ref,
                       fp_out_ref, d3_out_ref):
    # ---- fingerprint branch: Linear+BN(folded) -> ReLU -> Linear+BN(folded)
    # inputs arrive as f32 tiles; cast to bf16 on the VPU right before the MXU.
    x = fp_ref[...].astype(jnp.bfloat16)
    h = jnp.dot(x, wf1_ref[...], preferred_element_type=jnp.float32)
    h = jnp.maximum(h + bf1_ref[...], 0.0)
    y = jnp.dot(h.astype(jnp.bfloat16), wf2_ref[...],
                preferred_element_type=jnp.float32)
    fp_out_ref[...] = y + bf2_ref[...]

    # ---- 3-D branch dense head: Linear+BN(folded) -> Linear+BN(folded)
    d = d3_ref[...].astype(jnp.bfloat16)
    g = jnp.dot(d, wd1_ref[...], preferred_element_type=jnp.float32)
    g = g + bd1_ref[...]
    z = jnp.dot(g.astype(jnp.bfloat16), wd2_ref[...],
                preferred_element_type=jnp.float32)
    d3_out_ref[...] = z + bd2_ref[...]


def prepare_params(params, compute_dtype=jnp.bfloat16):
    """Fold eval-mode BatchNorm (applied right after each Linear) into that
    Linear's weights/bias, pad K dims and the output dim to multiples of 128,
    and cast weights to the MXU-native compute dtype (biases stay f32)."""
    def fold(w, b, s, t):
        return w * s, b * s + t

    wf1, bf1 = fold(params["fp_w1"], params["fp_b1"], params["fp_s1"], params["fp_t1"])
    wf2, bf2 = fold(params["fp_w2"], params["fp_b2"], params["fp_s2"], params["fp_t2"])
    wd1, bd1 = fold(params["d3_w1"], params["d3_b1"], params["d3_s1"], params["d3_t1"])
    wd2, bd2 = fold(params["d3_w2"], params["d3_b2"], params["d3_s2"], params["d3_t2"])

    embed_dim = int(wf2.shape[1])
    e_pad = _round_up(embed_dim, 128)
    if e_pad != embed_dim:
        pad = e_pad - embed_dim
        wf2 = jnp.pad(wf2, ((0, 0), (0, pad)))
        bf2 = jnp.pad(bf2, ((0, 0), (0, pad)))
        wd2 = jnp.pad(wd2, ((0, 0), (0, pad)))
        bd2 = jnp.pad(bd2, ((0, 0), (0, pad)))

    # Lane-align the contraction (K) dims of the first matmuls offline.
    f_fp = int(wf1.shape[0])
    f_fp_pad = _round_up(f_fp, 128)
    if f_fp_pad != f_fp:
        wf1 = jnp.pad(wf1, ((0, f_fp_pad - f_fp), (0, 0)))
    d_3d = int(wd1.shape[0])
    d_3d_pad = _round_up(d_3d, 128)
    if d_3d_pad != d_3d:
        wd1 = jnp.pad(wd1, ((0, d_3d_pad - d_3d), (0, 0)))

    return {
        "wf1": wf1.astype(compute_dtype), "bf1": bf1.astype(jnp.float32),
        "wf2": wf2.astype(compute_dtype), "bf2": bf2.astype(jnp.float32),
        "wd1": wd1.astype(compute_dtype), "bd1": bd1.astype(jnp.float32),
        "wd2": wd2.astype(compute_dtype), "bd2": bd2.astype(jnp.float32),
        "embed_dim": embed_dim,
    }


def drug_dense_tail_forward(fp_feat, drug_repr, kparams, *, block_b=1024):
    """Eval-mode fused dense tail of `drug_hier_encoder`.

    fp_feat:   (B, 1152) float32 -- flattened output of the fp conv stack.
    drug_repr: (B, drug_3d_dim) float32 -- pooled output of Drug_3d_Encoder.
    Returns:   (B, 2*embed_dim) float32 = concat([fp_repr, drug_repr_dense]).
    """
    wf1, bf1 = kparams["wf1"], kparams["bf1"]
    wf2, bf2 = kparams["wf2"], kparams["bf2"]
    wd1, bd1 = kparams["wd1"], kparams["bd1"]
    wd2, bd2 = kparams["wd2"], kparams["bd2"]
    E = kparams["embed_dim"]
    E_pad = int(wf2.shape[1])
    F_fp_pad, H_fp = int(wf1.shape[0]), int(wf1.shape[1])
    D_3d_pad, H_3d = int(wd1.shape[0]), int(wd1.shape[1])

    B = int(fp_feat.shape[0])
    assert int(drug_repr.shape[0]) == B
    fp_feat = fp_feat.astype(jnp.float32)      # kept f32; bf16 cast is in-kernel
    drug_repr = drug_repr.astype(jnp.float32)

    # Feature-dim padding (no-op for the module's aligned 1152 / 512 widths).
    if int(fp_feat.shape[1]) != F_fp_pad:
        fp_feat = jnp.pad(fp_feat, ((0, 0), (0, F_fp_pad - int(fp_feat.shape[1]))))
    if int(drug_repr.shape[1]) != D_3d_pad:
        drug_repr = jnp.pad(drug_repr, ((0, 0), (0, D_3d_pad - int(drug_repr.shape[1]))))

    TB = _choose_row_tile(B, block_b)
    Bp = _round_up(B, TB)
    if Bp != B:  # row pad only materializes when B is not a tile multiple
        fp_feat = jnp.pad(fp_feat, ((0, Bp - B), (0, 0)))
        drug_repr = jnp.pad(drug_repr, ((0, Bp - B), (0, 0)))

    grid = (Bp // TB,)

    wgt_bytes = sum(int(a.size) * a.dtype.itemsize
                    for a in (wf1, bf1, wf2, bf2, wd1, bd1, wd2, bd2))
    # double-buffered row tiles (2 inputs + 2 outputs) + intermediate activations
    tile_bytes = TB * (F_fp_pad + D_3d_pad) * 4 * 2 + TB * E_pad * 4 * 2 * 2
    inter_bytes = TB * (H_fp + H_3d) * 4 * 2
    vmem_limit = int(1.5 * (wgt_bytes + tile_bytes + inter_bytes)) + (4 << 20)
    vmem_limit = min(vmem_limit, 64 << 20)     # never request beyond v7x VMEM

    flops = 2 * Bp * (F_fp_pad * H_fp + H_fp * E_pad + D_3d_pad * H_3d + H_3d * E_pad)
    bytes_accessed = int(Bp * (F_fp_pad + D_3d_pad) * 4 + wgt_bytes
                         + 2 * Bp * E_pad * 4)

    fp_out, d3_out = pl.pallas_call(
        _dense_tail_kernel,
        out_shape=(jax.ShapeDtypeStruct((Bp, E_pad), jnp.float32),
                   jax.ShapeDtypeStruct((Bp, E_pad), jnp.float32)),
        grid_spec=pltpu.PrefetchScalarGridSpec(
            num_scalar_prefetch=0,
            grid=grid,
            in_specs=[
                pl.BlockSpec((TB, F_fp_pad), lambda i: (i, 0)),  # fp rows, f32
                pl.BlockSpec((TB, D_3d_pad), lambda i: (i, 0)),  # 3d rows, f32
                _resident_spec((F_fp_pad, H_fp)),
                _resident_spec((1, H_fp)),
                _resident_spec((H_fp, E_pad)),
                _resident_spec((1, E_pad)),
                _resident_spec((D_3d_pad, H_3d)),
                _resident_spec((1, H_3d)),
                _resident_spec((H_3d, E_pad)),
                _resident_spec((1, E_pad)),
            ],
            out_specs=(pl.BlockSpec((TB, E_pad), lambda i: (i, 0)),
                       pl.BlockSpec((TB, E_pad), lambda i: (i, 0))),
        ),
        compiler_params=pltpu.CompilerParams(
            dimension_semantics=("parallel",),
            vmem_limit_bytes=vmem_limit,
        ),
        cost_estimate=pl.CostEstimate(
            flops=flops, transcendentals=0, bytes_accessed=bytes_accessed),
    )(fp_feat, drug_repr, wf1, bf1, wf2, bf2, wd1, bd1, wd2, bd2)

    return jnp.concatenate([fp_out[:B, :E], d3_out[:B, :E]], axis=-1)


def init_params(key, embed_dim, layer_num=3, fp_in_dim=1152,
                fp_hidden=512, d3_hidden=1024, eps=1e-5):
    """Synthetic parameters matching the module's shapes. Linear weights are
    stored transposed as (in, out); eval-mode BatchNorm is pre-reduced to a
    per-feature scale/bias with non-trivial running statistics."""
    drug_3d_dim = embed_dim * (layer_num + 1)
    ks = iter(jax.random.split(key, 24))

    def lin(fan_in, fan_out):
        bound = 1.0 / float(fan_in) ** 0.5
        w = jax.random.uniform(next(ks), (fan_in, fan_out), jnp.float32, -bound, bound)
        b = jax.random.uniform(next(ks), (1, fan_out), jnp.float32, -bound, bound)
        return w, b

    def bn(dim):
        gamma = 1.0 + 0.1 * jax.random.normal(next(ks), (1, dim), jnp.float32)
        beta = 0.1 * jax.random.normal(next(ks), (1, dim), jnp.float32)
        mean = 0.1 * jax.random.normal(next(ks), (1, dim), jnp.float32)
        var = jax.random.uniform(next(ks), (1, dim), jnp.float32, 0.5, 1.5)
        scale = gamma / jnp.sqrt(var + eps)
        bias = beta - mean * scale
        return scale, bias

    fp_w1, fp_b1 = lin(fp_in_dim, fp_hidden)
    fp_s1, fp_t1 = bn(fp_hidden)
    fp_w2, fp_b2 = lin(fp_hidden, embed_dim)
    fp_s2, fp_t2 = bn(embed_dim)
    d3_w1, d3_b1 = lin(drug_3d_dim, d3_hidden)
    d3_s1, d3_t1 = bn(d3_hidden)
    d3_w2, d3_b2 = lin(d3_hidden, embed_dim)
    d3_s2, d3_t2 = bn(embed_dim)

    return {"fp_w1": fp_w1, "fp_b1": fp_b1, "fp_s1": fp_s1, "fp_t1": fp_t1,
            "fp_w2": fp_w2, "fp_b2": fp_b2, "fp_s2": fp_s2, "fp_t2": fp_t2,
            "d3_w1": d3_w1, "d3_b1": d3_b1, "d3_s1": d3_s1, "d3_t1": d3_t1,
            "d3_w2": d3_w2, "d3_b2": d3_b2, "d3_s2": d3_s2, "d3_t2": d3_t2}


def _reference_forward(fp_feat, drug_repr, params):
    """Pure-JAX f32 reference with the original (unfolded) eval-mode math."""
    h = fp_feat @ params["fp_w1"] + params["fp_b1"]
    h = h * params["fp_s1"] + params["fp_t1"]
    h = jnp.maximum(h, 0.0)
    fp_repr = (h @ params["fp_w2"] + params["fp_b2"]) * params["fp_s2"] + params["fp_t2"]
    g = drug_repr @ params["d3_w1"] + params["d3_b1"]
    g = g * params["d3_s1"] + params["d3_t1"]
    d3_repr = (g @ params["d3_w2"] + params["d3_b2"]) * params["d3_s2"] + params["d3_t2"]
    return jnp.concatenate([fp_repr, d3_repr], axis=-1)


if __name__ == "__main__":
    # Shapes implied by the module: fp_in_dim=1152 (flattened conv features),
    # fp hidden 512, 3-D hidden 1024, drug_3d_dim = embed_dim*(layer_num+1).
    EMBED, LAYER_NUM, FP_IN = 128, 3, 1152
    D3_DIM = EMBED * (LAYER_NUM + 1)

    key = jax.random.PRNGKey(0)
    kp, k1, k2, k3, k4 = jax.random.split(key, 5)
    params = init_params(kp, embed_dim=EMBED, layer_num=LAYER_NUM, fp_in_dim=FP_IN)
    kparams = prepare_params(params)

    # Case 1: tiny batch, single grid step.
    B1 = 4
    fp1 = jax.random.normal(k1, (B1, FP_IN), jnp.float32)
    d31 = jax.random.normal(k2, (B1, D3_DIM), jnp.float32)
    out1 = jax.block_until_ready(drug_dense_tail_forward(fp1, d31, kparams))
    ref1 = _reference_forward(fp1, d31, params)
    assert out1.shape == (B1, 2 * EMBED), out1.shape
    err1 = float(jnp.max(jnp.abs(out1 - ref1)))
    # bf16 weights/activations vs. f32 reference: small rounding error allowed.
    assert jnp.allclose(out1, ref1, atol=5e-2, rtol=5e-2), f"max abs err {err1}"

    # Case 2: >=2 grid steps (both v7x TensorCores), row padding, weights
    # staying VMEM-resident (single-buffered) across steps.
    B2 = 40
    fp2 = jax.random.normal(k3, (B2, FP_IN), jnp.float32)
    d32 = jax.random.normal(k4, (B2, D3_DIM), jnp.float32)
    out2 = jax.block_until_ready(drug_dense_tail_forward(fp2, d32, kparams))
    ref2 = _reference_forward(fp2, d32, params)
    assert out2.shape == (B2, 2 * EMBED), out2.shape
    err2 = float(jnp.max(jnp.abs(out2 - ref2)))
    assert jnp.allclose(out2, ref2, atol=5e-2, rtol=5e-2), f"max abs err {err2}"

    print("KERNEL_OK")
</pallas_src>

<mosaic_0001>
module attributes {stable_mosaic.version = 11 : i64} {
  func.func @_dense_tail_kernel(%arg0: i32, %arg1: memref<8x1152xf32, #tpu.memory_space<vmem>>, %arg2: memref<8x512xf32, #tpu.memory_space<vmem>>, %arg3: memref<1152x512xbf16, #tpu.memory_space<vmem>>, %arg4: memref<1x512xf32, #tpu.memory_space<vmem>>, %arg5: memref<512x128xbf16, #tpu.memory_space<vmem>>, %arg6: memref<1x128xf32, #tpu.memory_space<vmem>>, %arg7: memref<512x1024xbf16, #tpu.memory_space<vmem>>, %arg8: memref<1x1024xf32, #tpu.memory_space<vmem>>, %arg9: memref<1024x128xbf16, #tpu.memory_space<vmem>>, %arg10: memref<1x128xf32, #tpu.memory_space<vmem>>, %arg11: memref<8x128xf32, #tpu.memory_space<vmem>>, %arg12: memref<8x128xf32, #tpu.memory_space<vmem>>) attributes {dimension_semantics = [#tpu.dimension_semantics<parallel>], iteration_bounds = array<i64: 1>, scalar_prefetch = 0 : i64, scratch_operands = 0 : i64, tpu.core_type = #tpu.core_type<tc>, window_params = [{transform_indices = @transform_0, window_bounds = array<i64: 8, 1152>}, {transform_indices = @transform_1, window_bounds = array<i64: 8, 512>}, {pipeline_mode = #tpu.pipeline_mode<synchronous>, transform_indices = @transform_2, window_bounds = array<i64: 1152, 512>}, {pipeline_mode = #tpu.pipeline_mode<synchronous>, transform_indices = @transform_3, window_bounds = array<i64: 1, 512>}, {pipeline_mode = #tpu.pipeline_mode<synchronous>, transform_indices = @transform_4, window_bounds = array<i64: 512, 128>}, {pipeline_mode = #tpu.pipeline_mode<synchronous>, transform_indices = @transform_5, window_bounds = array<i64: 1, 128>}, {pipeline_mode = #tpu.pipeline_mode<synchronous>, transform_indices = @transform_6, window_bounds = array<i64: 512, 1024>}, {pipeline_mode = #tpu.pipeline_mode<synchronous>, transform_indices = @transform_7, window_bounds = array<i64: 1, 1024>}, {pipeline_mode = #tpu.pipeline_mode<synchronous>, transform_indices = @transform_8, window_bounds = array<i64: 1024, 128>}, {pipeline_mode = #tpu.pipeline_mode<synchronous>, transform_indices = @transform_9, window_bounds = array<i64: 1, 128>}, {transform_indices = @transform_10, window_bounds = array<i64: 8, 128>}, {transform_indices = @transform_11, window_bounds = array<i64: 8, 128>}]} {
    %c0 = arith.constant 0 : index
    %c0_0 = arith.constant 0 : index
    %0 = vector.load %arg1[%c0, %c0_0] : memref<8x1152xf32, #tpu.memory_space<vmem>>, vector<8x1152xf32>
    %1 = arith.truncf %0 : vector<8x1152xf32> to vector<8x1152xbf16>
    %c0_1 = arith.constant 0 : index
    %c0_2 = arith.constant 0 : index
    %2 = vector.load %arg3[%c0_1, %c0_2] : memref<1152x512xbf16, #tpu.memory_space<vmem>>, vector<1152x512xbf16>
    %cst = arith.constant dense<0.000000e+00> : vector<8x512xf32>
    %3 = tpu.matmul %1, %2, %cst {dimension_numbers = #tpu.dot_dimension_numbers<[1], [0], [0], [1], [0, 0, 1, 1], [], []>} : vector<8x1152xbf16>, vector<1152x512xbf16>, vector<8x512xf32> -> vector<8x512xf32>
    %c0_3 = arith.constant 0 : index
    %c0_4 = arith.constant 0 : index
    %4 = vector.load %arg4[%c0_3, %c0_4] : memref<1x512xf32, #tpu.memory_space<vmem>>, vector<1x512xf32>
    %5 = vector.broadcast %4 : vector<1x512xf32> to vector<8x512xf32>
    %6 = arith.addf %3, %5 : vector<8x512xf32>
    %cst_5 = arith.constant 0.000000e+00 : f32
    %7 = vector.broadcast %cst_5 : f32 to vector<8x512xf32>
    %8 = arith.maximumf %6, %7 : vector<8x512xf32>
    %9 = arith.truncf %8 : vector<8x512xf32> to vector<8x512xbf16>
    %c0_6 = arith.constant 0 : index
    %c0_7 = arith.constant 0 : index
    %10 = vector.load %arg5[%c0_6, %c0_7] : memref<512x128xbf16, #tpu.memory_space<vmem>>, vector<512x128xbf16>
    %cst_8 = arith.constant dense<0.000000e+00> : vector<8x128xf32>
    %11 = tpu.matmul %9, %10, %cst_8 {dimension_numbers = #tpu.dot_dimension_numbers<[1], [0], [0], [1], [0, 0, 1, 1], [], []>} : vector<8x512xbf16>, vector<512x128xbf16>, vector<8x128xf32> -> vector<8x128xf32>
    %c0_9 = arith.constant 0 : index
    %c0_10 = arith.constant 0 : index
    %12 = vector.load %arg6[%c0_9, %c0_10] : memref<1x128xf32, #tpu.memory_space<vmem>>, vector<1x128xf32>
    %13 = vector.broadcast %12 : vector<1x128xf32> to vector<8x128xf32>
    %14 = arith.addf %11, %13 : vector<8x128xf32>
    %c0_11 = arith.constant 0 : index
    %c0_12 = arith.constant 0 : index
    %15 = vector.load %arg11[%c0_11, %c0_12] : memref<8x128xf32, #tpu.memory_space<vmem>>, vector<8x128xf32>
    tpu.vector_store %arg11[%c0_11, %c0_12], %14 {strides = array<i32>} : memref<8x128xf32, #tpu.memory_space<vmem>>, vector<8x128xf32>,
    %c0_13 = arith.constant 0 : index
    %c0_14 = arith.constant 0 : index
    %16 = vector.load %arg2[%c0_13, %c0_14] : memref<8x512xf32, #tpu.memory_space<vmem>>, vector<8x512xf32>
    %17 = arith.truncf %16 : vector<8x512xf32> to vector<8x512xbf16>
    %c0_15 = arith.constant 0 : index
    %c0_16 = arith.constant 0 : index
    %18 = vector.load %arg7[%c0_15, %c0_16] : memref<512x1024xbf16, #tpu.memory_space<vmem>>, vector<512x1024xbf16>
    %cst_17 = arith.constant dense<0.000000e+00> : vector<8x1024xf32>
    %19 = tpu.matmul %17, %18, %cst_17 {dimension_numbers = #tpu.dot_dimension_numbers<[1], [0], [0], [1], [0, 0, 1, 1], [], []>} : vector<8x512xbf16>, vector<512x1024xbf16>, vector<8x1024xf32> -> vector<8x1024xf32>
    %c0_18 = arith.constant 0 : index
    %c0_19 = arith.constant 0 : index
    %20 = vector.load %arg8[%c0_18, %c0_19] : memref<1x1024xf32, #tpu.memory_space<vmem>>, vector<1x1024xf32>
    %21 = vector.broadcast %20 : vector<1x1024xf32> to vector<8x1024xf32>
    %22 = arith.addf %19, %21 : vector<8x1024xf32>
    %23 = arith.truncf %22 : vector<8x1024xf32> to vector<8x1024xbf16>
    %c0_20 = arith.constant 0 : index
    %c0_21 = arith.constant 0 : index
    %24 = vector.load %arg9[%c0_20, %c0_21] : memref<1024x128xbf16, #tpu.memory_space<vmem>>, vector<1024x128xbf16>
    %cst_22 = arith.constant dense<0.000000e+00> : vector<8x128xf32>
    %25 = tpu.matmul %23, %24, %cst_22 {dimension_numbers = #tpu.dot_dimension_numbers<[1], [0], [0], [1], [0, 0, 1, 1], [], []>} : vector<8x1024xbf16>, vector<1024x128xbf16>, vector<8x128xf32> -> vector<8x128xf32>
    %c0_23 = arith.constant 0 : index
    %c0_24 = arith.constant 0 : index
    %26 = vector.load %arg10[%c0_23, %c0_24] : memref<1x128xf32, #tpu.memory_space<vmem>>, vector<1x128xf32>
    %27 = vector.broadcast %26 : vector<1x128xf32> to vector<8x128xf32>
    %28 = arith.addf %25, %27 : vector<8x128xf32>
    %c0_25 = arith.constant 0 : index
    %c0_26 = arith.constant 0 : index
    %29 = vector.load %arg12[%c0_25, %c0_26] : memref<8x128xf32, #tpu.memory_space<vmem>>, vector<8x128xf32>
    tpu.vector_store %arg12[%c0_25, %c0_26], %28 {strides = array<i32>} : memref<8x128xf32, #tpu.memory_space<vmem>>, vector<8x128xf32>,
    return
  }
  func.func @transform_0(%arg0: i32) -> (i32, i32) {
    %c0_i32 = arith.constant 0 : i32
    %c0_i32_0 = arith.constant 0 : i32
    return %arg0, %c0_i32 : i32, i32
  }
  func.func @transform_1(%arg0: i32) -> (i32, i32) {
    %c0_i32 = arith.constant 0 : i32
    %c0_i32_0 = arith.constant 0 : i32
    return %arg0, %c0_i32 : i32, i32
  }
  func.func @transform_2(%arg0: i32) -> (i32, i32) {
    %c0_i32 = arith.constant 0 : i32
    %c0_i32_0 = arith.constant 0 : i32
    %c0_i32_1 = arith.constant 0 : i32
    return %c0_i32, %c0_i32_0 : i32, i32
  }
  func.func @transform_3(%arg0: i32) -> (i32, i32) {
    %c0_i32 = arith.constant 0 : i32
    %c0_i32_0 = arith.constant 0 : i32
    %c0_i32_1 = arith.constant 0 : i32
    return %c0_i32, %c0_i32_0 : i32, i32
  }
  func.func @transform_4(%arg0: i32) -> (i32, i32) {
    %c0_i32 = arith.constant 0 : i32
    %c0_i32_0 = arith.constant 0 : i32
    %c0_i32_1 = arith.constant 0 : i32
    return %c0_i32, %c0_i32_0 : i32, i32
  }
  func.func @transform_5(%arg0: i32) -> (i32, i32) {
    %c0_i32 = arith.constant 0 : i32
    %c0_i32_0 = arith.constant 0 : i32
    %c0_i32_1 = arith.constant 0 : i32
    return %c0_i32, %c0_i32_0 : i32, i32
  }
  func.func @transform_6(%arg0: i32) -> (i32, i32) {
    %c0_i32 = arith.constant 0 : i32
    %c0_i32_0 = arith.constant 0 : i32
    %c0_i32_1 = arith.constant 0 : i32
    return %c0_i32, %c0_i32_0 : i32, i32
  }
  func.func @transform_7(%arg0: i32) -> (i32, i32) {
    %c0_i32 = arith.constant 0 : i32
    %c0_i32_0 = arith.constant 0 : i32
    %c0_i32_1 = arith.constant 0 : i32
    return %c0_i32, %c0_i32_0 : i32, i32
  }
  func.func @transform_8(%arg0: i32) -> (i32, i32) {
    %c0_i32 = arith.constant 0 : i32
    %c0_i32_0 = arith.constant 0 : i32
    %c0_i32_1 = arith.constant 0 : i32
    return %c0_i32, %c0_i32_0 : i32, i32
  }
  func.func @transform_9(%arg0: i32) -> (i32, i32) {
    %c0_i32 = arith.constant 0 : i32
    %c0_i32_0 = arith.constant 0 : i32
    %c0_i32_1 = arith.constant 0 : i32
    return %c0_i32, %c0_i32_0 : i32, i32
  }
  func.func @transform_10(%arg0: i32) -> (i32, i32) {
    %c0_i32 = arith.constant 0 : i32
    %c0_i32_0 = arith.constant 0 : i32
    return %arg0, %c0_i32 : i32, i32
  }
  func.func @transform_11(%arg0: i32) -> (i32, i32) {
    %c0_i32 = arith.constant 0 : i32
    %c0_i32_0 = arith.constant 0 : i32
    return %arg0, %c0_i32 : i32, i32
  }
}

</mosaic_0001>

<bundles_post_ra>
// kernel: tpu_custom_call.1
= control target key start
LH: loop header
LB: loop body
LE: loop exit
PB: predicated region body
PF: predicated region fallthrough
CT: control target
= control target key end

     0   :  { %17 = vsyncpa [#allocation3], 0  ;;  %s7287_s0 = inlined_call_operand.hbm [shape: f32[8,1152], index: 0, kind: input, shape index: {}]   ;;  %s7288_s1 = inlined_call_operand.hbm [shape: f32[8,512], index: 1, kind: input, shape index: {}]   ;;  %s7289_s2 = inlined_call_operand.hbm [shape: bf16[1152,512], index: 2, kind: input, shape index: {}]   ;;  %s7290_s3 = inlined_call_operand.hbm [shape: f32[1,512], index: 3, kind: input, shape index: {}]   ;;  %s7291_s4 = inlined_call_operand.hbm [shape: bf16[512,128], index: 4, kind: input, shape index: {}]   ;;  %s7292_s5 = inlined_call_operand.hbm [shape: f32[1,128], index: 5, kind: input, shape index: {}]   ;;  %s7293_s6 = inlined_call_operand.hbm [shape: bf16[512,1024], index: 6, kind: input, shape index: {}]   ;;  %s7294_s7 = inlined_call_operand.hbm [shape: f32[1,1024], index: 7, kind: input, shape index: {}]   ;;  %s7295_s8 = inlined_call_operand.hbm [shape: bf16[1024,128], index: 8, kind: input, shape index: {}]   ;;  %s7296_s9 = inlined_call_operand.hbm [shape: f32[1,128], index: 9, kind: input, shape index: {}]   ;;  %s7297_s10 = inlined_call_operand.hbm [shape: f32[8,128], index: 10, kind: output, shape index: {0}]   ;;  %s7298_s11 = inlined_call_operand.hbm [shape: f32[8,128], index: 11, kind: output, shape index: {1}]  }
   0x1   :  { %18 = vsyncpa [#allocation6], 0 }
   0x2   :  { %19 = vsyncpa [#allocation9], 0 }
   0x3   :  { %20 = vsyncpa [#allocation12], 0 }
   0x4   :  { %21 = vsyncpa [#allocation15], 0 }
   0x5   :  { %22 = vsyncpa [#allocation18], 0 }
   0x6   :  { %23 = vsyncpa [#allocation4], 0 }
   0x7   :  { %24 = vsyncpa [#allocation21], 0  ;;  %s6991_s17 = smov [#allocation5]   ;;  %s6992_s19 = smov [#allocation8]  }
   0x8   :  { %s41_s18 = sshll.u32 %s6991_s17, 4  ;;  %s63_s20 = sshll.u32 %s6992_s19, 4  ;;  %s42_s18 = int_to_ptr.vmem [resolvable:$true] %s41_s18  ;;  %s64_s20 = int_to_ptr.vmem [resolvable:$true] %s63_s20 }
   0x9   :  { %s6711_s23 = scalar_lea.hbm %s7288_s1, 512 }
   0xa   :  { %p6712_p0 = scmp.ne.s32.totalorder %s7288_s1, %s6711_s23  ;;  %p6715_p1 = scmp.lt.u32.totalorder %s6711_s23, %s7288_s1 }
   0xc   :  { %p6717_p2 = pnand %p6715_p1, %p6712_p0 }
   0xe   :  { %6720 = shalt.err (!%p6717_p2)
}
   0xf   :  { %s6721_s28 = scalar_lea.vmem %s42_s18, 512  ;;  %p6726_p4 = scmp.lt.s32.totalorder %s42_s18, %s42_s18 }
  0x10   :  { %p6722_p3 = scmp.ne.s32.totalorder %s42_s18, %s6721_s28  ;;  %p6727_p5 = scmp.lt.s32.totalorder %s6721_s28, %s6721_s28 }
  0x12   :  { %p6728_p6 = por %p6727_p5, %p6726_p4 }
  0x14   :  { %p6729_p7 = pnand %p6728_p6, %p6722_p3 }
  0x16   :  { %6732 = shalt.err (!%p6729_p7)
}
  0x17   :  { %44 = dma.hbm_to_vmem [thread:$0]  %s7288_s1, 512, %s42_s18, [#allocation6]  }
  0x18   :  { %s6733_s14 = scalar_lea.hbm %s7290_s3, 64 }
  0x19   :  { %p6734_p8 = scmp.ne.s32.totalorder %s7290_s3, %s6733_s14  ;;  %p6737_p9 = scmp.lt.u32.totalorder %s6733_s14, %s7290_s3 }
  0x1b   :  { %p6739_p10 = pnand %p6737_p9, %p6734_p8 }
  0x1d   :  { %6742 = shalt.err (!%p6739_p10)
}
  0x1e   :  { %s6743_s21 = scalar_lea.vmem %s64_s20, 64  ;;  %p6748_p12 = scmp.lt.s32.totalorder %s64_s20, %s64_s20 }
  0x1f   :  { %p6744_p11 = scmp.ne.s32.totalorder %s64_s20, %s6743_s21  ;;  %p6749_p13 = scmp.lt.s32.totalorder %s6743_s21, %s6743_s21 }
  0x21   :  { %p6750_p0 = por %p6749_p13, %p6748_p12 }
  0x23   :  { %p6751_p1 = pnand %p6750_p0, %p6744_p11 }
  0x25   :  { %6754 = shalt.err (!%p6751_p1)
}
  0x26   :  { %66 = dma.hbm_to_vmem [thread:$0]  %s7290_s3, 64, %s64_s20, [#allocation9]  }
  0x27   :  { %s6993_s22 = smov [#allocation11]   ;;  %s6994_s24 = smov [#allocation14]  }
  0x28   :  { %s85_s23 = sshll.u32 %s6993_s22, 4  ;;  %s107_s25 = sshll.u32 %s6994_s24, 4  ;;  %s86_s23 = int_to_ptr.vmem [resolvable:$true] %s85_s23  ;;  %s108_s25 = int_to_ptr.vmem [resolvable:$true] %s107_s25 }
  0x29   :  { %s6755_s28 = scalar_lea.hbm %s7292_s5, 16 }
  0x2a   :  { %p6756_p2 = scmp.ne.s32.totalorder %s7292_s5, %s6755_s28  ;;  %p6759_p3 = scmp.lt.u32.totalorder %s6755_s28, %s7292_s5 }
  0x2c   :  { %p6761_p4 = pnand %p6759_p3, %p6756_p2 }
  0x2e   :  { %6764 = shalt.err (!%p6761_p4)
}
  0x2f   :  { %s6765_s3 = scalar_lea.vmem %s86_s23, 16  ;;  %s6769_s20 = scalar_lea.vmem %s86_s23, 32 }
  0x30   :  { %p6766_p5 = scmp.ne.s32.totalorder %s86_s23, %s6765_s3  ;;  %p6770_p6 = scmp.lt.s32.totalorder %s86_s23, %s86_s23 }
  0x31   :  { %p6771_p7 = scmp.lt.s32.totalorder %s6769_s20, %s6765_s3 }
  0x33   :  { %p6772_p8 = por %p6771_p7, %p6770_p6 }
  0x35   :  { %p6773_p9 = pnand %p6772_p8, %p6766_p5 }
  0x37   :  { %6776 = shalt.err (!%p6773_p9)
}
  0x38   :  { %88 = dma.hbm_to_vmem [thread:$0]  %s7292_s5, 16, %s86_s23, [#allocation12]  }
  0x39   :  { %s6777_s19 = scalar_lea.hbm %s7294_s7, 128 }
  0x3a   :  { %p6778_p10 = scmp.ne.s32.totalorder %s7294_s7, %s6777_s19  ;;  %p6781_p11 = scmp.lt.u32.totalorder %s6777_s19, %s7294_s7 }
  0x3c   :  { %p6783_p12 = pnand %p6781_p11, %p6778_p10 }
  0x3e   :  { %6786 = shalt.err (!%p6783_p12)
}
  0x3f   :  { %s6787_s24 = scalar_lea.vmem %s108_s25, 128  ;;  %p6792_p0 = scmp.lt.s32.totalorder %s108_s25, %s108_s25 }
  0x40   :  { %p6788_p13 = scmp.ne.s32.totalorder %s108_s25, %s6787_s24  ;;  %p6793_p1 = scmp.lt.s32.totalorder %s6787_s24, %s6787_s24 }
  0x42   :  { %p6794_p2 = por %p6793_p1, %p6792_p0 }
  0x44   :  { %p6795_p3 = pnand %p6794_p2, %p6788_p13 }
  0x46   :  { %6798 = shalt.err (!%p6795_p3)
}
  0x47   :  { %110 = dma.hbm_to_vmem [thread:$0]  %s7294_s7, 128, %s108_s25, [#allocation15]  }
  0x48   :  { %s6995_s26 = smov [#allocation2]   ;;  %s6996_s28 = smov [#allocation7]  }
  0x49   :  { %s31_s27 = sshll.u32 %s6995_s26, 4  ;;  %s50_s29 = sshll.u32 %s6996_s28, 4  ;;  %s32_s27 = int_to_ptr.vmem [resolvable:$true] %s31_s27  ;;  %s7118_s29 = int_to_ptr.vmem [resolvable:$true] %s50_s29 }
  0x4a   :  { %s6799_s13 = scalar_lea.hbm %s7287_s0, 1152 }
  0x4b   :  { %p6800_p4 = scmp.ne.s32.totalorder %s7287_s0, %s6799_s13  ;;  %p6803_p5 = scmp.lt.u32.totalorder %s6799_s13, %s7287_s0 }
  0x4d   :  { %p6805_p6 = pnand %p6803_p5, %p6800_p4 }
  0x4f   :  { %6808 = shalt.err (!%p6805_p6)
}
  0x50   :  { %s6809_s7 = scalar_lea.vmem %s32_s27, 1152  ;;  %p6814_p8 = scmp.lt.s32.totalorder %s32_s27, %s32_s27 }
  0x51   :  { %p6810_p7 = scmp.ne.s32.totalorder %s32_s27, %s6809_s7  ;;  %p6815_p9 = scmp.lt.s32.totalorder %s6809_s7, %s6809_s7 }
  0x53   :  { %p6816_p10 = por %p6815_p9, %p6814_p8 }
  0x55   :  { %p6817_p11 = pnand %p6816_p10, %p6810_p7 }
  0x57   :  { %6820 = shalt.err (!%p6817_p11)
}
  0x58   :  { %34 = dma.hbm_to_vmem [thread:$0]  %s7287_s0, 1152, %s32_s27, [#allocation3]  }
  0x59   :  { %s6821_s21 = scalar_lea.hbm %s7289_s2, 36864 }
  0x5a   :  { %p6822_p12 = scmp.ne.s32.totalorder %s7289_s2, %s6821_s21  ;;  %p6825_p13 = scmp.lt.u32.totalorder %s6821_s21, %s7289_s2 }
  0x5c   :  { %p6827_p0 = pnand %p6825_p13, %p6822_p12 }
  0x5e   :  { %6830 = shalt.err (!%p6827_p0)
}
  0x5f   :  { %s6831_s5 = scalar_lea.vmem %s7118_s29, 36864  ;;  %p6836_p2 = scmp.lt.s32.totalorder %s7118_s29, %s7118_s29 }
  0x60   :  { %p6832_p1 = scmp.ne.s32.totalorder %s7118_s29, %s6831_s5  ;;  %p6837_p3 = scmp.lt.s32.totalorder %s6831_s5, %s6831_s5 }
  0x62   :  { %p6838_p4 = por %p6837_p3, %p6836_p2 }
  0x64   :  { %p6839_p5 = pnand %p6838_p4, %p6832_p1 }
  0x66   :  { %6842 = shalt.err (!%p6839_p5)
}
  0x67   :  { %s6997_s0 = smov 256   ;;  %s6998_s23 = smov 16  }
  0x68   :  { %56 = dma.hbm_to_vmem [thread:$0]  %s7289_s2, 36864, %s7118_s29, [#allocation6], %s6997_s0, %s6997_s0, %s6998_s23  }
  0x69   :  { %s6999_s28 = smov [#allocation10]   ;;  %s6843_s3 = scalar_lea.hbm %s7291_s4, 4096 }
  0x6a   :  { %s72_s30 = sshll.u32 %s6999_s28, 4  ;;  %p6844_p6 = scmp.ne.s32.totalorder %s7291_s4, %s6843_s3  ;;  %s73_s30 = int_to_ptr.vmem [resolvable:$true] %s72_s30 }
  0x6b   :  { %p6847_p7 = scmp.lt.u32.totalorder %s6843_s3, %s7291_s4 }
  0x6d   :  { %p6849_p8 = pnand %p6847_p7, %p6844_p6 }
  0x6f   :  { %6852 = shalt.err (!%p6849_p8)
}
  0x70   :  { %s6853_s25 = scalar_lea.vmem %s73_s30, 4096  ;;  %p6858_p10 = scmp.lt.s32.totalorder %s73_s30, %s73_s30 }
  0x71   :  { %p6854_p9 = scmp.ne.s32.totalorder %s73_s30, %s6853_s25  ;;  %p6859_p11 = scmp.lt.s32.totalorder %s6853_s25, %s6853_s25 }
  0x73   :  { %p6860_p12 = por %p6859_p11, %p6858_p10 }
  0x75   :  { %p6861_p13 = pnand %p6860_p12, %p6854_p9 }
  0x77   :  { %6864 = shalt.err (!%p6861_p13)
}
  0x78   :  { %s7000_s2 = smov 64   ;;  %s7001_s29 = smov 4  }
  0x79   :  { %78 = dma.hbm_to_vmem [thread:$0]  %s7291_s4, 4096, %s73_s30, [#allocation9], %s7000_s2, %s7000_s2, %s7001_s29  }
  0x7a   :  { %s7002_s19 = smov [#allocation13]   ;;  %s6865_s22 = scalar_lea.hbm %s7293_s6, 32768 }
  0x7b   :  { %s94_s21 = sshll.u32 %s7002_s19, 4  ;;  %p6866_p0 = scmp.ne.s32.totalorder %s7293_s6, %s6865_s22  ;;  %s95_s21 = int_to_ptr.vmem [resolvable:$true] %s94_s21 }
  0x7c   :  { %p6869_p1 = scmp.lt.u32.totalorder %s6865_s22, %s7293_s6 }
  0x7e   :  { %p6871_p2 = pnand %p6869_p1, %p6866_p0 }
  0x80   :  { %6874 = shalt.err (!%p6871_p2)
}
  0x81   :  { %s6875_s26 = scalar_lea.vmem %s95_s21, 32768  ;;  %p6880_p4 = scmp.lt.s32.totalorder %s95_s21, %s95_s21 }
  0x82   :  { %p6876_p3 = scmp.ne.s32.totalorder %s95_s21, %s6875_s26  ;;  %p6881_p5 = scmp.lt.s32.totalorder %s6875_s26, %s6875_s26 }
  0x84   :  { %p6882_p6 = por %p6881_p5, %p6880_p4 }
  0x86   :  { %p6883_p7 = pnand %p6882_p6, %p6876_p3 }
  0x88   :  { %6886 = shalt.err (!%p6883_p7)
}
  0x89   :  { %s7003_s4 = smov 512   ;;  %s7004_s27 = smov 32  }
  0x8a   :  { %100 = dma.hbm_to_vmem [thread:$0]  %s7293_s6, 32768, %s95_s21, [#allocation12], %s7003_s4, %s7003_s4, %s7004_s27  }
  0x8b   :  { %s7005_s12 = smov [#allocation16]   ;;  %s7006_s3 = smov [#allocation17]  }
  0x8c   :  { %s116_s13 = sshll.u32 %s7005_s12, 4  ;;  %s129_s20 = sshll.u32 %s7006_s3, 4  ;;  %s117_s13 = int_to_ptr.vmem [resolvable:$true] %s116_s13  ;;  %s130_s20 = int_to_ptr.vmem [resolvable:$true] %s129_s20 }
  0x8d   :  { %s6887_s7 = scalar_lea.hbm %s7295_s8, 8192 }
  0x8e   :  { %p6888_p8 = scmp.ne.s32.totalorder %s7295_s8, %s6887_s7  ;;  %p6891_p9 = scmp.lt.u32.totalorder %s6887_s7, %s7295_s8 }
  0x90   :  { %p6893_p10 = pnand %p6891_p9, %p6888_p8 }
  0x92   :  { %6896 = shalt.err (!%p6893_p10)
}
  0x93   :  { %s6897_s6 = scalar_lea.vmem %s117_s13, 8192  ;;  %p6902_p12 = scmp.lt.s32.totalorder %s117_s13, %s117_s13 }
  0x94   :  { %p6898_p11 = scmp.ne.s32.totalorder %s117_s13, %s6897_s6  ;;  %p6903_p13 = scmp.lt.s32.totalorder %s6897_s6, %s6897_s6 }
  0x96   :  { %p6904_p0 = por %p6903_p13, %p6902_p12 }
  0x98   :  { %p6905_p1 = pnand %p6904_p0, %p6898_p11 }
  0x9a   :  { %6908 = shalt.err (!%p6905_p1)
}
  0x9b   :  { %122 = dma.hbm_to_vmem [thread:$0]  %s7295_s8, 8192, %s117_s13, [#allocation15], %s7000_s2, %s7000_s2, %s7001_s29  }
  0x9c   :  { %s6909_s24 = scalar_lea.hbm %s7296_s9, 16 }
  0x9d   :  { %p6910_p2 = scmp.ne.s32.totalorder %s7296_s9, %s6909_s24  ;;  %p6913_p3 = scmp.lt.u32.totalorder %s6909_s24, %s7296_s9 }
  0x9f   :  { %p6915_p4 = pnand %p6913_p3, %p6910_p2 }
  0xa1   :  { %6918 = shalt.err (!%p6915_p4)
}
  0xa2   :  { %s6919_s4 = scalar_lea.vmem %s130_s20, 16  ;;  %s6923_s27 = scalar_lea.vmem %s130_s20, 32 }
  0xa3   :  { %p6920_p5 = scmp.ne.s32.totalorder %s130_s20, %s6919_s4  ;;  %p6924_p6 = scmp.lt.s32.totalorder %s130_s20, %s130_s20 }
  0xa4   :  { %p6925_p7 = scmp.lt.s32.totalorder %s6923_s27, %s6919_s4 }
  0xa6   :  { %p6926_p8 = por %p6925_p7, %p6924_p6 }
  0xa8   :  { %p6927_p9 = pnand %p6926_p8, %p6920_p5 }
  0xaa   :  { %6930 = shalt.err (!%p6927_p9)
}
  0xab   :  { %132 = dma.hbm_to_vmem [thread:$0]  %s7296_s9, 16, %s130_s20, [#allocation18]  }
  0xac   :  { %6975 = dma.done.wait [#allocation3], 1152  }
  0xad   :  { %6976 = vsyncadd [#allocation3], 4294966144 }
  0xae   :  { %6977 = dma.done.wait [#allocation6], 37376  }
  0xaf   :  { %6978 = vsyncadd [#allocation6], 4294929920 }
  0xb0   :  { %6979 = dma.done.wait [#allocation9], 4160  }
  0xb1   :  { %6980 = vsyncadd [#allocation9], 4294963136 }
  0xb2   :  { %6981 = dma.done.wait [#allocation12], 32784  }
  0xb3   :  { %6982 = vsyncadd [#allocation12], 4294934512 }
  0xb4   :  { %6983 = dma.done.wait [#allocation15], 8320  }
  0xb5   :  { %6984 = vsyncadd [#allocation15], 4294958976 }
  0xb6   :  { %6985 = dma.done.wait [#allocation18], 16  }
  0xb7   :  { %6986 = vsyncadd [#allocation18], 4294967280  ;;  %v6183_v0 = vld [vmem:[#allocation7 + $0x4] ss:$16 sps:$4 sm:$0xff]   ;;  %v6185_v1 = vld [vmem:[#allocation7 + $0xc] ss:$16 sps:$4 sm:$0xff]  }
  0xb8   :  { %1932 = vmatprep.subr.bf16.mxu0 %v6183_v0  ;;  %v6187_v2 = vld [vmem:[#allocation7] ss:$16 sps:$4 sm:$0xff]   ;;  %v6188_v3 = vld [vmem:[#allocation7 + $0x8] ss:$16 sps:$4 sm:$0xff]   ;;  %2137 = vmatprep.subr.bf16.mxu1 %v6185_v1  ;;  %v6189_v4 = vld [vmem:[#allocation7 + $0x24] ss:$16 sps:$4 sm:$0xff]  }
  0xb9   :  { %1933 = vmatpush1.bf16.msra.mxu0 %v6187_v2  ;;  %2138 = vmatpush1.bf16.msra.mxu1 %v6188_v3  ;;  %v6191_v5 = vld [vmem:[#allocation7 + $0x2c] ss:$16 sps:$4 sm:$0xff]   ;;  %v6193_v6 = vld [vmem:[#allocation7 + $0x20] ss:$16 sps:$4 sm:$0xff]   ;;  %v6194_v7 = vld [vmem:[#allocation7 + $0x28] ss:$16 sps:$4 sm:$0xff]  }
  0xba   :  { %1934 = vmatprep.subr.bf16.mxu0 %v6189_v4  ;;  %2139 = vmatprep.subr.bf16.mxu1 %v6191_v5  ;;  %v6195_v8 = vld [vmem:[#allocation7 + $0x44] ss:$16 sps:$4 sm:$0xff]   ;;  %v6197_v9 = vld [vmem:[#allocation7 + $0x4c] ss:$16 sps:$4 sm:$0xff]   ;;  %v6199_v10 = vld [vmem:[#allocation7 + $0x40] ss:$16 sps:$4 sm:$0xff]  }
  0xbb   :  { %v6200_v11 = vld [vmem:[#allocation7 + $0x48] ss:$16 sps:$4 sm:$0xff]   ;;  %v6201_v12 = vld [vmem:[#allocation7 + $0x64] ss:$16 sps:$4 sm:$0xff]   ;;  %v6203_v13 = vld [vmem:[#allocation7 + $0x6c] ss:$16 sps:$4 sm:$0xff]  }
  0xbc   :  { %v6205_v14 = vld [vmem:[#allocation7 + $0x60] ss:$16 sps:$4 sm:$0xff]   ;;  %v6206_v15 = vld [vmem:[#allocation7 + $0x68] ss:$16 sps:$4 sm:$0xff]   ;;  %v6207_v16 = vld [vmem:[#allocation7 + $0x84] ss:$16 sps:$4 sm:$0xff]  }
  0xbd   :  { %1935 = vmatpush1.bf16.msra.mxu0 %v6193_v6  ;;  %2140 = vmatpush1.bf16.msra.mxu1 %v6194_v7  ;;  %v6209_v17 = vld [vmem:[#allocation7 + $0x8c] ss:$16 sps:$4 sm:$0xff]   ;;  %v6211_v18 = vld [vmem:[#allocation7 + $0x80] ss:$16 sps:$4 sm:$0xff]   ;;  %v6212_v19 = vld [vmem:[#allocation7 + $0x88] ss:$16 sps:$4 sm:$0xff]  }
  0xbe   :  { %1936 = vmatprep.subr.bf16.mxu0 %v6195_v8  ;;  %2141 = vmatprep.subr.bf16.mxu1 %v6197_v9  ;;  %v6213_v20 = vld [vmem:[#allocation7 + $0xa4] ss:$16 sps:$4 sm:$0xff]   ;;  %v6215_v21 = vld [vmem:[#allocation7 + $0xac] ss:$16 sps:$4 sm:$0xff]   ;;  %v6217_v22 = vld [vmem:[#allocation7 + $0xa0] ss:$16 sps:$4 sm:$0xff]  }
  0xbf   :  { %v6218_v23 = vld [vmem:[#allocation7 + $0xa8] ss:$16 sps:$4 sm:$0xff]   ;;  %v6219_v24 = vld [vmem:[#allocation7 + $0xc4] ss:$16 sps:$4 sm:$0xff]   ;;  %v6221_v25 = vld [vmem:[#allocation7 + $0xcc] ss:$16 sps:$4 sm:$0xff]  }
  0xc0   :  { %v6223_v26 = vld [vmem:[#allocation7 + $0xc0] ss:$16 sps:$4 sm:$0xff]   ;;  %v6224_v27 = vld [vmem:[#allocation7 + $0xc8] ss:$16 sps:$4 sm:$0xff]   ;;  %v6225_v28 = vld [vmem:[#allocation7 + $0xe4] ss:$16 sps:$4 sm:$0xff]  }
  0xc1   :  { %1937 = vmatpush1.bf16.msra.mxu0 %v6199_v10  ;;  %2142 = vmatpush1.bf16.msra.mxu1 %v6200_v11  ;;  %v6227_v29 = vld [vmem:[#allocation7 + $0xec] ss:$16 sps:$4 sm:$0xff]   ;;  %v6229_v30 = vld [vmem:[#allocation7 + $0xe0] ss:$16 sps:$4 sm:$0xff]   ;;  %v6230_v31 = vld [vmem:[#allocation7 + $0xe8] ss:$16 sps:$4 sm:$0xff]  }
  0xc2   :  { %1938 = vmatprep.subr.bf16.mxu0 %v6201_v12  ;;  %2143 = vmatprep.subr.bf16.mxu1 %v6203_v13  ;;  %v6231_v32 = vld [vmem:[#allocation7 + $0x104] ss:$16 sps:$4 sm:$0xff]   ;;  %v6233_v33 = vld [vmem:[#allocation7 + $0x10c] ss:$16 sps:$4 sm:$0xff]   ;;  %v6235_v34 = vld [vmem:[#allocation7 + $0x100] ss:$16 sps:$4 sm:$0xff]  }
  0xc3   :  { %v6236_v35 = vld [vmem:[#allocation7 + $0x108] ss:$16 sps:$4 sm:$0xff]   ;;  %v6237_v36 = vld [vmem:[#allocation7 + $0x124] ss:$16 sps:$4 sm:$0xff]   ;;  %v6239_v37 = vld [vmem:[#allocation7 + $0x12c] ss:$16 sps:$4 sm:$0xff]  }
  0xc4   :  { %v6241_v38 = vld [vmem:[#allocation7 + $0x120] ss:$16 sps:$4 sm:$0xff]   ;;  %v6242_v39 = vld [vmem:[#allocation7 + $0x128] ss:$16 sps:$4 sm:$0xff]   ;;  %v6243_v40 = vld [vmem:[#allocation7 + $0x144] ss:$16 sps:$4 sm:$0xff]  }
  0xc5   :  { %1939 = vmatpush1.bf16.msra.mxu0 %v6205_v14  ;;  %2144 = vmatpush1.bf16.msra.mxu1 %v6206_v15  ;;  %v6245_v41 = vld [vmem:[#allocation7 + $0x14c] ss:$16 sps:$4 sm:$0xff]   ;;  %v6247_v42 = vld [vmem:[#allocation7 + $0x140] ss:$16 sps:$4 sm:$0xff]   ;;  %v6248_v43 = vld [vmem:[#allocation7 + $0x148] ss:$16 sps:$4 sm:$0xff]  }
  0xc6   :  { %1940 = vmatprep.subr.bf16.mxu0 %v6207_v16  ;;  %2145 = vmatprep.subr.bf16.mxu1 %v6209_v17  ;;  %v6249_v44 = vld [vmem:[#allocation7 + $0x164] ss:$16 sps:$4 sm:$0xff]   ;;  %v6251_v45 = vld [vmem:[#allocation7 + $0x16c] ss:$16 sps:$4 sm:$0xff]   ;;  %v6253_v47 = vld [vmem:[#allocation7 + $0x160] ss:$16 sps:$4 sm:$0xff]  }
  0xc7   :  { %v165_v46 = vld [vmem:[#allocation2 + $0x8] sm:$0xff]  ;;  %v6254_v49 = vld [vmem:[#allocation7 + $0x168] ss:$16 sps:$4 sm:$0xff]   ;;  %v6257_v51 = vld [vmem:[#allocation7 + $0x18c] ss:$16 sps:$4 sm:$0xff]   ;;  %s7008_s9 = smov [#allocation19]  }
  0xc8   :  { %v174_v48 = vpack.c.bf16 %v165_v46, %v165_v46  ;;  %v6255_v50 = vld [vmem:[#allocation7 + $0x184] ss:$16 sps:$4 sm:$0xff]   ;;  %v6259_v52 = vld [vmem:[#allocation7 + $0x180] ss:$16 sps:$4 sm:$0xff]   ;;  %v6260_v53 = vld [vmem:[#allocation7 + $0x188] ss:$16 sps:$4 sm:$0xff]  }
  0xc9   :  { %1941 = vmatpush1.bf16.msra.mxu0 %v6211_v18  ;;  %2146 = vmatpush1.bf16.msra.mxu1 %v6212_v19  ;;  %v6261_v54 = vld [vmem:[#allocation7 + $0x1a4] ss:$16 sps:$4 sm:$0xff]   ;;  %v6263_v55 = vld [vmem:[#allocation7 + $0x1ac] ss:$16 sps:$4 sm:$0xff]   ;;  %v6265_v56 = vld [vmem:[#allocation7 + $0x1a0] ss:$16 sps:$4 sm:$0xff]  }
  0xca   :  { %1942 = vmatprep.subr.bf16.mxu0 %v6213_v20  ;;  %2147 = vmatprep.subr.bf16.mxu1 %v6215_v21  ;;  %v6266_v57 = vld [vmem:[#allocation7 + $0x1a8] ss:$16 sps:$4 sm:$0xff]   ;;  %v6267_v58 = vld [vmem:[#allocation7 + $0x1c4] ss:$16 sps:$4 sm:$0xff]   ;;  %v6269_v59 = vld [vmem:[#allocation7 + $0x1cc] ss:$16 sps:$4 sm:$0xff]  }
  0xcb   :  { %1964 = vmatprep.mubr.bf16.mxu0 %v174_v48  ;;  %2169 = vmatprep.mubr.bf16.mxu1 %v174_v48  ;;  %v6271_v60 = vld [vmem:[#allocation7 + $0x1c0] ss:$16 sps:$4 sm:$0xff]   ;;  %v6272_v61 = vld [vmem:[#allocation7 + $0x1c8] ss:$16 sps:$4 sm:$0xff]   ;;  %v6273_v62 = vld [vmem:[#allocation7 + $0x1e4] ss:$16 sps:$4 sm:$0xff]  }
  0xcc   :  { %v6275_v63 = vld [vmem:[#allocation7 + $0x1ec] ss:$16 sps:$4 sm:$0xff]   ;;  %v6277_v0 = vld [vmem:[#allocation7 + $0x1e0] ss:$16 sps:$4 sm:$0xff]   ;;  %v6278_v1 = vld [vmem:[#allocation7 + $0x1e8] ss:$16 sps:$4 sm:$0xff]  }
  0xcd   :  { %1943 = vmatpush1.bf16.msra.mxu0 %v6217_v22  ;;  %2148 = vmatpush1.bf16.msra.mxu1 %v6218_v23  ;;  %v164_v2 = vld [vmem:[#allocation2] sm:$0xff]  ;;  %v6281_v3 = vld [vmem:[#allocation7 + $0x204] ss:$16 sps:$4 sm:$0xff]   ;;  %v6279_v6 = vld [vmem:[#allocation7 + $0x200] ss:$16 sps:$4 sm:$0xff]   ;;  %s5302_s29 = sshll.u32 %s7008_s9, 4  ;;  %s5303_s29 = int_to_ptr.vmem [resolvable:$true] %s5302_s29 }
  0xce   :  { %1944 = vmatprep.subr.bf16.mxu0 %v6219_v24  ;;  %2149 = vmatprep.subr.bf16.mxu1 %v6221_v25  ;;  %v6284_v4 = vld [vmem:[#allocation7 + $0x20c] ss:$16 sps:$4 sm:$0xff]   ;;  %v173_v5 = vpack.c.bf16 %v164_v2, %v164_v2  ;;  %v6282_v7 = vld [vmem:[#allocation7 + $0x208] ss:$16 sps:$4 sm:$0xff]   ;;  %v6287_v8 = vld [vmem:[#allocation7 + $0x224] ss:$16 sps:$4 sm:$0xff]   ;;  %p6936_p11 = scmp.lt.s32.totalorder %s5303_s29, %s5303_s29 }
  0xcf   :  { %v6290_v9 = vld [vmem:[#allocation7 + $0x22c] ss:$16 sps:$4 sm:$0xff]   ;;  %v6285_v10 = vld [vmem:[#allocation7 + $0x220] ss:$16 sps:$4 sm:$0xff]   ;;  %v6288_v11 = vld [vmem:[#allocation7 + $0x228] ss:$16 sps:$4 sm:$0xff]  }
  0xd0   :  { %v6293_v12 = vld [vmem:[#allocation7 + $0x244] ss:$16 sps:$4 sm:$0xff]   ;;  %v6296_v13 = vld [vmem:[#allocation7 + $0x24c] ss:$16 sps:$4 sm:$0xff]   ;;  %v6291_v14 = vld [vmem:[#allocation7 + $0x240] ss:$16 sps:$4 sm:$0xff]  }
  0xd1   :  { %1945 = vmatpush1.bf16.msra.mxu0 %v6223_v26  ;;  %2150 = vmatpush1.bf16.msra.mxu1 %v6224_v27  ;;  %v6294_v15 = vld [vmem:[#allocation7 + $0x248] ss:$16 sps:$4 sm:$0xff]   ;;  %v6299_v16 = vld [vmem:[#allocation7 + $0x264] ss:$16 sps:$4 sm:$0xff]   ;;  %v6302_v17 = vld [vmem:[#allocation7 + $0x26c] ss:$16 sps:$4 sm:$0xff]  }
  0xd2   :  { %1946 = vmatprep.subr.bf16.mxu0 %v6225_v28  ;;  %2151 = vmatprep.subr.bf16.mxu1 %v6227_v29  ;;  %v6297_v18 = vld [vmem:[#allocation7 + $0x260] ss:$16 sps:$4 sm:$0xff]   ;;  %v6300_v19 = vld [vmem:[#allocation7 + $0x268] ss:$16 sps:$4 sm:$0xff]   ;;  %v6305_v20 = vld [vmem:[#allocation7 + $0x284] ss:$16 sps:$4 sm:$0xff]  }
  0xd3   :  { %v6308_v21 = vld [vmem:[#allocation7 + $0x28c] ss:$16 sps:$4 sm:$0xff]   ;;  %v6303_v22 = vld [vmem:[#allocation7 + $0x280] ss:$16 sps:$4 sm:$0xff]   ;;  %v6306_v23 = vld [vmem:[#allocation7 + $0x288] ss:$16 sps:$4 sm:$0xff]  }
  0xd4   :  { %v6311_v24 = vld [vmem:[#allocation7 + $0x2a4] ss:$16 sps:$4 sm:$0xff]   ;;  %v6314_v25 = vld [vmem:[#allocation7 + $0x2ac] ss:$16 sps:$4 sm:$0xff]   ;;  %v6309_v26 = vld [vmem:[#allocation7 + $0x2a0] ss:$16 sps:$4 sm:$0xff]  }
  0xd5   :  { %1947 = vmatpush1.bf16.msra.mxu0 %v6229_v30  ;;  %2152 = vmatpush1.bf16.msra.mxu1 %v6230_v31  ;;  %v6312_v27 = vld [vmem:[#allocation7 + $0x2a8] ss:$16 sps:$4 sm:$0xff]   ;;  %v6317_v28 = vld [vmem:[#allocation7 + $0x2c4] ss:$16 sps:$4 sm:$0xff]   ;;  %v6320_v29 = vld [vmem:[#allocation7 + $0x2cc] ss:$16 sps:$4 sm:$0xff]  }
  0xd6   :  { %1948 = vmatprep.subr.bf16.mxu0 %v6231_v32  ;;  %2153 = vmatprep.subr.bf16.mxu1 %v6233_v33  ;;  %v167_v30 = vld [vmem:[#allocation2 + $0x18] sm:$0xff]  ;;  %v6318_v33 = vld [vmem:[#allocation7 + $0x2c8] ss:$16 sps:$4 sm:$0xff]   ;;  %s6931_s28 = scalar_lea.vmem %s5303_s29, 128 }
  0xd7   :  { %v6315_v31 = vld [vmem:[#allocation7 + $0x2c0] ss:$16 sps:$4 sm:$0xff]   ;;  %v176_v32 = vpack.c.bf16 %v167_v30, %v167_v30  ;;  %v6341_v46 = vld [vmem:[#allocation7 + $0x344] ss:$16 sps:$4 sm:$0xff]   ;;  %p6932_p10 = scmp.ne.s32.totalorder %s5303_s29, %s6931_s28  ;;  %p6937_p12 = scmp.lt.s32.totalorder %s6931_s28, %s6931_s28 }
  0xd8   :  { %v6339_v48 = vld [vmem:[#allocation7 + $0x340] ss:$16 sps:$4 sm:$0xff]   ;;  %v6371_v2 = vld [vmem:[#allocation7 + $0x3e4] ss:$16 sps:$4 sm:$0xff]  }
  0xd9   :  { %1949 = vmatpush1.bf16.msra.mxu0 %v6235_v34  ;;  %2154 = vmatpush1.bf16.msra.mxu1 %v6236_v35  ;;  %v6323_v34 = vld [vmem:[#allocation7 + $0x2e4] ss:$16 sps:$4 sm:$0xff]   ;;  %v6326_v35 = vld [vmem:[#allocation7 + $0x2ec] ss:$16 sps:$4 sm:$0xff]   ;;  %p6938_p13 = por %p6937_p12, %p6936_p11 }
  0xda   :  { %1950 = vmatprep.subr.bf16.mxu0 %v6237_v36  ;;  %2155 = vmatprep.subr.bf16.mxu1 %v6239_v37  ;;  %v6321_v36 = vld [vmem:[#allocation7 + $0x2e0] ss:$16 sps:$4 sm:$0xff]   ;;  %v6324_v37 = vld [vmem:[#allocation7 + $0x2e8] ss:$16 sps:$4 sm:$0xff]   ;;  %v6407_v30 = vld [vmem:[#allocation7 + $0x4a4] ss:$16 sps:$4 sm:$0xff]  }
  0xdb   :  { %p6939_p0 = pnand %p6938_p13, %p6932_p10 }
  0xdd   :  { %1951 = vmatpush1.bf16.msra.mxu0 %v6241_v38  ;;  %2156 = vmatpush1.bf16.msra.mxu1 %v6242_v39  ;;  %v6329_v38 = vld [vmem:[#allocation7 + $0x304] ss:$16 sps:$4 sm:$0xff]   ;;  %v6332_v39 = vld [vmem:[#allocation7 + $0x30c] ss:$16 sps:$4 sm:$0xff]  }
  0xde   :  { %1952 = vmatprep.subr.bf16.mxu0 %v6243_v40  ;;  %2157 = vmatprep.subr.bf16.mxu1 %v6245_v41  ;;  %v6327_v40 = vld [vmem:[#allocation7 + $0x300] ss:$16 sps:$4 sm:$0xff]   ;;  %v6330_v41 = vld [vmem:[#allocation7 + $0x308] ss:$16 sps:$4 sm:$0xff]  }
  0xe1   :  { %1953 = vmatpush1.bf16.msra.mxu0 %v6247_v42  ;;  %2158 = vmatpush1.bf16.msra.mxu1 %v6248_v43  ;;  %v6335_v42 = vld [vmem:[#allocation7 + $0x324] ss:$16 sps:$4 sm:$0xff]   ;;  %v6338_v43 = vld [vmem:[#allocation7 + $0x32c] ss:$16 sps:$4 sm:$0xff]  }
  0xe2   :  { %1954 = vmatprep.subr.bf16.mxu0 %v6249_v44  ;;  %2159 = vmatprep.subr.bf16.mxu1 %v6251_v45  ;;  %v6333_v44 = vld [vmem:[#allocation7 + $0x320] ss:$16 sps:$4 sm:$0xff]   ;;  %v6336_v45 = vld [vmem:[#allocation7 + $0x328] ss:$16 sps:$4 sm:$0xff]  }
  0xe5   :  { %1955 = vmatpush1.bf16.msra.mxu0 %v6253_v47  ;;  %2160 = vmatpush1.bf16.msra.mxu1 %v6254_v49  ;;  %v6344_v47 = vld [vmem:[#allocation7 + $0x34c] ss:$16 sps:$4 sm:$0xff]   ;;  %v6342_v49 = vld [vmem:[#allocation7 + $0x348] ss:$16 sps:$4 sm:$0xff]  }
  0xe6   :  { %1956 = vmatprep.subr.bf16.mxu0 %v6255_v50  ;;  %2161 = vmatprep.subr.bf16.mxu1 %v6257_v51  ;;  %v6347_v50 = vld [vmem:[#allocation7 + $0x364] ss:$16 sps:$4 sm:$0xff]   ;;  %v6350_v51 = vld [vmem:[#allocation7 + $0x36c] ss:$16 sps:$4 sm:$0xff]  }
  0xe9   :  { %1957 = vmatpush1.bf16.msra.mxu0 %v6259_v52  ;;  %2162 = vmatpush1.bf16.msra.mxu1 %v6260_v53  ;;  %v6345_v52 = vld [vmem:[#allocation7 + $0x360] ss:$16 sps:$4 sm:$0xff]   ;;  %v6348_v53 = vld [vmem:[#allocation7 + $0x368] ss:$16 sps:$4 sm:$0xff]  }
  0xea   :  { %1958 = vmatprep.subr.bf16.mxu0 %v6261_v54  ;;  %2163 = vmatprep.subr.bf16.mxu1 %v6263_v55  ;;  %v6353_v54 = vld [vmem:[#allocation7 + $0x384] ss:$16 sps:$4 sm:$0xff]   ;;  %v6356_v55 = vld [vmem:[#allocation7 + $0x38c] ss:$16 sps:$4 sm:$0xff]  }
  0xed   :  { %1959 = vmatpush1.bf16.msra.mxu0 %v6265_v56  ;;  %2164 = vmatpush1.bf16.msra.mxu1 %v6266_v57  ;;  %v6351_v56 = vld [vmem:[#allocation7 + $0x380] ss:$16 sps:$4 sm:$0xff]   ;;  %v6354_v57 = vld [vmem:[#allocation7 + $0x388] ss:$16 sps:$4 sm:$0xff]  }
  0xee   :  { %1960 = vmatprep.subr.bf16.mxu0 %v6267_v58  ;;  %2165 = vmatprep.subr.bf16.mxu1 %v6269_v59  ;;  %v6359_v58 = vld [vmem:[#allocation7 + $0x3a4] ss:$16 sps:$4 sm:$0xff]   ;;  %v6362_v59 = vld [vmem:[#allocation7 + $0x3ac] ss:$16 sps:$4 sm:$0xff]  }
  0xf1   :  { %1961 = vmatpush1.bf16.msra.mxu0 %v6271_v60  ;;  %2166 = vmatpush1.bf16.msra.mxu1 %v6272_v61  ;;  %v6357_v60 = vld [vmem:[#allocation7 + $0x3a0] ss:$16 sps:$4 sm:$0xff]   ;;  %v6360_v61 = vld [vmem:[#allocation7 + $0x3a8] ss:$16 sps:$4 sm:$0xff]  }
  0xf2   :  { %1962 = vmatprep.subr.bf16.mxu0 %v6273_v62  ;;  %2167 = vmatprep.subr.bf16.mxu1 %v6275_v63  ;;  %v6365_v62 = vld [vmem:[#allocation7 + $0x3c4] ss:$16 sps:$4 sm:$0xff]   ;;  %v6368_v63 = vld [vmem:[#allocation7 + $0x3cc] ss:$16 sps:$4 sm:$0xff]  }
  0xf5   :  { %1963 = vmatpush1.bf16.msra.mxu0 %v6277_v0  ;;  %2168 = vmatpush1.bf16.msra.mxu1 %v6278_v1  ;;  %v6363_v0 = vld [vmem:[#allocation7 + $0x3c0] ss:$16 sps:$4 sm:$0xff]   ;;  %v6366_v1 = vld [vmem:[#allocation7 + $0x3c8] ss:$16 sps:$4 sm:$0xff]  }
  0xf6   :  { %1973 = vmatprep.subr.bf16.mxu0 %v6281_v3  ;;  %2178 = vmatprep.subr.bf16.mxu1 %v6284_v4  ;;  %v6374_v3 = vld [vmem:[#allocation7 + $0x3ec] ss:$16 sps:$4 sm:$0xff]   ;;  %v6369_v4 = vld [vmem:[#allocation7 + $0x3e0] ss:$16 sps:$4 sm:$0xff]  }
  0xf8   :  { %1965 = vmatmul.mubr.bf16.vlgmr.msra.gmra.mrb[0].mxu0 %v173_v5  ;;  %2170 = vmatmul.mubr.bf16.vlgmr.msra.gmra.mrb[0].mxu1 %v173_v5  ;;  %v6372_v5 = vld [vmem:[#allocation7 + $0x3e8] ss:$16 sps:$4 sm:$0xff]  }
  0xf9   :  { %1974 = vmatpush1.bf16.msra.mxu0 %v6279_v6  ;;  %2179 = vmatpush1.bf16.msra.mxu1 %v6282_v7  ;;  %v6377_v6 = vld [vmem:[#allocation7 + $0x404] ss:$16 sps:$4 sm:$0xff]   ;;  %v166_v7 = vld [vmem:[#allocation2 + $0x10] sm:$0xff] }
  0xfa   :  { %1975 = vmatprep.subr.bf16.mxu0 %v6287_v8  ;;  %2180 = vmatprep.subr.bf16.mxu1 %v6290_v9  ;;  %v6380_v8 = vld [vmem:[#allocation7 + $0x40c] ss:$16 sps:$4 sm:$0xff]   ;;  %v6375_v9 = vld [vmem:[#allocation7 + $0x400] ss:$16 sps:$4 sm:$0xff]  }
  0xfb   :  { %2005 = vmatprep.mubr.bf16.mxu0 %v176_v32  ;;  %2210 = vmatprep.mubr.bf16.mxu1 %v176_v32  ;;  %v6405_v32 = vld [vmem:[#allocation7 + $0x4a0] ss:$16 sps:$4 sm:$0xff]  }
  0xfd   :  { %1976 = vmatpush1.bf16.msra.mxu0 %v6285_v10  ;;  %2181 = vmatpush1.bf16.msra.mxu1 %v6288_v11  ;;  %v6378_v10 = vld [vmem:[#allocation7 + $0x408] ss:$16 sps:$4 sm:$0xff]   ;;  %v175_v11 = vpack.c.bf16 %v166_v7, %v166_v7  ;;  %v6470_v7 = vld [vmem:[#allocation7 + $0x5ec] ss:$16 sps:$4 sm:$0xff]  }
  0xfe   :  { %1977 = vmatprep.subr.bf16.mxu0 %v6293_v12  ;;  %2182 = vmatprep.subr.bf16.mxu1 %v6296_v13  ;;  %v6383_v12 = vld [vmem:[#allocation7 + $0x424] ss:$16 sps:$4 sm:$0xff]   ;;  %v6386_v13 = vld [vmem:[#allocation7 + $0x42c] ss:$16 sps:$4 sm:$0xff]  }
 0x101   :  { %1978 = vmatpush1.bf16.msra.mxu0 %v6291_v14  ;;  %2183 = vmatpush1.bf16.msra.mxu1 %v6294_v15  ;;  %v169_v14 = vld [vmem:[#allocation2 + $0x28] sm:$0xff] }
 0x102   :  { %1979 = vmatprep.subr.bf16.mxu0 %v6299_v16  ;;  %2184 = vmatprep.subr.bf16.mxu1 %v6302_v17  ;;  %v178_v15 = vpack.c.bf16 %v169_v14, %v169_v14  ;;  %v6381_v16 = vld [vmem:[#allocation7 + $0x420] ss:$16 sps:$4 sm:$0xff]   ;;  %v6384_v17 = vld [vmem:[#allocation7 + $0x428] ss:$16 sps:$4 sm:$0xff]  }
 0x103   :  { %v6474_v14 = vld [vmem:[#allocation7 + $0x608] ss:$16 sps:$4 sm:$0xff]  }
 0x105   :  { %1980 = vmatpush1.bf16.msra.mxu0 %v6297_v18  ;;  %2185 = vmatpush1.bf16.msra.mxu1 %v6300_v19  ;;  %v6389_v18 = vld [vmem:[#allocation7 + $0x444] ss:$16 sps:$4 sm:$0xff]   ;;  %v6392_v19 = vld [vmem:[#allocation7 + $0x44c] ss:$16 sps:$4 sm:$0xff]  }
 0x106   :  { %1981 = vmatprep.subr.bf16.mxu0 %v6305_v20  ;;  %2186 = vmatprep.subr.bf16.mxu1 %v6308_v21  ;;  %v6387_v20 = vld [vmem:[#allocation7 + $0x440] ss:$16 sps:$4 sm:$0xff]   ;;  %v6390_v21 = vld [vmem:[#allocation7 + $0x448] ss:$16 sps:$4 sm:$0xff]  }
 0x109   :  { %1982 = vmatpush1.bf16.msra.mxu0 %v6303_v22  ;;  %2187 = vmatpush1.bf16.msra.mxu1 %v6306_v23  ;;  %v6395_v22 = vld [vmem:[#allocation7 + $0x464] ss:$16 sps:$4 sm:$0xff]   ;;  %v6398_v23 = vld [vmem:[#allocation7 + $0x46c] ss:$16 sps:$4 sm:$0xff]  }
 0x10a   :  { %1983 = vmatprep.subr.bf16.mxu0 %v6311_v24  ;;  %2188 = vmatprep.subr.bf16.mxu1 %v6314_v25  ;;  %v6393_v24 = vld [vmem:[#allocation7 + $0x460] ss:$16 sps:$4 sm:$0xff]   ;;  %v6396_v25 = vld [vmem:[#allocation7 + $0x468] ss:$16 sps:$4 sm:$0xff]  }
 0x10d   :  { %1984 = vmatpush1.bf16.msra.mxu0 %v6309_v26  ;;  %2189 = vmatpush1.bf16.msra.mxu1 %v6312_v27  ;;  %v6401_v26 = vld [vmem:[#allocation7 + $0x484] ss:$16 sps:$4 sm:$0xff]   ;;  %v6404_v27 = vld [vmem:[#allocation7 + $0x48c] ss:$16 sps:$4 sm:$0xff]  }
 0x10e   :  { %1985 = vmatprep.subr.bf16.mxu0 %v6317_v28  ;;  %2190 = vmatprep.subr.bf16.mxu1 %v6320_v29  ;;  %v6399_v28 = vld [vmem:[#allocation7 + $0x480] ss:$16 sps:$4 sm:$0xff]   ;;  %v6402_v29 = vld [vmem:[#allocation7 + $0x488] ss:$16 sps:$4 sm:$0xff]  }
 0x111   :  { %1986 = vmatpush1.bf16.msra.mxu0 %v6315_v31  ;;  %2191 = vmatpush1.bf16.msra.mxu1 %v6318_v33  ;;  %v6410_v31 = vld [vmem:[#allocation7 + $0x4ac] ss:$16 sps:$4 sm:$0xff]   ;;  %v6408_v33 = vld [vmem:[#allocation7 + $0x4a8] ss:$16 sps:$4 sm:$0xff]  }
 0x112   :  { %1987 = vmatprep.subr.bf16.mxu0 %v6323_v34  ;;  %2192 = vmatprep.subr.bf16.mxu1 %v6326_v35  ;;  %v6413_v34 = vld [vmem:[#allocation7 + $0x4c4] ss:$16 sps:$4 sm:$0xff]   ;;  %v6416_v35 = vld [vmem:[#allocation7 + $0x4cc] ss:$16 sps:$4 sm:$0xff]  }
 0x115   :  { %1988 = vmatpush1.bf16.msra.mxu0 %v6321_v36  ;;  %2193 = vmatpush1.bf16.msra.mxu1 %v6324_v37  ;;  %v6411_v36 = vld [vmem:[#allocation7 + $0x4c0] ss:$16 sps:$4 sm:$0xff]   ;;  %v6414_v37 = vld [vmem:[#allocation7 + $0x4c8] ss:$16 sps:$4 sm:$0xff]  }
 0x116   :  { %1989 = vmatprep.subr.bf16.mxu0 %v6329_v38  ;;  %2194 = vmatprep.subr.bf16.mxu1 %v6332_v39  ;;  %v6419_v38 = vld [vmem:[#allocation7 + $0x4e4] ss:$16 sps:$4 sm:$0xff]   ;;  %v6422_v39 = vld [vmem:[#allocation7 + $0x4ec] ss:$16 sps:$4 sm:$0xff]  }
 0x119   :  { %1990 = vmatpush1.bf16.msra.mxu0 %v6327_v40  ;;  %2195 = vmatpush1.bf16.msra.mxu1 %v6330_v41  ;;  %v6417_v40 = vld [vmem:[#allocation7 + $0x4e0] ss:$16 sps:$4 sm:$0xff]   ;;  %v6420_v41 = vld [vmem:[#allocation7 + $0x4e8] ss:$16 sps:$4 sm:$0xff]  }
 0x11a   :  { %1991 = vmatprep.subr.bf16.mxu0 %v6335_v42  ;;  %2196 = vmatprep.subr.bf16.mxu1 %v6338_v43  ;;  %v6425_v42 = vld [vmem:[#allocation7 + $0x504] ss:$16 sps:$4 sm:$0xff]   ;;  %v6428_v43 = vld [vmem:[#allocation7 + $0x50c] ss:$16 sps:$4 sm:$0xff]  }
 0x11d   :  { %1992 = vmatpush1.bf16.msra.mxu0 %v6333_v44  ;;  %2197 = vmatpush1.bf16.msra.mxu1 %v6336_v45  ;;  %v6423_v44 = vld [vmem:[#allocation7 + $0x500] ss:$16 sps:$4 sm:$0xff]   ;;  %v6426_v45 = vld [vmem:[#allocation7 + $0x508] ss:$16 sps:$4 sm:$0xff]  }
 0x11e   :  { %1993 = vmatprep.subr.bf16.mxu0 %v6341_v46  ;;  %2198 = vmatprep.subr.bf16.mxu1 %v6344_v47  ;;  %v6431_v46 = vld [vmem:[#allocation7 + $0x524] ss:$16 sps:$4 sm:$0xff]   ;;  %v6434_v47 = vld [vmem:[#allocation7 + $0x52c] ss:$16 sps:$4 sm:$0xff]  }
 0x121   :  { %1994 = vmatpush1.bf16.msra.mxu0 %v6339_v48  ;;  %2199 = vmatpush1.bf16.msra.mxu1 %v6342_v49  ;;  %v6429_v48 = vld [vmem:[#allocation7 + $0x520] ss:$16 sps:$4 sm:$0xff]   ;;  %v6432_v49 = vld [vmem:[#allocation7 + $0x528] ss:$16 sps:$4 sm:$0xff]  }
 0x122   :  { %1995 = vmatprep.subr.bf16.mxu0 %v6347_v50  ;;  %2200 = vmatprep.subr.bf16.mxu1 %v6350_v51  ;;  %v6437_v50 = vld [vmem:[#allocation7 + $0x544] ss:$16 sps:$4 sm:$0xff]   ;;  %v6440_v51 = vld [vmem:[#allocation7 + $0x54c] ss:$16 sps:$4 sm:$0xff]  }
 0x125   :  { %1996 = vmatpush1.bf16.msra.mxu0 %v6345_v52  ;;  %2201 = vmatpush1.bf16.msra.mxu1 %v6348_v53  ;;  %v6435_v52 = vld [vmem:[#allocation7 + $0x540] ss:$16 sps:$4 sm:$0xff]   ;;  %v6438_v53 = vld [vmem:[#allocation7 + $0x548] ss:$16 sps:$4 sm:$0xff]  }
 0x126   :  { %1997 = vmatprep.subr.bf16.mxu0 %v6353_v54  ;;  %2202 = vmatprep.subr.bf16.mxu1 %v6356_v55  ;;  %v6443_v54 = vld [vmem:[#allocation7 + $0x564] ss:$16 sps:$4 sm:$0xff]   ;;  %v6446_v55 = vld [vmem:[#allocation7 + $0x56c] ss:$16 sps:$4 sm:$0xff]  }
 0x129   :  { %1998 = vmatpush1.bf16.msra.mxu0 %v6351_v56  ;;  %2203 = vmatpush1.bf16.msra.mxu1 %v6354_v57  ;;  %v6441_v56 = vld [vmem:[#allocation7 + $0x560] ss:$16 sps:$4 sm:$0xff]   ;;  %v6444_v57 = vld [vmem:[#allocation7 + $0x568] ss:$16 sps:$4 sm:$0xff]  }
 0x12a   :  { %1999 = vmatprep.subr.bf16.mxu0 %v6359_v58  ;;  %2204 = vmatprep.subr.bf16.mxu1 %v6362_v59  ;;  %v6449_v58 = vld [vmem:[#allocation7 + $0x584] ss:$16 sps:$4 sm:$0xff]   ;;  %v6452_v59 = vld [vmem:[#allocation7 + $0x58c] ss:$16 sps:$4 sm:$0xff]  }
 0x12d   :  { %2000 = vmatpush1.bf16.msra.mxu0 %v6357_v60  ;;  %2205 = vmatpush1.bf16.msra.mxu1 %v6360_v61  ;;  %v6447_v60 = vld [vmem:[#allocation7 + $0x580] ss:$16 sps:$4 sm:$0xff]   ;;  %v6450_v61 = vld [vmem:[#allocation7 + $0x588] ss:$16 sps:$4 sm:$0xff]  }
 0x12e   :  { %2001 = vmatprep.subr.bf16.mxu0 %v6365_v62  ;;  %2206 = vmatprep.subr.bf16.mxu1 %v6368_v63  ;;  %v6455_v62 = vld [vmem:[#allocation7 + $0x5a4] ss:$16 sps:$4 sm:$0xff]   ;;  %v6458_v63 = vld [vmem:[#allocation7 + $0x5ac] ss:$16 sps:$4 sm:$0xff]  }
 0x131   :  { %2002 = vmatpush1.bf16.msra.mxu0 %v6363_v0  ;;  %2207 = vmatpush1.bf16.msra.mxu1 %v6366_v1  ;;  %v6453_v0 = vld [vmem:[#allocation7 + $0x5a0] ss:$16 sps:$4 sm:$0xff]   ;;  %v6456_v1 = vld [vmem:[#allocation7 + $0x5a8] ss:$16 sps:$4 sm:$0xff]  }
 0x132   :  { %2003 = vmatprep.subr.bf16.mxu0 %v6371_v2  ;;  %2208 = vmatprep.subr.bf16.mxu1 %v6374_v3  ;;  %v6461_v2 = vld [vmem:[#allocation7 + $0x5c4] ss:$16 sps:$4 sm:$0xff]   ;;  %v6464_v3 = vld [vmem:[#allocation7 + $0x5cc] ss:$16 sps:$4 sm:$0xff]  }
 0x135   :  { %2004 = vmatpush1.bf16.msra.mxu0 %v6369_v4  ;;  %2209 = vmatpush1.bf16.msra.mxu1 %v6372_v5  ;;  %v6459_v4 = vld [vmem:[#allocation7 + $0x5c0] ss:$16 sps:$4 sm:$0xff]   ;;  %v6462_v5 = vld [vmem:[#allocation7 + $0x5c8] ss:$16 sps:$4 sm:$0xff]  }
 0x136   :  { %2014 = vmatprep.subr.bf16.mxu0 %v6377_v6  ;;  %2219 = vmatprep.subr.bf16.mxu1 %v6380_v8  ;;  %v6467_v6 = vld [vmem:[#allocation7 + $0x5e4] ss:$16 sps:$4 sm:$0xff]   ;;  %v6465_v8 = vld [vmem:[#allocation7 + $0x5e0] ss:$16 sps:$4 sm:$0xff]  }
 0x138   :  { %2006 = vmatmul.mubr.bf16.vlgmr.msra.gmra.mrb[0].mxu0 %v175_v11  ;;  %2211 = vmatmul.mubr.bf16.vlgmr.msra.gmra.mrb[0].mxu1 %v175_v11  ;;  %v168_v11 = vld [vmem:[#allocation2 + $0x20] sm:$0xff] }
 0x139   :  { %2015 = vmatpush1.bf16.msra.mxu0 %v6375_v9  ;;  %2220 = vmatpush1.bf16.msra.mxu1 %v6378_v10  ;;  %v6468_v9 = vld [vmem:[#allocation7 + $0x5e8] ss:$16 sps:$4 sm:$0xff]   ;;  %v6473_v10 = vld [vmem:[#allocation7 + $0x604] ss:$16 sps:$4 sm:$0xff]  }
 0x13a   :  { %2016 = vmatprep.subr.bf16.mxu0 %v6383_v12  ;;  %2221 = vmatprep.subr.bf16.mxu1 %v6386_v13  ;;  %v6476_v12 = vld [vmem:[#allocation7 + $0x60c] ss:$16 sps:$4 sm:$0xff]   ;;  %v6471_v13 = vld [vmem:[#allocation7 + $0x600] ss:$16 sps:$4 sm:$0xff]  }
 0x13b   :  { %2046 = vmatprep.mubr.bf16.mxu0 %v178_v15  ;;  %2251 = vmatprep.mubr.bf16.mxu1 %v178_v15  ;;  %v177_v15 = vpack.c.bf16 %v168_v11, %v168_v11  ;;  %v6566_v11 = vld [vmem:[#allocation7 + $0x7ec] ss:$16 sps:$4 sm:$0xff]  }
 0x13d   :  { %2017 = vmatpush1.bf16.msra.mxu0 %v6381_v16  ;;  %2222 = vmatpush1.bf16.msra.mxu1 %v6384_v17  ;;  %v171_v16 = vld [vmem:[#allocation2 + $0x38] sm:$0xff] }
 0x13e   :  { %2018 = vmatprep.subr.bf16.mxu0 %v6389_v18  ;;  %2223 = vmatprep.subr.bf16.mxu1 %v6392_v19  ;;  %v6479_v17 = vld [vmem:[#allocation7 + $0x624] ss:$16 sps:$4 sm:$0xff]   ;;  %v6482_v18 = vld [vmem:[#allocation7 + $0x62c] ss:$16 sps:$4 sm:$0xff]   ;;  %v6477_v19 = vld [vmem:[#allocation7 + $0x620] ss:$16 sps:$4 sm:$0xff]  }
 0x141   :  { %2019 = vmatpush1.bf16.msra.mxu0 %v6387_v20  ;;  %2224 = vmatpush1.bf16.msra.mxu1 %v6390_v21  ;;  %v180_v20 = vpack.c.bf16 %v171_v16, %v171_v16  ;;  %v6480_v21 = vld [vmem:[#allocation7 + $0x628] ss:$16 sps:$4 sm:$0xff]   ;;  %v6572_v16 = vld [vmem:[#allocation7 + $0x80c] ss:$16 sps:$4 sm:$0xff]  }
 0x142   :  { %2020 = vmatprep.subr.bf16.mxu0 %v6395_v22  ;;  %2225 = vmatprep.subr.bf16.mxu1 %v6398_v23  ;;  %v6485_v22 = vld [vmem:[#allocation7 + $0x644] ss:$16 sps:$4 sm:$0xff]   ;;  %v6488_v23 = vld [vmem:[#allocation7 + $0x64c] ss:$16 sps:$4 sm:$0xff]  }
 0x145   :  { %2021 = vmatpush1.bf16.msra.mxu0 %v6393_v24  ;;  %2226 = vmatpush1.bf16.msra.mxu1 %v6396_v25  ;;  %v6483_v24 = vld [vmem:[#allocation7 + $0x640] ss:$16 sps:$4 sm:$0xff]   ;;  %v6486_v25 = vld [vmem:[#allocation7 + $0x648] ss:$16 sps:$4 sm:$0xff]  }
 0x146   :  { %2022 = vmatprep.subr.bf16.mxu0 %v6401_v26  ;;  %2227 = vmatprep.subr.bf16.mxu1 %v6404_v27  ;;  %v6491_v26 = vld [vmem:[#allocation7 + $0x664] ss:$16 sps:$4 sm:$0xff]   ;;  %v6494_v27 = vld [vmem:[#allocation7 + $0x66c] ss:$16 sps:$4 sm:$0xff]  }
 0x149   :  { %2023 = vmatpush1.bf16.msra.mxu0 %v6399_v28  ;;  %2228 = vmatpush1.bf16.msra.mxu1 %v6402_v29  ;;  %v6489_v28 = vld [vmem:[#allocation7 + $0x660] ss:$16 sps:$4 sm:$0xff]   ;;  %v6492_v29 = vld [vmem:[#allocation7 + $0x668] ss:$16 sps:$4 sm:$0xff]  }
 0x14a   :  { %2024 = vmatprep.subr.bf16.mxu0 %v6407_v30  ;;  %2229 = vmatprep.subr.bf16.mxu1 %v6410_v31  ;;  %v6497_v30 = vld [vmem:[#allocation7 + $0x684] ss:$16 sps:$4 sm:$0xff]   ;;  %v6500_v31 = vld [vmem:[#allocation7 + $0x68c] ss:$16 sps:$4 sm:$0xff]  }
 0x14d   :  { %2025 = vmatpush1.bf16.msra.mxu0 %v6405_v32  ;;  %2230 = vmatpush1.bf16.msra.mxu1 %v6408_v33  ;;  %v6495_v32 = vld [vmem:[#allocation7 + $0x680] ss:$16 sps:$4 sm:$0xff]   ;;  %v6498_v33 = vld [vmem:[#allocation7 + $0x688] ss:$16 sps:$4 sm:$0xff]  }
 0x14e   :  { %2026 = vmatprep.subr.bf16.mxu0 %v6413_v34  ;;  %2231 = vmatprep.subr.bf16.mxu1 %v6416_v35  ;;  %v6503_v34 = vld [vmem:[#allocation7 + $0x6a4] ss:$16 sps:$4 sm:$0xff]   ;;  %v6506_v35 = vld [vmem:[#allocation7 + $0x6ac] ss:$16 sps:$4 sm:$0xff]  }
 0x151   :  { %2027 = vmatpush1.bf16.msra.mxu0 %v6411_v36  ;;  %2232 = vmatpush1.bf16.msra.mxu1 %v6414_v37  ;;  %v6501_v36 = vld [vmem:[#allocation7 + $0x6a0] ss:$16 sps:$4 sm:$0xff]   ;;  %v6504_v37 = vld [vmem:[#allocation7 + $0x6a8] ss:$16 sps:$4 sm:$0xff]  }
 0x152   :  { %2028 = vmatprep.subr.bf16.mxu0 %v6419_v38  ;;  %2233 = vmatprep.subr.bf16.mxu1 %v6422_v39  ;;  %v6509_v38 = vld [vmem:[#allocation7 + $0x6c4] ss:$16 sps:$4 sm:$0xff]   ;;  %v6512_v39 = vld [vmem:[#allocation7 + $0x6cc] ss:$16 sps:$4 sm:$0xff]  }
 0x155   :  { %2029 = vmatpush1.bf16.msra.mxu0 %v6417_v40  ;;  %2234 = vmatpush1.bf16.msra.mxu1 %v6420_v41  ;;  %v6507_v40 = vld [vmem:[#allocation7 + $0x6c0] ss:$16 sps:$4 sm:$0xff]   ;;  %v6510_v41 = vld [vmem:[#allocation7 + $0x6c8] ss:$16 sps:$4 sm:$0xff]  }
 0x156   :  { %2030 = vmatprep.subr.bf16.mxu0 %v6425_v42  ;;  %2235 = vmatprep.subr.bf16.mxu1 %v6428_v43  ;;  %v6515_v42 = vld [vmem:[#allocation7 + $0x6e4] ss:$16 sps:$4 sm:$0xff]   ;;  %v6518_v43 = vld [vmem:[#allocation7 + $0x6ec] ss:$16 sps:$4 sm:$0xff]  }
 0x159   :  { %2031 = vmatpush1.bf16.msra.mxu0 %v6423_v44  ;;  %2236 = vmatpush1.bf16.msra.mxu1 %v6426_v45  ;;  %v6513_v44 = vld [vmem:[#allocation7 + $0x6e0] ss:$16 sps:$4 sm:$0xff]   ;;  %v6516_v45 = vld [vmem:[#allocation7 + $0x6e8] ss:$16 sps:$4 sm:$0xff]  }
 0x15a   :  { %2032 = vmatprep.subr.bf16.mxu0 %v6431_v46  ;;  %2237 = vmatprep.subr.bf16.mxu1 %v6434_v47  ;;  %v6521_v46 = vld [vmem:[#allocation7 + $0x704] ss:$16 sps:$4 sm:$0xff]   ;;  %v6524_v47 = vld [vmem:[#allocation7 + $0x70c] ss:$16 sps:$4 sm:$0xff]  }
 0x15d   :  { %2033 = vmatpush1.bf16.msra.mxu0 %v6429_v48  ;;  %2238 = vmatpush1.bf16.msra.mxu1 %v6432_v49  ;;  %v6519_v48 = vld [vmem:[#allocation7 + $0x700] ss:$16 sps:$4 sm:$0xff]   ;;  %v6522_v49 = vld [vmem:[#allocation7 + $0x708] ss:$16 sps:$4 sm:$0xff]  }
 0x15e   :  { %2034 = vmatprep.subr.bf16.mxu0 %v6437_v50  ;;  %2239 = vmatprep.subr.bf16.mxu1 %v6440_v51  ;;  %v6527_v50 = vld [vmem:[#allocation7 + $0x724] ss:$16 sps:$4 sm:$0xff]   ;;  %v6530_v51 = vld [vmem:[#allocation7 + $0x72c] ss:$16 sps:$4 sm:$0xff]  }
 0x161   :  { %2035 = vmatpush1.bf16.msra.mxu0 %v6435_v52  ;;  %2240 = vmatpush1.bf16.msra.mxu1 %v6438_v53  ;;  %v6525_v52 = vld [vmem:[#allocation7 + $0x720] ss:$16 sps:$4 sm:$0xff]   ;;  %v6528_v53 = vld [vmem:[#allocation7 + $0x728] ss:$16 sps:$4 sm:$0xff]  }
 0x162   :  { %2036 = vmatprep.subr.bf16.mxu0 %v6443_v54  ;;  %2241 = vmatprep.subr.bf16.mxu1 %v6446_v55  ;;  %v6533_v54 = vld [vmem:[#allocation7 + $0x744] ss:$16 sps:$4 sm:$0xff]   ;;  %v6536_v55 = vld [vmem:[#allocation7 + $0x74c] ss:$16 sps:$4 sm:$0xff]  }
 0x165   :  { %2037 = vmatpush1.bf16.msra.mxu0 %v6441_v56  ;;  %2242 = vmatpush1.bf16.msra.mxu1 %v6444_v57  ;;  %v6531_v56 = vld [vmem:[#allocation7 + $0x740] ss:$16 sps:$4 sm:$0xff]   ;;  %v6534_v57 = vld [vmem:[#allocation7 + $0x748] ss:$16 sps:$4 sm:$0xff]  }
 0x166   :  { %2038 = vmatprep.subr.bf16.mxu0 %v6449_v58  ;;  %2243 = vmatprep.subr.bf16.mxu1 %v6452_v59  ;;  %v6539_v58 = vld [vmem:[#allocation7 + $0x764] ss:$16 sps:$4 sm:$0xff]   ;;  %v6542_v59 = vld [vmem:[#allocation7 + $0x76c] ss:$16 sps:$4 sm:$0xff]  }
 0x169   :  { %2039 = vmatpush1.bf16.msra.mxu0 %v6447_v60  ;;  %2244 = vmatpush1.bf16.msra.mxu1 %v6450_v61  ;;  %v6537_v60 = vld [vmem:[#allocation7 + $0x760] ss:$16 sps:$4 sm:$0xff]   ;;  %v6540_v61 = vld [vmem:[#allocation7 + $0x768] ss:$16 sps:$4 sm:$0xff]  }
 0x16a   :  { %2040 = vmatprep.subr.bf16.mxu0 %v6455_v62  ;;  %2245 = vmatprep.subr.bf16.mxu1 %v6458_v63  ;;  %v6545_v62 = vld [vmem:[#allocation7 + $0x784] ss:$16 sps:$4 sm:$0xff]   ;;  %v6548_v63 = vld [vmem:[#allocation7 + $0x78c] ss:$16 sps:$4 sm:$0xff]  }
 0x16d   :  { %2041 = vmatpush1.bf16.msra.mxu0 %v6453_v0  ;;  %2246 = vmatpush1.bf16.msra.mxu1 %v6456_v1  ;;  %v6543_v0 = vld [vmem:[#allocation7 + $0x780] ss:$16 sps:$4 sm:$0xff]   ;;  %v6546_v1 = vld [vmem:[#allocation7 + $0x788] ss:$16 sps:$4 sm:$0xff]  }
 0x16e   :  { %2042 = vmatprep.subr.bf16.mxu0 %v6461_v2  ;;  %2247 = vmatprep.subr.bf16.mxu1 %v6464_v3  ;;  %v6551_v2 = vld [vmem:[#allocation7 + $0x7a4] ss:$16 sps:$4 sm:$0xff]   ;;  %v6554_v3 = vld [vmem:[#allocation7 + $0x7ac] ss:$16 sps:$4 sm:$0xff]  }
 0x171   :  { %2043 = vmatpush1.bf16.msra.mxu0 %v6459_v4  ;;  %2248 = vmatpush1.bf16.msra.mxu1 %v6462_v5  ;;  %v6549_v4 = vld [vmem:[#allocation7 + $0x7a0] ss:$16 sps:$4 sm:$0xff]   ;;  %v6552_v5 = vld [vmem:[#allocation7 + $0x7a8] ss:$16 sps:$4 sm:$0xff]  }
 0x172   :  { %2044 = vmatprep.subr.bf16.mxu0 %v6467_v6  ;;  %2249 = vmatprep.subr.bf16.mxu1 %v6470_v7  ;;  %v6557_v6 = vld [vmem:[#allocation7 + $0x7c4] ss:$16 sps:$4 sm:$0xff]   ;;  %v6560_v7 = vld [vmem:[#allocation7 + $0x7cc] ss:$16 sps:$4 sm:$0xff]  }
 0x175   :  { %2045 = vmatpush1.bf16.msra.mxu0 %v6465_v8  ;;  %2250 = vmatpush1.bf16.msra.mxu1 %v6468_v9  ;;  %v6555_v8 = vld [vmem:[#allocation7 + $0x7c0] ss:$16 sps:$4 sm:$0xff]   ;;  %v6558_v9 = vld [vmem:[#allocation7 + $0x7c8] ss:$16 sps:$4 sm:$0xff]  }
 0x176   :  { %2055 = vmatprep.subr.bf16.mxu0 %v6473_v10  ;;  %2260 = vmatprep.subr.bf16.mxu1 %v6476_v12  ;;  %v6563_v10 = vld [vmem:[#allocation7 + $0x7e4] ss:$16 sps:$4 sm:$0xff]   ;;  %v6561_v12 = vld [vmem:[#allocation7 + $0x7e0] ss:$16 sps:$4 sm:$0xff]  }
 0x178   :  { %2047 = vmatmul.mubr.bf16.vlgmr.msra.gmra.mrb[0].mxu0 %v177_v15  ;;  %2252 = vmatmul.mubr.bf16.vlgmr.msra.gmra.mrb[0].mxu1 %v177_v15  ;;  %v6569_v15 = vld [vmem:[#allocation7 + $0x804] ss:$16 sps:$4 sm:$0xff]  }
 0x179   :  { %2056 = vmatpush1.bf16.msra.mxu0 %v6471_v13  ;;  %2261 = vmatpush1.bf16.msra.mxu1 %v6474_v14  ;;  %v6564_v13 = vld [vmem:[#allocation7 + $0x7e8] ss:$16 sps:$4 sm:$0xff]  }
 0x17a   :  { %2057 = vmatprep.subr.bf16.mxu0 %v6479_v17  ;;  %2262 = vmatprep.subr.bf16.mxu1 %v6482_v18  ;;  %v170_v14 = vld [vmem:[#allocation2 + $0x30] sm:$0xff]  ;;  %v6567_v17 = vld [vmem:[#allocation7 + $0x800] ss:$16 sps:$4 sm:$0xff]  }
 0x17b   :  { %2087 = vmatprep.mubr.bf16.mxu0 %v180_v20  ;;  %2292 = vmatprep.mubr.bf16.mxu1 %v180_v20  ;;  %v6570_v18 = vld [vmem:[#allocation7 + $0x808] ss:$16 sps:$4 sm:$0xff]   ;;  %v6575_v20 = vld [vmem:[#allocation7 + $0x824] ss:$16 sps:$4 sm:$0xff]  }
 0x17d   :  { %2058 = vmatpush1.bf16.msra.mxu0 %v6477_v19  ;;  %2263 = vmatpush1.bf16.msra.mxu1 %v6480_v21  ;;  %v179_v19 = vpack.c.bf16 %v170_v14, %v170_v14  ;;  %v6578_v21 = vld [vmem:[#allocation7 + $0x82c] ss:$16 sps:$4 sm:$0xff]   ;;  %v6642_v14 = vld [vmem:[#allocation10 + $0xb0] sm:$0xff]  }
 0x17e   :  { %2059 = vmatprep.subr.bf16.mxu0 %v6485_v22  ;;  %2264 = vmatprep.subr.bf16.mxu1 %v6488_v23  ;;  %v6573_v22 = vld [vmem:[#allocation7 + $0x820] ss:$16 sps:$4 sm:$0xff]   ;;  %v6576_v23 = vld [vmem:[#allocation7 + $0x828] ss:$16 sps:$4 sm:$0xff]  }
 0x181   :  { %2060 = vmatpush1.bf16.msra.mxu0 %v6483_v24  ;;  %2265 = vmatpush1.bf16.msra.mxu1 %v6486_v25  ;;  %v6581_v24 = vld [vmem:[#allocation7 + $0x844] ss:$16 sps:$4 sm:$0xff]   ;;  %v6584_v25 = vld [vmem:[#allocation7 + $0x84c] ss:$16 sps:$4 sm:$0xff]  }
 0x182   :  { %2061 = vmatprep.subr.bf16.mxu0 %v6491_v26  ;;  %2266 = vmatprep.subr.bf16.mxu1 %v6494_v27  ;;  %v6579_v26 = vld [vmem:[#allocation7 + $0x840] ss:$16 sps:$4 sm:$0xff]   ;;  %v6582_v27 = vld [vmem:[#allocation7 + $0x848] ss:$16 sps:$4 sm:$0xff]  }
 0x185   :  { %2062 = vmatpush1.bf16.msra.mxu0 %v6489_v28  ;;  %2267 = vmatpush1.bf16.msra.mxu1 %v6492_v29  ;;  %v7007_v28 = vmov 0   ;;  %v6587_v29 = vld [vmem:[#allocation7 + $0x864] ss:$16 sps:$4 sm:$0xff]  }
 0x186   :  { %2063 = vmatprep.subr.bf16.mxu0 %v6497_v30  ;;  %2268 = vmatprep.subr.bf16.mxu1 %v6500_v31  ;;  %v6590_v30 = vld [vmem:[#allocation7 + $0x86c] ss:$16 sps:$4 sm:$0xff]   ;;  %v6585_v31 = vld [vmem:[#allocation7 + $0x860] ss:$16 sps:$4 sm:$0xff]  }
 0x189   :  { %2064 = vmatpush1.bf16.msra.mxu0 %v6495_v32  ;;  %2269 = vmatpush1.bf16.msra.mxu1 %v6498_v33  ;;  %v6588_v32 = vld [vmem:[#allocation7 + $0x868] ss:$16 sps:$4 sm:$0xff]   ;;  %v6593_v33 = vld [vmem:[#allocation7 + $0x884] ss:$16 sps:$4 sm:$0xff]  }
 0x18a   :  { %2065 = vmatprep.subr.bf16.mxu0 %v6503_v34  ;;  %2270 = vmatprep.subr.bf16.mxu1 %v6506_v35  ;;  %v6596_v34 = vld [vmem:[#allocation7 + $0x88c] ss:$16 sps:$4 sm:$0xff]   ;;  %v6591_v35 = vld [vmem:[#allocation7 + $0x880] ss:$16 sps:$4 sm:$0xff]  }
 0x18d   :  { %2066 = vmatpush1.bf16.msra.mxu0 %v6501_v36  ;;  %2271 = vmatpush1.bf16.msra.mxu1 %v6504_v37  ;;  %v6594_v36 = vld [vmem:[#allocation7 + $0x888] ss:$16 sps:$4 sm:$0xff]   ;;  %v6599_v37 = vld [vmem:[#allocation7 + $0x8a4] ss:$16 sps:$4 sm:$0xff]  }
 0x18e   :  { %2067 = vmatprep.subr.bf16.mxu0 %v6509_v38  ;;  %2272 = vmatprep.subr.bf16.mxu1 %v6512_v39  ;;  %v6602_v38 = vld [vmem:[#allocation7 + $0x8ac] ss:$16 sps:$4 sm:$0xff]   ;;  %v6597_v39 = vld [vmem:[#allocation7 + $0x8a0] ss:$16 sps:$4 sm:$0xff]  }
 0x191   :  { %2068 = vmatpush1.bf16.msra.mxu0 %v6507_v40  ;;  %2273 = vmatpush1.bf16.msra.mxu1 %v6510_v41  ;;  %v6600_v40 = vld [vmem:[#allocation7 + $0x8a8] ss:$16 sps:$4 sm:$0xff]   ;;  %v6605_v41 = vld [vmem:[#allocation7 + $0x8c4] ss:$16 sps:$4 sm:$0xff]  }
 0x192   :  { %2069 = vmatprep.subr.bf16.mxu0 %v6515_v42  ;;  %2274 = vmatprep.subr.bf16.mxu1 %v6518_v43  ;;  %v6608_v42 = vld [vmem:[#allocation7 + $0x8cc] ss:$16 sps:$4 sm:$0xff]   ;;  %v6603_v43 = vld [vmem:[#allocation7 + $0x8c0] ss:$16 sps:$4 sm:$0xff]  }
 0x195   :  { %2070 = vmatpush1.bf16.msra.mxu0 %v6513_v44  ;;  %2275 = vmatpush1.bf16.msra.mxu1 %v6516_v45  ;;  %v6606_v44 = vld [vmem:[#allocation7 + $0x8c8] ss:$16 sps:$4 sm:$0xff]   ;;  %v6611_v45 = vld [vmem:[#allocation7 + $0x8e4] ss:$16 sps:$4 sm:$0xff]  }
 0x196   :  { %2071 = vmatprep.subr.bf16.mxu0 %v6521_v46  ;;  %2276 = vmatprep.subr.bf16.mxu1 %v6524_v47  ;;  %v6614_v46 = vld [vmem:[#allocation7 + $0x8ec] ss:$16 sps:$4 sm:$0xff]   ;;  %v6609_v47 = vld [vmem:[#allocation7 + $0x8e0] ss:$16 sps:$4 sm:$0xff]  }
 0x199   :  { %2072 = vmatpush1.bf16.msra.mxu0 %v6519_v48  ;;  %2277 = vmatpush1.bf16.msra.mxu1 %v6522_v49  ;;  %v6612_v48 = vld [vmem:[#allocation7 + $0x8e8] ss:$16 sps:$4 sm:$0xff]  }
 0x19a   :  { %2073 = vmatprep.subr.bf16.mxu0 %v6527_v50  ;;  %2278 = vmatprep.subr.bf16.mxu1 %v6530_v51  ;;  %v172_v49 = vld [vmem:[#allocation2 + $0x40] sm:$0xff]  ;;  %v6615_v50 = vld [vmem:[#allocation10 + $0x40] sm:$0xff]  }
 0x19b   :  { %v6616_v51 = vld [vmem:[#allocation10 + $0xc0] sm:$0xff]  }
 0x19d   :  { %2074 = vmatpush1.bf16.msra.mxu0 %v6525_v52  ;;  %2279 = vmatpush1.bf16.msra.mxu1 %v6528_v53  ;;  %v181_v52 = vpack.c.bf16 %v172_v49, %v172_v49  ;;  %v6617_v53 = vld [vmem:[#allocation10] sm:$0xff]  }
 0x19e   :  { %2075 = vmatprep.subr.bf16.mxu0 %v6533_v54  ;;  %2280 = vmatprep.subr.bf16.mxu1 %v6536_v55  ;;  %v6618_v54 = vld [vmem:[#allocation10 + $0x80] sm:$0xff]   ;;  %v6619_v55 = vld [vmem:[#allocation10 + $0x48] sm:$0xff]  }
 0x1a1   :  { %2076 = vmatpush1.bf16.msra.mxu0 %v6531_v56  ;;  %2281 = vmatpush1.bf16.msra.mxu1 %v6534_v57  ;;  %v6620_v56 = vld [vmem:[#allocation10 + $0xc8] sm:$0xff]  }
 0x1a2   :  { %2077 = vmatprep.subr.bf16.mxu0 %v6539_v58  ;;  %2282 = vmatprep.subr.bf16.mxu1 %v6542_v59  ;;  %v6621_v57 = vld [vmem:[#allocation10 + $0x8] sm:$0xff]   ;;  %v6623_v59 = vld [vmem:[#allocation10 + $0x50] sm:$0xff]  }
 0x1a3   :  { %v6622_v58 = vld [vmem:[#allocation10 + $0x88] sm:$0xff]  }
 0x1a5   :  { %2078 = vmatpush1.bf16.msra.mxu0 %v6537_v60  ;;  %2283 = vmatpush1.bf16.msra.mxu1 %v6540_v61  ;;  %v6624_v60 = vld [vmem:[#allocation10 + $0xd0] sm:$0xff]  }
 0x1a6   :  { %2079 = vmatprep.subr.bf16.mxu0 %v6545_v62  ;;  %2284 = vmatprep.subr.bf16.mxu1 %v6548_v63  ;;  %v6625_v61 = vld [vmem:[#allocation10 + $0x10] sm:$0xff]   ;;  %v6627_v63 = vld [vmem:[#allocation10 + $0x58] sm:$0xff]  }
 0x1a7   :  { %v6626_v62 = vld [vmem:[#allocation10 + $0x90] sm:$0xff]  }
 0x1a9   :  { %2080 = vmatpush1.bf16.msra.mxu0 %v6543_v0  ;;  %2285 = vmatpush1.bf16.msra.mxu1 %v6546_v1  ;;  %v6628_v0 = vld [vmem:[#allocation10 + $0xd8] sm:$0xff]  }
 0x1aa   :  { %2081 = vmatprep.subr.bf16.mxu0 %v6551_v2  ;;  %2286 = vmatprep.subr.bf16.mxu1 %v6554_v3  ;;  %v6629_v1 = vld [vmem:[#allocation10 + $0x18] sm:$0xff]   ;;  %v6631_v3 = vld [vmem:[#allocation10 + $0x60] sm:$0xff]  }
 0x1ab   :  { %v6630_v2 = vld [vmem:[#allocation10 + $0x98] sm:$0xff]  }
 0x1ad   :  { %2082 = vmatpush1.bf16.msra.mxu0 %v6549_v4  ;;  %2287 = vmatpush1.bf16.msra.mxu1 %v6552_v5  ;;  %v6632_v4 = vld [vmem:[#allocation10 + $0xe0] sm:$0xff]  }
 0x1ae   :  { %2083 = vmatprep.subr.bf16.mxu0 %v6557_v6  ;;  %2288 = vmatprep.subr.bf16.mxu1 %v6560_v7  ;;  %v6633_v5 = vld [vmem:[#allocation10 + $0x20] sm:$0xff]   ;;  %v6635_v7 = vld [vmem:[#allocation10 + $0x68] sm:$0xff]  }
 0x1af   :  { %v6634_v6 = vld [vmem:[#allocation10 + $0xa0] sm:$0xff]  }
 0x1b1   :  { %2084 = vmatpush1.bf16.msra.mxu0 %v6555_v8  ;;  %2289 = vmatpush1.bf16.msra.mxu1 %v6558_v9  ;;  %v6636_v8 = vld [vmem:[#allocation10 + $0xe8] sm:$0xff]  }
 0x1b2   :  { %2085 = vmatprep.subr.bf16.mxu0 %v6563_v10  ;;  %2290 = vmatprep.subr.bf16.mxu1 %v6566_v11  ;;  %v6637_v9 = vld [vmem:[#allocation10 + $0x28] sm:$0xff]   ;;  %v6639_v11 = vld [vmem:[#allocation10 + $0x70] sm:$0xff]  }
 0x1b3   :  { %v6638_v10 = vld [vmem:[#allocation10 + $0xa8] sm:$0xff]  }
 0x1b5   :  { %2086 = vmatpush1.bf16.msra.mxu0 %v6561_v12  ;;  %2291 = vmatpush1.bf16.msra.mxu1 %v6564_v13  ;;  %v6640_v12 = vld [vmem:[#allocation10 + $0xf0] sm:$0xff]  }
 0x1b6   :  { %2096 = vmatprep.subr.bf16.mxu0 %v6569_v15  ;;  %2301 = vmatprep.subr.bf16.mxu1 %v6572_v16  ;;  %v6641_v13 = vld [vmem:[#allocation10 + $0x30] sm:$0xff]   ;;  %v6643_v15 = vld [vmem:[#allocation10 + $0x78] sm:$0xff]  }
 0x1b7   :  { %v6644_v16 = vld [vmem:[#allocation10 + $0xf8] sm:$0xff]  }
 0x1b8   :  { %2088 = vmatmul.mubr.bf16.vlgmr.msra.gmra.mrb[0].mxu0 %v179_v19  ;;  %2293 = vmatmul.mubr.bf16.vlgmr.msra.gmra.mrb[0].mxu1 %v179_v19  ;;  %v2702_v19 = vld [vmem:[#allocation13] sm:$0xff] }
 0x1b9   :  { %2097 = vmatpush1.bf16.msra.mxu0 %v6567_v17  ;;  %2302 = vmatpush1.bf16.msra.mxu1 %v6570_v18  ;;  %v6645_v17 = vld [vmem:[#allocation10 + $0x38] sm:$0xff]  }
 0x1ba   :  { %2098 = vmatprep.subr.bf16.mxu0 %v6575_v20  ;;  %2303 = vmatprep.subr.bf16.mxu1 %v6578_v21  ;;  %v6646_v18 = vld [vmem:[#allocation10 + $0xb8] sm:$0xff]   ;;  %v2706_v20 = vld [vmem:[#allocation13 + $0x20] sm:$0xff]  ;;  %v2703_v21 = vld [vmem:[#allocation13 + $0x8] sm:$0xff] }
 0x1bb   :  { %2128 = vmatprep.mubr.bf16.mxu0 %v7007_v28  ;;  %2333 = vmatprep.mubr.bf16.mxu1 %v7007_v28 }
 0x1bd   :  { %2099 = vmatpush1.bf16.msra.mxu0 %v6573_v22  ;;  %2304 = vmatpush1.bf16.msra.mxu1 %v6576_v23  ;;  %v5652_v22 = vcombine.high %v2702_v19, %v2706_v20  ;;  %v2707_v23 = vld [vmem:[#allocation13 + $0x28] sm:$0xff] }
 0x1be   :  { %2100 = vmatprep.subr.bf16.mxu0 %v6581_v24  ;;  %2305 = vmatprep.subr.bf16.mxu1 %v6584_v25  ;;  %v5651_v24 = vcombine.low %v2702_v19, %v2706_v20  ;;  %v5653_v25 = vcombine.low %v2703_v21, %v2707_v23  ;;  %v2738_v19 = vld [vmem:[#allocation13 + $0x120] sm:$0xff]  ;;  %v2735_v20 = vld [vmem:[#allocation13 + $0x108] sm:$0xff] }
 0x1c1   :  { %2101 = vmatpush1.bf16.msra.mxu0 %v6579_v26  ;;  %2306 = vmatpush1.bf16.msra.mxu1 %v6582_v27  ;;  %v5654_v26 = vcombine.high %v2703_v21, %v2707_v23  ;;  %v472_v27 = vlaneseq  ;;  %v2739_v21 = vld [vmem:[#allocation13 + $0x128] sm:$0xff] }
 0x1c2   :  { %2102 = vmatprep.subr.bf16.mxu0 %v6587_v29  ;;  %2307 = vmatprep.subr.bf16.mxu1 %v6590_v30 }
 0x1c3   :  { %v7203_v28 = vshrl.u32 %v472_v27, 7  ;;  %v2746_v27 = vld [vmem:[#allocation13 + $0x160] sm:$0xff] }
 0x1c5   :  { %2103 = vmatpush1.bf16.msra.mxu0 %v6585_v31  ;;  %2308 = vmatpush1.bf16.msra.mxu1 %v6588_v32  ;;  %v474_v29 = vsub.s32 0, %v7203_v28  ;;  %v482_v30 = vsub.s32 2, %v7203_v28  ;;  %v470_v31 = vld [vmem:[#allocation8] sm:$0xf]  ;;  %v478_v32 = vsub.s32 1, %v7203_v28 }
 0x1c6   :  { %2104 = vmatprep.subr.bf16.mxu0 %v6593_v33  ;;  %2309 = vmatprep.subr.bf16.mxu1 %v6596_v34  ;;  %v486_v33 = vsub.s32 3, %v7203_v28 }
 0x1c7   :  { %v475_v34 = vrot.slane %v470_v31, %v474_v29 }
 0x1c9   :  { %2105 = vmatpush1.bf16.msra.mxu0 %v6591_v35  ;;  %2310 = vmatpush1.bf16.msra.mxu1 %v6594_v36  ;;  %v483_v35 = vrot.slane %v470_v31, %v482_v30  ;;  %v479_v36 = vrot.slane %v470_v31, %v478_v32 }
 0x1ca   :  { %2106 = vmatprep.subr.bf16.mxu0 %v6599_v37  ;;  %2311 = vmatprep.subr.bf16.mxu1 %v6602_v38  ;;  %v487_v37 = vrot.slane %v470_v31, %v486_v33  ;;  %v2743_v31 = vld [vmem:[#allocation13 + $0x148] sm:$0xff] }
 0x1cd   :  { %2107 = vmatpush1.bf16.msra.mxu0 %v6597_v39  ;;  %2312 = vmatpush1.bf16.msra.mxu1 %v6600_v40 }
 0x1ce   :  { %2108 = vmatprep.subr.bf16.mxu0 %v6605_v41  ;;  %2313 = vmatprep.subr.bf16.mxu1 %v6608_v42 }
 0x1d1   :  { %2109 = vmatpush1.bf16.msra.mxu0 %v6603_v43  ;;  %2314 = vmatpush1.bf16.msra.mxu1 %v6606_v44 }
 0x1d2   :  { %2110 = vmatprep.subr.bf16.mxu0 %v6611_v45  ;;  %2315 = vmatprep.subr.bf16.mxu1 %v6614_v46 }
 0x1d5   :  { %2111 = vmatpush1.bf16.msra.mxu0 %v6609_v47  ;;  %2316 = vmatpush1.bf16.msra.mxu1 %v6612_v48 }
 0x1d6   :  { %5972 = vmatprep.subr.bf16.mxu0 %v6615_v50  ;;  %5994 = vmatprep.subr.bf16.mxu1 %v6616_v51 }
 0x1d8   :  { %2129 = vmatmul.mubr.bf16.vlgmr.msra.gmra.mrb[0].mxu0 %v181_v52  ;;  %2334 = vmatmul.mubr.bf16.vlgmr.msra.gmra.mrb[0].mxu1 %v181_v52  ;;  %v2710_v52 = vld [vmem:[#allocation13 + $0x40] sm:$0xff] }
 0x1d9   :  { %5973 = vmatpush3.bf16.msra.mxu0 %v6617_v53  ;;  %5995 = vmatpush3.bf16.msra.mxu1 %v6618_v54 }
 0x1da   :  { %5974 = vmatprep.subr.bf16.mxu0 %v6619_v55  ;;  %5996 = vmatprep.subr.bf16.mxu1 %v6620_v56  ;;  %v2714_v55 = vld [vmem:[#allocation13 + $0x60] sm:$0xff]  ;;  %v2711_v56 = vld [vmem:[#allocation13 + $0x48] sm:$0xff] }
 0x1dd   :  { %5975 = vmatpush3.bf16.msra.mxu0 %v6621_v57  ;;  %5997 = vmatpush3.bf16.msra.mxu1 %v6622_v58  ;;  %v2715_v57 = vld [vmem:[#allocation13 + $0x68] sm:$0xff] }
 0x1de   :  { %5976 = vmatprep.subr.bf16.mxu0 %v6623_v59  ;;  %5998 = vmatprep.subr.bf16.mxu1 %v6624_v60  ;;  %v2695_v58 = vld [vmem:[#allocation5 + $0x8] sm:$0xff] }
 0x1e1   :  { %5977 = vmatpush3.bf16.msra.mxu0 %v6625_v61  ;;  %5999 = vmatpush3.bf16.msra.mxu1 %v6626_v62 }
 0x1e2   :  { %5978 = vmatprep.subr.bf16.mxu0 %v6627_v63  ;;  %6000 = vmatprep.subr.bf16.mxu1 %v6628_v0  ;;  %v5660_v63 = vcombine.high %v2710_v52, %v2714_v55  ;;  %v5662_v0 = vcombine.high %v2711_v56, %v2715_v57 }
 0x1e5   :  { %5979 = vmatpush3.bf16.msra.mxu0 %v6629_v1  ;;  %6001 = vmatpush3.bf16.msra.mxu1 %v6630_v2  ;;  %v2718_v1 = vld [vmem:[#allocation13 + $0x80] sm:$0xff] }
 0x1e6   :  { %5980 = vmatprep.subr.bf16.mxu0 %v6631_v3  ;;  %6002 = vmatprep.subr.bf16.mxu1 %v6632_v4  ;;  %v2722_v2 = vld [vmem:[#allocation13 + $0xa0] sm:$0xff]  ;;  %v2719_v3 = vld [vmem:[#allocation13 + $0x88] sm:$0xff] }
 0x1e7   :  { %v2723_v4 = vld [vmem:[#allocation13 + $0xa8] sm:$0xff] }
 0x1e9   :  { %5981 = vmatpush3.bf16.msra.mxu0 %v6633_v5  ;;  %6003 = vmatpush3.bf16.msra.mxu1 %v6634_v6  ;;  %v7217_v5 = vpack.c.bf16 %v2695_v58, %v2695_v58  ;;  %v5659_v6 = vcombine.low %v2710_v52, %v2714_v55  ;;  %v2766_v55 = vld [vmem:[#allocation13 + $0x200] sm:$0xff]  ;;  %v2771_v58 = vld [vmem:[#allocation13 + $0x228] sm:$0xff] }
 0x1ea   :  { %5982 = vmatprep.subr.bf16.mxu0 %v6635_v7  ;;  %6004 = vmatprep.subr.bf16.mxu1 %v6636_v8  ;;  %v5661_v7 = vcombine.low %v2711_v56, %v2715_v57  ;;  %v5668_v8 = vcombine.high %v2718_v1, %v2722_v2  ;;  %v2770_v56 = vld [vmem:[#allocation13 + $0x220] sm:$0xff]  ;;  %v2767_v57 = vld [vmem:[#allocation13 + $0x208] sm:$0xff] }
 0x1ed   :  { %5983 = vmatpush3.bf16.msra.mxu0 %v6637_v9  ;;  %6005 = vmatpush3.bf16.msra.mxu1 %v6638_v10  ;;  %v5670_v9 = vcombine.high %v2719_v3, %v2723_v4  ;;  %v2726_v10 = vld [vmem:[#allocation13 + $0xc0] sm:$0xff] }
 0x1ee   :  { %5984 = vmatprep.subr.bf16.mxu0 %v6639_v11  ;;  %6006 = vmatprep.subr.bf16.mxu1 %v6640_v12  ;;  %v2730_v11 = vld [vmem:[#allocation13 + $0xe0] sm:$0xff]  ;;  %v2727_v12 = vld [vmem:[#allocation13 + $0xc8] sm:$0xff] }
 0x1f1   :  { %5985 = vmatpush3.bf16.msra.mxu0 %v6641_v13  ;;  %6007 = vmatpush3.bf16.msra.mxu1 %v6642_v14  ;;  %v2731_v13 = vld [vmem:[#allocation13 + $0xe8] sm:$0xff]  ;;  %v5667_v14 = vcombine.low %v2718_v1, %v2722_v2 }
 0x1f2   :  { %5986 = vmatprep.subr.bf16.mxu0 %v6643_v15  ;;  %6008 = vmatprep.subr.bf16.mxu1 %v6644_v16  ;;  %v5669_v15 = vcombine.low %v2719_v3, %v2723_v4  ;;  %v5676_v16 = vcombine.high %v2726_v10, %v2730_v11  ;;  %v5677_v23 = vcombine.low %v2727_v12, %v2731_v13  ;;  %v2775_v1 = vld [vmem:[#allocation13 + $0x248] sm:$0xff] }
 0x1f3   :  { %v2779_v2 = vld [vmem:[#allocation13 + $0x268] sm:$0xff]  ;;  %v5715_v3 = vcombine.low %v2766_v55, %v2770_v56  ;;  %v5717_v4 = vcombine.low %v2767_v57, %v2771_v58 }
 0x1f5   :  { %5987 = vmatpush3.bf16.msra.mxu0 %v6645_v17  ;;  %6009 = vmatpush3.bf16.msra.mxu1 %v6646_v18  ;;  %v5678_v17 = vcombine.high %v2727_v12, %v2731_v13  ;;  %v2734_v18 = vld [vmem:[#allocation13 + $0x100] sm:$0xff]  ;;  %v5725_v13 = vcombine.low %v2775_v1, %v2779_v2 }
 0x1f6   :  { %4280 = vmatprep.subr.bf16.mxu0 %v5652_v22  ;;  %4362 = vmatprep.subr.bf16.mxu1 %v5654_v26  ;;  %v5675_v22 = vcombine.low %v2726_v10, %v2730_v11  ;;  %v2742_v26 = vld [vmem:[#allocation13 + $0x140] sm:$0xff]  ;;  %v2783_v10 = vld [vmem:[#allocation13 + $0x288] sm:$0xff] }
 0x1f7   :  { %v2787_v11 = vld [vmem:[#allocation13 + $0x2a8] sm:$0xff] }
 0x2ab   :  { %v2130_v38 = vpop.f32.mrb[0].mxu0  ;;  %v2335_v39 = vpop.f32.mrb[0].mxu1 }
 0x2ac   :  { %v6104_v40 = vadd.f32 %v2130_v38, %v475_v34  ;;  %v6106_v41 = vadd.f32 %v2335_v39, %v483_v35  ;;  %v2132_v42 = vpop.f32.mrb[1].mxu0  ;;  %v2337_v43 = vpop.f32.mrb[1].mxu1  ;;  %v2747_v34 = vld [vmem:[#allocation13 + $0x168] sm:$0xff]  ;;  %v5683_v35 = vcombine.low %v2734_v18, %v2738_v19  ;;  %v2750_v39 = vld [vmem:[#allocation13 + $0x180] sm:$0xff] }
 0x2ad   :  { %v6105_v44 = vadd.f32 %v2132_v42, %v479_v36  ;;  %v6107_v45 = vadd.f32 %v2337_v43, %v487_v37  ;;  %v2134_v46 = vpop.f32.mrb[2].mxu0  ;;  %v2339_v47 = vpop.f32.mrb[2].mxu1  ;;  %v5685_v36 = vcombine.low %v2735_v20, %v2739_v21  ;;  %v5692_v37 = vcombine.high %v2742_v26, %v2746_v27  ;;  %v2755_v42 = vld [vmem:[#allocation13 + $0x1a8] sm:$0xff] }
 0x2ae   :  { %v2342_v48 = vmax.f32 %v6104_v40, 0.0  ;;  %v2344_v49 = vmax.f32 %v6106_v41, 0.0  ;;  %v2135_v50 = vpop.f32.mrb[3].mxu0  ;;  %v2340_v51 = vpop.f32.mrb[3].mxu1  ;;  %v5694_v38 = vcombine.high %v2743_v31, %v2747_v34  ;;  %v2754_v40 = vld [vmem:[#allocation13 + $0x1a0] sm:$0xff]  ;;  %v2751_v41 = vld [vmem:[#allocation13 + $0x188] sm:$0xff]  ;;  %v5691_v43 = vcombine.low %v2742_v26, %v2746_v27 }
 0x2af   :  { %v2343_v53 = vmax.f32 %v6105_v44, 0.0  ;;  %v2345_v54 = vmax.f32 %v6107_v45, 0.0  ;;  %v5693_v44 = vcombine.low %v2743_v31, %v2747_v34  ;;  %v5700_v45 = vcombine.high %v2750_v39, %v2754_v40  ;;  %v2758_v47 = vld [vmem:[#allocation13 + $0x1c0] sm:$0xff]  ;;  %v2763_v50 = vld [vmem:[#allocation13 + $0x1e8] sm:$0xff] }
 0x2b0   :  { %v2346_v61 = vpack.c.bf16 %v2342_v48, %v2342_v48  ;;  %v2348_v62 = vpack.c.bf16 %v2344_v49, %v2344_v49  ;;  %v5702_v46 = vcombine.high %v2751_v41, %v2755_v42  ;;  %v2762_v48 = vld [vmem:[#allocation13 + $0x1e0] sm:$0xff]  ;;  %v2759_v49 = vld [vmem:[#allocation13 + $0x1c8] sm:$0xff]  ;;  %v5699_v51 = vcombine.low %v2750_v39, %v2754_v40 }
 0x2b1   :  { %v2347_v59 = vpack.c.bf16 %v2343_v53, %v2343_v53  ;;  %v2349_v60 = vpack.c.bf16 %v2345_v54, %v2345_v54  ;;  %v5701_v52 = vcombine.low %v2751_v41, %v2755_v42  ;;  %v5708_v53 = vcombine.high %v2758_v47, %v2762_v48  ;;  %v2799_v26 = vld [vmem:[#allocation13 + $0x308] sm:$0xff] }
 0x2b2   :  { %v5710_v54 = vcombine.high %v2759_v49, %v2763_v50  ;;  %v2803_v27 = vld [vmem:[#allocation13 + $0x328] sm:$0xff] }
 0x2b3   :  { %2645 = vmatprep.mubr.bf16.mxu0 %v2347_v59  ;;  %2685 = vmatprep.mubr.bf16.mxu1 %v2349_v60  ;;  %v5707_v59 = vcombine.low %v2758_v47, %v2762_v48  ;;  %v5709_v60 = vcombine.low %v2759_v49, %v2763_v50  ;;  %v2807_v39 = vld [vmem:[#allocation13 + $0x348] sm:$0xff]  ;;  %v5749_v42 = vcombine.low %v2799_v26, %v2803_v27 }
 0x2b4   :  { %2646 = vmatmul.mubr.bf16.vlgmr.msra.gmra.mrb[4].mxu0 %v2346_v61  ;;  %2686 = vmatmul.mubr.bf16.vlgmr.msra.gmra.mrb[4].mxu1 %v2348_v62  ;;  %v5716_v61 = vcombine.high %v2766_v55, %v2770_v56  ;;  %v5718_v62 = vcombine.high %v2767_v57, %v2771_v58  ;;  %v2811_v40 = vld [vmem:[#allocation13 + $0x368] sm:$0xff] }
 0x2b5   :  { %4281 = vmatpush1.bf16.msra.mxu0 %v5651_v24  ;;  %4363 = vmatpush1.bf16.msra.mxu1 %v5653_v25  ;;  %v5684_v24 = vcombine.high %v2734_v18, %v2738_v19  ;;  %v5686_v25 = vcombine.high %v2735_v20, %v2739_v21  ;;  %v2791_v18 = vld [vmem:[#allocation13 + $0x2c8] sm:$0xff]  ;;  %v5733_v21 = vcombine.low %v2783_v10, %v2787_v11 }
 0x2b6   :  { %4282 = vmatprep.subr.bf16.mxu0 %v5660_v63  ;;  %4364 = vmatprep.subr.bf16.mxu1 %v5662_v0  ;;  %v2774_v63 = vld [vmem:[#allocation13 + $0x240] sm:$0xff]  ;;  %v2795_v19 = vld [vmem:[#allocation13 + $0x2e8] sm:$0xff]  ;;  %v5757_v50 = vcombine.low %v2807_v39, %v2811_v40 }
 0x2b7   :  { %4312 = vmatprep.mubr.bf16.mxu0 %v7217_v5  ;;  %4394 = vmatprep.mubr.bf16.mxu1 %v7217_v5  ;;  %v2778_v0 = vld [vmem:[#allocation13 + $0x260] sm:$0xff]  ;;  %v5741_v34 = vcombine.low %v2791_v18, %v2795_v19  ;;  %v2815_v47 = vld [vmem:[#allocation13 + $0x388] sm:$0xff] }
 0x2b8   :  { %v5723_v12 = vcombine.low %v2774_v63, %v2778_v0  ;;  %v2819_v48 = vld [vmem:[#allocation13 + $0x3a8] sm:$0xff] }
 0x2b9   :  { %4283 = vmatpush1.bf16.msra.mxu0 %v5659_v6  ;;  %4365 = vmatpush1.bf16.msra.mxu1 %v5661_v7  ;;  %v5724_v6 = vcombine.high %v2774_v63, %v2778_v0  ;;  %v5726_v7 = vcombine.high %v2775_v1, %v2779_v2  ;;  %v2823_v55 = vld [vmem:[#allocation13 + $0x3c8] sm:$0xff]  ;;  %v5765_v58 = vcombine.low %v2815_v47, %v2819_v48 }
 0x2ba   :  { %4284 = vmatprep.subr.bf16.mxu0 %v5668_v8  ;;  %4366 = vmatprep.subr.bf16.mxu1 %v5670_v9  ;;  %v2782_v8 = vld [vmem:[#allocation13 + $0x280] sm:$0xff]  ;;  %v2827_v56 = vld [vmem:[#allocation13 + $0x3e8] sm:$0xff] }
 0x2bb   :  { %v2786_v9 = vld [vmem:[#allocation13 + $0x2a0] sm:$0xff]  ;;  %v2831_v63 = vld [vmem:[#allocation13 + $0x408] sm:$0xff]  ;;  %v5773_v2 = vcombine.low %v2823_v55, %v2827_v56 }
 0x2bc   :  { %v5731_v20 = vcombine.low %v2782_v8, %v2786_v9  ;;  %v2835_v0 = vld [vmem:[#allocation13 + $0x428] sm:$0xff] }
 0x2bd   :  { %4285 = vmatpush1.bf16.msra.mxu0 %v5667_v14  ;;  %4367 = vmatpush1.bf16.msra.mxu1 %v5669_v15  ;;  %v5732_v14 = vcombine.high %v2782_v8, %v2786_v9  ;;  %v5734_v15 = vcombine.high %v2783_v10, %v2787_v11  ;;  %v2842_v8 = vld [vmem:[#allocation13 + $0x460] sm:$0xff]  ;;  %v2839_v9 = vld [vmem:[#allocation13 + $0x448] sm:$0xff] }
 0x2be   :  { %4286 = vmatprep.subr.bf16.mxu0 %v5676_v16  ;;  %4368 = vmatprep.subr.bf16.mxu1 %v5678_v17  ;;  %v2790_v16 = vld [vmem:[#allocation13 + $0x2c0] sm:$0xff]  ;;  %v2843_v10 = vld [vmem:[#allocation13 + $0x468] sm:$0xff] }
 0x2bf   :  { %v2794_v17 = vld [vmem:[#allocation13 + $0x2e0] sm:$0xff] }
 0x2c0   :  { %v5739_v31 = vcombine.low %v2790_v16, %v2794_v17 }
 0x2c1   :  { %4287 = vmatpush1.bf16.msra.mxu0 %v5675_v22  ;;  %4369 = vmatpush1.bf16.msra.mxu1 %v5677_v23  ;;  %v5740_v22 = vcombine.high %v2790_v16, %v2794_v17  ;;  %v5742_v23 = vcombine.high %v2791_v18, %v2795_v19  ;;  %v5790_v16 = vcombine.high %v2839_v9, %v2843_v10  ;;  %v2846_v17 = vld [vmem:[#allocation13 + $0x480] sm:$0xff]  ;;  %v2847_v19 = vld [vmem:[#allocation13 + $0x488] sm:$0xff] }
 0x2c2   :  { %4288 = vmatprep.subr.bf16.mxu0 %v5684_v24  ;;  %4370 = vmatprep.subr.bf16.mxu1 %v5686_v25  ;;  %v2798_v24 = vld [vmem:[#allocation13 + $0x300] sm:$0xff] }
 0x2c3   :  { %v2802_v25 = vld [vmem:[#allocation13 + $0x320] sm:$0xff] }
 0x2c4   :  { %v5747_v41 = vcombine.low %v2798_v24, %v2802_v25  ;;  %v2850_v18 = vld [vmem:[#allocation13 + $0x4a0] sm:$0xff] }
 0x2c5   :  { %4289 = vmatpush1.bf16.msra.mxu0 %v5683_v35  ;;  %4371 = vmatpush1.bf16.msra.mxu1 %v5685_v36  ;;  %v5748_v35 = vcombine.high %v2798_v24, %v2802_v25  ;;  %v5750_v36 = vcombine.high %v2799_v26, %v2803_v27  ;;  %v5796_v24 = vcombine.high %v2846_v17, %v2850_v18  ;;  %v2854_v26 = vld [vmem:[#allocation13 + $0x4c0] sm:$0xff] }
 0x2c6   :  { %4290 = vmatprep.subr.bf16.mxu0 %v5692_v37  ;;  %4372 = vmatprep.subr.bf16.mxu1 %v5694_v38  ;;  %v2806_v37 = vld [vmem:[#allocation13 + $0x340] sm:$0xff] }
 0x2c7   :  { %v2810_v38 = vld [vmem:[#allocation13 + $0x360] sm:$0xff] }
 0x2c8   :  { %v5755_v49 = vcombine.low %v2806_v37, %v2810_v38  ;;  %v2858_v27 = vld [vmem:[#allocation13 + $0x4e0] sm:$0xff] }
 0x2c9   :  { %4291 = vmatpush1.bf16.msra.mxu0 %v5691_v43  ;;  %4373 = vmatpush1.bf16.msra.mxu1 %v5693_v44  ;;  %v5756_v43 = vcombine.high %v2806_v37, %v2810_v38  ;;  %v5758_v44 = vcombine.high %v2807_v39, %v2811_v40  ;;  %v5804_v37 = vcombine.high %v2854_v26, %v2858_v27  ;;  %v2862_v39 = vld [vmem:[#allocation13 + $0x500] sm:$0xff] }
 0x2ca   :  { %4292 = vmatprep.subr.bf16.mxu0 %v5700_v45  ;;  %4374 = vmatprep.subr.bf16.mxu1 %v5702_v46  ;;  %v2814_v45 = vld [vmem:[#allocation13 + $0x380] sm:$0xff] }
 0x2cb   :  { %v2818_v46 = vld [vmem:[#allocation13 + $0x3a0] sm:$0xff] }
 0x2cc   :  { %v5763_v57 = vcombine.low %v2814_v45, %v2818_v46  ;;  %v2866_v40 = vld [vmem:[#allocation13 + $0x520] sm:$0xff] }
 0x2cd   :  { %4293 = vmatpush1.bf16.msra.mxu0 %v5699_v51  ;;  %4375 = vmatpush1.bf16.msra.mxu1 %v5701_v52  ;;  %v5764_v51 = vcombine.high %v2814_v45, %v2818_v46  ;;  %v5766_v52 = vcombine.high %v2815_v47, %v2819_v48  ;;  %v5812_v45 = vcombine.high %v2862_v39, %v2866_v40  ;;  %v2870_v47 = vld [vmem:[#allocation13 + $0x540] sm:$0xff] }
 0x2ce   :  { %4294 = vmatprep.subr.bf16.mxu0 %v5708_v53  ;;  %4376 = vmatprep.subr.bf16.mxu1 %v5710_v54  ;;  %v2822_v53 = vld [vmem:[#allocation13 + $0x3c0] sm:$0xff] }
 0x2cf   :  { %v2826_v54 = vld [vmem:[#allocation13 + $0x3e0] sm:$0xff] }
 0x2d0   :  { %v5771_v1 = vcombine.low %v2822_v53, %v2826_v54  ;;  %v2874_v48 = vld [vmem:[#allocation13 + $0x560] sm:$0xff] }
 0x2d1   :  { %4295 = vmatpush1.bf16.msra.mxu0 %v5707_v59  ;;  %4377 = vmatpush1.bf16.msra.mxu1 %v5709_v60  ;;  %v5772_v59 = vcombine.high %v2822_v53, %v2826_v54  ;;  %v5774_v60 = vcombine.high %v2823_v55, %v2827_v56  ;;  %v5820_v53 = vcombine.high %v2870_v47, %v2874_v48  ;;  %v2878_v55 = vld [vmem:[#allocation13 + $0x580] sm:$0xff] }
 0x2d2   :  { %4296 = vmatprep.subr.bf16.mxu0 %v5716_v61  ;;  %4378 = vmatprep.subr.bf16.mxu1 %v5718_v62  ;;  %v2830_v61 = vld [vmem:[#allocation13 + $0x400] sm:$0xff] }
 0x2d3   :  { %v2834_v62 = vld [vmem:[#allocation13 + $0x420] sm:$0xff] }
 0x2d4   :  { %v2882_v56 = vld [vmem:[#allocation13 + $0x5a0] sm:$0xff] }
 0x2d5   :  { %4297 = vmatpush1.bf16.msra.mxu0 %v5715_v3  ;;  %4379 = vmatpush1.bf16.msra.mxu1 %v5717_v4  ;;  %v2694_v3 = vld [vmem:[#allocation5] sm:$0xff]  ;;  %v5780_v4 = vcombine.high %v2830_v61, %v2834_v62 }
 0x2d6   :  { %4298 = vmatprep.subr.bf16.mxu0 %v5724_v6  ;;  %4380 = vmatprep.subr.bf16.mxu1 %v5726_v7  ;;  %v5782_v6 = vcombine.high %v2831_v63, %v2835_v0  ;;  %v2838_v7 = vld [vmem:[#allocation13 + $0x440] sm:$0xff]  ;;  %v7221_v11 = vpack.c.bf16 %v2694_v3, %v2694_v3  ;;  %v5827_v3 = vcombine.low %v2878_v55, %v2882_v56 }
 0x2d9   :  { %4299 = vmatpush1.bf16.msra.mxu0 %v5723_v12  ;;  %4381 = vmatpush1.bf16.msra.mxu1 %v5725_v13  ;;  %v2697_v12 = vld [vmem:[#allocation5 + $0x18] sm:$0xff]  ;;  %v5779_v13 = vcombine.low %v2830_v61, %v2834_v62  ;;  %v5828_v61 = vcombine.high %v2878_v55, %v2882_v56  ;;  %v2934_v55 = vld [vmem:[#allocation13 + $0x740] sm:$0xff] }
 0x2da   :  { %4300 = vmatprep.subr.bf16.mxu0 %v5732_v14  ;;  %4382 = vmatprep.subr.bf16.mxu1 %v5734_v15  ;;  %v5781_v14 = vcombine.low %v2831_v63, %v2835_v0  ;;  %v5788_v15 = vcombine.high %v2838_v7, %v2842_v8  ;;  %v2886_v63 = vld [vmem:[#allocation13 + $0x5c0] sm:$0xff] }
 0x2db   :  { %v2890_v0 = vld [vmem:[#allocation13 + $0x5e0] sm:$0xff] }
 0x2dc   :  { %v2938_v56 = vld [vmem:[#allocation13 + $0x760] sm:$0xff] }
 0x2dd   :  { %4301 = vmatpush1.bf16.msra.mxu0 %v5731_v20  ;;  %4383 = vmatpush1.bf16.msra.mxu1 %v5733_v21  ;;  %v2851_v20 = vld [vmem:[#allocation13 + $0x4a8] sm:$0xff]  ;;  %v7223_v21 = vpack.c.bf16 %v2697_v12, %v2697_v12 }
 0x2de   :  { %4302 = vmatprep.subr.bf16.mxu0 %v5740_v22  ;;  %4384 = vmatprep.subr.bf16.mxu1 %v5742_v23  ;;  %v5787_v22 = vcombine.low %v2838_v7, %v2842_v8  ;;  %v5789_v23 = vcombine.low %v2839_v9, %v2843_v10  ;;  %v5798_v25 = vcombine.high %v2847_v19, %v2851_v20  ;;  %v2894_v8 = vld [vmem:[#allocation13 + $0x600] sm:$0xff]  ;;  %v2895_v10 = vld [vmem:[#allocation13 + $0x608] sm:$0xff] }
 0x2df   :  { %v2898_v9 = vld [vmem:[#allocation13 + $0x620] sm:$0xff]  ;;  %v2899_v12 = vld [vmem:[#allocation13 + $0x628] sm:$0xff] }
 0x2e1   :  { %4303 = vmatpush1.bf16.msra.mxu0 %v5739_v31  ;;  %4385 = vmatpush1.bf16.msra.mxu1 %v5741_v34  ;;  %v2855_v31 = vld [vmem:[#allocation13 + $0x4c8] sm:$0xff] }
 0x2e2   :  { %4304 = vmatprep.subr.bf16.mxu0 %v5748_v35  ;;  %4386 = vmatprep.subr.bf16.mxu1 %v5750_v36  ;;  %v2859_v34 = vld [vmem:[#allocation13 + $0x4e8] sm:$0xff]  ;;  %v5795_v35 = vcombine.low %v2846_v17, %v2850_v18  ;;  %v5797_v36 = vcombine.low %v2847_v19, %v2851_v20  ;;  %v2902_v17 = vld [vmem:[#allocation13 + $0x640] sm:$0xff] }
 0x2e3   :  { %v5806_v38 = vcombine.high %v2855_v31, %v2859_v34  ;;  %v2906_v18 = vld [vmem:[#allocation13 + $0x660] sm:$0xff]  ;;  %v2903_v19 = vld [vmem:[#allocation13 + $0x648] sm:$0xff] }
 0x2e4   :  { %v2907_v20 = vld [vmem:[#allocation13 + $0x668] sm:$0xff] }
 0x2e5   :  { %4305 = vmatpush1.bf16.msra.mxu0 %v5747_v41  ;;  %4387 = vmatpush1.bf16.msra.mxu1 %v5749_v42  ;;  %v2863_v41 = vld [vmem:[#allocation13 + $0x508] sm:$0xff] }
 0x2e6   :  { %4306 = vmatprep.subr.bf16.mxu0 %v5756_v43  ;;  %4388 = vmatprep.subr.bf16.mxu1 %v5758_v44  ;;  %v2867_v42 = vld [vmem:[#allocation13 + $0x528] sm:$0xff]  ;;  %v5803_v43 = vcombine.low %v2854_v26, %v2858_v27  ;;  %v5805_v44 = vcombine.low %v2855_v31, %v2859_v34  ;;  %v2910_v26 = vld [vmem:[#allocation13 + $0x680] sm:$0xff] }
 0x2e7   :  { %v5814_v46 = vcombine.high %v2863_v41, %v2867_v42  ;;  %v2914_v27 = vld [vmem:[#allocation13 + $0x6a0] sm:$0xff]  ;;  %v2911_v31 = vld [vmem:[#allocation13 + $0x688] sm:$0xff] }
 0x2e8   :  { %v2915_v34 = vld [vmem:[#allocation13 + $0x6a8] sm:$0xff] }
 0x2e9   :  { %4307 = vmatpush1.bf16.msra.mxu0 %v5755_v49  ;;  %4389 = vmatpush1.bf16.msra.mxu1 %v5757_v50  ;;  %v2871_v49 = vld [vmem:[#allocation13 + $0x548] sm:$0xff] }
 0x2ea   :  { %4308 = vmatprep.subr.bf16.mxu0 %v5764_v51  ;;  %4390 = vmatprep.subr.bf16.mxu1 %v5766_v52  ;;  %v2875_v50 = vld [vmem:[#allocation13 + $0x568] sm:$0xff]  ;;  %v5811_v51 = vcombine.low %v2862_v39, %v2866_v40  ;;  %v5813_v52 = vcombine.low %v2863_v41, %v2867_v42  ;;  %v2918_v39 = vld [vmem:[#allocation13 + $0x6c0] sm:$0xff] }
 0x2eb   :  { %v5822_v54 = vcombine.high %v2871_v49, %v2875_v50  ;;  %v2922_v40 = vld [vmem:[#allocation13 + $0x6e0] sm:$0xff]  ;;  %v2919_v41 = vld [vmem:[#allocation13 + $0x6c8] sm:$0xff] }
 0x2ec   :  { %v2923_v42 = vld [vmem:[#allocation13 + $0x6e8] sm:$0xff] }
 0x2ed   :  { %4309 = vmatpush1.bf16.msra.mxu0 %v5763_v57  ;;  %4391 = vmatpush1.bf16.msra.mxu1 %v5765_v58  ;;  %v2879_v57 = vld [vmem:[#allocation13 + $0x588] sm:$0xff] }
 0x2ee   :  { %4310 = vmatprep.subr.bf16.mxu0 %v5772_v59  ;;  %4392 = vmatprep.subr.bf16.mxu1 %v5774_v60  ;;  %v2883_v58 = vld [vmem:[#allocation13 + $0x5a8] sm:$0xff]  ;;  %v5819_v59 = vcombine.low %v2870_v47, %v2874_v48  ;;  %v5821_v60 = vcombine.low %v2871_v49, %v2875_v50  ;;  %v2926_v47 = vld [vmem:[#allocation13 + $0x700] sm:$0xff] }
 0x2ef   :  { %v5830_v62 = vcombine.high %v2879_v57, %v2883_v58  ;;  %v2930_v48 = vld [vmem:[#allocation13 + $0x720] sm:$0xff]  ;;  %v2927_v49 = vld [vmem:[#allocation13 + $0x708] sm:$0xff] }
 0x2f0   :  { %v2931_v50 = vld [vmem:[#allocation13 + $0x728] sm:$0xff] }
 0x2f1   :  { %4311 = vmatpush1.bf16.msra.mxu0 %v5771_v1  ;;  %4393 = vmatpush1.bf16.msra.mxu1 %v5773_v2  ;;  %v2887_v1 = vld [vmem:[#allocation13 + $0x5c8] sm:$0xff] }
 0x2f2   :  { %4321 = vmatprep.subr.bf16.mxu0 %v5780_v4  ;;  %4403 = vmatprep.subr.bf16.mxu1 %v5782_v6  ;;  %v2891_v2 = vld [vmem:[#allocation13 + $0x5e8] sm:$0xff]  ;;  %v5829_v4 = vcombine.low %v2879_v57, %v2883_v58  ;;  %v5836_v6 = vcombine.high %v2886_v63, %v2890_v0 }
 0x2f3   :  { %v5838_v7 = vcombine.high %v2887_v1, %v2891_v2  ;;  %v2935_v57 = vld [vmem:[#allocation13 + $0x748] sm:$0xff] }
 0x2f4   :  { %4313 = vmatmul.mubr.bf16.vlgmr.msra.gmra.mrb[8].mxu0 %v7221_v11  ;;  %4395 = vmatmul.mubr.bf16.vlgmr.msra.gmra.mrb[8].mxu1 %v7221_v11  ;;  %v2939_v58 = vld [vmem:[#allocation13 + $0x768] sm:$0xff] }
 0x2f5   :  { %4322 = vmatpush1.bf16.msra.mxu0 %v5779_v13  ;;  %4404 = vmatpush1.bf16.msra.mxu1 %v5781_v14  ;;  %v5835_v13 = vcombine.low %v2886_v63, %v2890_v0  ;;  %v5837_v14 = vcombine.low %v2887_v1, %v2891_v2  ;;  %v2942_v63 = vld [vmem:[#allocation13 + $0x780] sm:$0xff]  ;;  %v2943_v1 = vld [vmem:[#allocation13 + $0x788] sm:$0xff] }
 0x2f6   :  { %4323 = vmatprep.subr.bf16.mxu0 %v5788_v15  ;;  %4405 = vmatprep.subr.bf16.mxu1 %v5790_v16  ;;  %v5844_v15 = vcombine.high %v2894_v8, %v2898_v9  ;;  %v5846_v16 = vcombine.high %v2895_v10, %v2899_v12  ;;  %v2946_v0 = vld [vmem:[#allocation13 + $0x7a0] sm:$0xff]  ;;  %v2947_v2 = vld [vmem:[#allocation13 + $0x7a8] sm:$0xff] }
 0x2f7   :  { %4353 = vmatprep.mubr.bf16.mxu0 %v7223_v21  ;;  %4435 = vmatprep.mubr.bf16.mxu1 %v7223_v21 }
 0x2f9   :  { %4324 = vmatpush1.bf16.msra.mxu0 %v5787_v22  ;;  %4406 = vmatpush1.bf16.msra.mxu1 %v5789_v23  ;;  %v5843_v22 = vcombine.low %v2894_v8, %v2898_v9  ;;  %v5845_v23 = vcombine.low %v2895_v10, %v2899_v12  ;;  %v2950_v8 = vld [vmem:[#allocation13 + $0x7c0] sm:$0xff]  ;;  %v2951_v10 = vld [vmem:[#allocation13 + $0x7c8] sm:$0xff] }
 0x2fa   :  { %4325 = vmatprep.subr.bf16.mxu0 %v5796_v24  ;;  %4407 = vmatprep.subr.bf16.mxu1 %v5798_v25  ;;  %v5852_v24 = vcombine.high %v2902_v17, %v2906_v18  ;;  %v5854_v25 = vcombine.high %v2903_v19, %v2907_v20  ;;  %v2954_v9 = vld [vmem:[#allocation13 + $0x7e0] sm:$0xff]  ;;  %v2955_v12 = vld [vmem:[#allocation13 + $0x7e8] sm:$0xff] }
 0x2fd   :  { %4326 = vmatpush1.bf16.msra.mxu0 %v5795_v35  ;;  %4408 = vmatpush1.bf16.msra.mxu1 %v5797_v36  ;;  %v5851_v35 = vcombine.low %v2902_v17, %v2906_v18  ;;  %v5853_v36 = vcombine.low %v2903_v19, %v2907_v20  ;;  %v2704_v17 = vld [vmem:[#allocation13 + $0x10] sm:$0xff]  ;;  %v2705_v19 = vld [vmem:[#allocation13 + $0x18] sm:$0xff] }
 0x2fe   :  { %4327 = vmatprep.subr.bf16.mxu0 %v5804_v37  ;;  %4409 = vmatprep.subr.bf16.mxu1 %v5806_v38  ;;  %v5860_v37 = vcombine.high %v2910_v26, %v2914_v27  ;;  %v5862_v38 = vcombine.high %v2911_v31, %v2915_v34  ;;  %v2708_v18 = vld [vmem:[#allocation13 + $0x30] sm:$0xff]  ;;  %v2709_v20 = vld [vmem:[#allocation13 + $0x38] sm:$0xff] }
 0x301   :  { %4328 = vmatpush1.bf16.msra.mxu0 %v5803_v43  ;;  %4410 = vmatpush1.bf16.msra.mxu1 %v5805_v44  ;;  %v5859_v43 = vcombine.low %v2910_v26, %v2914_v27  ;;  %v5861_v44 = vcombine.low %v2911_v31, %v2915_v34  ;;  %v5658_v26 = vcombine.high %v2705_v19, %v2709_v20  ;;  %v2712_v27 = vld [vmem:[#allocation13 + $0x50] sm:$0xff]  ;;  %v2713_v34 = vld [vmem:[#allocation13 + $0x58] sm:$0xff] }
 0x302   :  { %4329 = vmatprep.subr.bf16.mxu0 %v5812_v45  ;;  %4411 = vmatprep.subr.bf16.mxu1 %v5814_v46  ;;  %v5868_v45 = vcombine.high %v2918_v39, %v2922_v40  ;;  %v5870_v46 = vcombine.high %v2919_v41, %v2923_v42  ;;  %v2716_v31 = vld [vmem:[#allocation13 + $0x70] sm:$0xff] }
 0x305   :  { %4330 = vmatpush1.bf16.msra.mxu0 %v5811_v51  ;;  %4412 = vmatpush1.bf16.msra.mxu1 %v5813_v52  ;;  %v5867_v51 = vcombine.low %v2918_v39, %v2922_v40  ;;  %v5869_v52 = vcombine.low %v2919_v41, %v2923_v42  ;;  %v5664_v39 = vcombine.high %v2712_v27, %v2716_v31  ;;  %v2720_v41 = vld [vmem:[#allocation13 + $0x90] sm:$0xff] }
 0x306   :  { %4331 = vmatprep.subr.bf16.mxu0 %v5820_v53  ;;  %4413 = vmatprep.subr.bf16.mxu1 %v5822_v54  ;;  %v5876_v53 = vcombine.high %v2926_v47, %v2930_v48  ;;  %v5878_v54 = vcombine.high %v2927_v49, %v2931_v50  ;;  %v2724_v42 = vld [vmem:[#allocation13 + $0xb0] sm:$0xff] }
 0x309   :  { %4332 = vmatpush1.bf16.msra.mxu0 %v5819_v59  ;;  %4414 = vmatpush1.bf16.msra.mxu1 %v5821_v60  ;;  %v5875_v59 = vcombine.low %v2926_v47, %v2930_v48  ;;  %v5877_v60 = vcombine.low %v2927_v49, %v2931_v50  ;;  %v5672_v47 = vcombine.high %v2720_v41, %v2724_v42  ;;  %v2728_v49 = vld [vmem:[#allocation13 + $0xd0] sm:$0xff] }
 0x30a   :  { %4333 = vmatprep.subr.bf16.mxu0 %v5828_v61  ;;  %4415 = vmatprep.subr.bf16.mxu1 %v5830_v62  ;;  %v5884_v61 = vcombine.high %v2934_v55, %v2938_v56  ;;  %v5886_v62 = vcombine.high %v2935_v57, %v2939_v58  ;;  %v2732_v50 = vld [vmem:[#allocation13 + $0xf0] sm:$0xff] }
 0x30d   :  { %4334 = vmatpush1.bf16.msra.mxu0 %v5827_v3  ;;  %4416 = vmatpush1.bf16.msra.mxu1 %v5829_v4  ;;  %v5883_v3 = vcombine.low %v2934_v55, %v2938_v56  ;;  %v5885_v4 = vcombine.low %v2935_v57, %v2939_v58  ;;  %v5680_v55 = vcombine.high %v2728_v49, %v2732_v50  ;;  %v2736_v57 = vld [vmem:[#allocation13 + $0x110] sm:$0xff] }
 0x30e   :  { %4335 = vmatprep.subr.bf16.mxu0 %v5836_v6  ;;  %4417 = vmatprep.subr.bf16.mxu1 %v5838_v7  ;;  %v5892_v6 = vcombine.high %v2942_v63, %v2946_v0  ;;  %v5894_v7 = vcombine.high %v2943_v1, %v2947_v2  ;;  %v2740_v58 = vld [vmem:[#allocation13 + $0x130] sm:$0xff] }
 0x311   :  { %4336 = vmatpush1.bf16.msra.mxu0 %v5835_v13  ;;  %4418 = vmatpush1.bf16.msra.mxu1 %v5837_v14  ;;  %v5891_v13 = vcombine.low %v2942_v63, %v2946_v0  ;;  %v5893_v14 = vcombine.low %v2943_v1, %v2947_v2  ;;  %v5688_v63 = vcombine.high %v2736_v57, %v2740_v58  ;;  %v2744_v0 = vld [vmem:[#allocation13 + $0x150] sm:$0xff]  ;;  %v2745_v2 = vld [vmem:[#allocation13 + $0x158] sm:$0xff] }
 0x312   :  { %4337 = vmatprep.subr.bf16.mxu0 %v5844_v15  ;;  %4419 = vmatprep.subr.bf16.mxu1 %v5846_v16  ;;  %v5900_v15 = vcombine.high %v2950_v8, %v2954_v9  ;;  %v5902_v16 = vcombine.high %v2951_v10, %v2955_v12  ;;  %v2748_v1 = vld [vmem:[#allocation13 + $0x170] sm:$0xff] }
 0x315   :  { %4338 = vmatpush1.bf16.msra.mxu0 %v5843_v22  ;;  %4420 = vmatpush1.bf16.msra.mxu1 %v5845_v23  ;;  %v5899_v22 = vcombine.low %v2950_v8, %v2954_v9  ;;  %v5901_v23 = vcombine.low %v2951_v10, %v2955_v12  ;;  %v2752_v9 = vld [vmem:[#allocation13 + $0x190] sm:$0xff]  ;;  %v2753_v12 = vld [vmem:[#allocation13 + $0x198] sm:$0xff] }
 0x316   :  { %4339 = vmatprep.subr.bf16.mxu0 %v5852_v24  ;;  %4421 = vmatprep.subr.bf16.mxu1 %v5854_v25  ;;  %v2696_v24 = vld [vmem:[#allocation5 + $0x10] sm:$0xff]  ;;  %v5656_v25 = vcombine.high %v2704_v17, %v2708_v18 }
 0x317   :  { %v2756_v10 = vld [vmem:[#allocation13 + $0x1b0] sm:$0xff] }
 0x319   :  { %4340 = vmatpush1.bf16.msra.mxu0 %v5851_v35  ;;  %4422 = vmatpush1.bf16.msra.mxu1 %v5853_v36  ;;  %v2717_v35 = vld [vmem:[#allocation13 + $0x78] sm:$0xff]  ;;  %v7229_v36 = vpack.c.bf16 %v2696_v24, %v2696_v24 }
 0x31a   :  { %4341 = vmatprep.subr.bf16.mxu0 %v5860_v37  ;;  %4423 = vmatprep.subr.bf16.mxu1 %v5862_v38  ;;  %v5655_v37 = vcombine.low %v2704_v17, %v2708_v18  ;;  %v5657_v38 = vcombine.low %v2705_v19, %v2709_v20  ;;  %v5666_v40 = vcombine.high %v2713_v34, %v2717_v35  ;;  %v2760_v18 = vld [vmem:[#allocation13 + $0x1d0] sm:$0xff]  ;;  %v2761_v20 = vld [vmem:[#allocation13 + $0x1d8] sm:$0xff] }
 0x31b   :  { %v2764_v19 = vld [vmem:[#allocation13 + $0x1f0] sm:$0xff] }
 0x31d   :  { %4342 = vmatpush1.bf16.msra.mxu0 %v5859_v43  ;;  %4424 = vmatpush1.bf16.msra.mxu1 %v5861_v44  ;;  %v2721_v43 = vld [vmem:[#allocation13 + $0x98] sm:$0xff] }
 0x31e   :  { %4343 = vmatprep.subr.bf16.mxu0 %v5868_v45  ;;  %4425 = vmatprep.subr.bf16.mxu1 %v5870_v46  ;;  %v2725_v44 = vld [vmem:[#allocation13 + $0xb8] sm:$0xff]  ;;  %v5663_v45 = vcombine.low %v2712_v27, %v2716_v31  ;;  %v5665_v46 = vcombine.low %v2713_v34, %v2717_v35  ;;  %v2768_v27 = vld [vmem:[#allocation13 + $0x210] sm:$0xff] }
 0x31f   :  { %v5674_v48 = vcombine.high %v2721_v43, %v2725_v44  ;;  %v2772_v31 = vld [vmem:[#allocation13 + $0x230] sm:$0xff]  ;;  %v2769_v34 = vld [vmem:[#allocation13 + $0x218] sm:$0xff] }
 0x320   :  { %v2773_v35 = vld [vmem:[#allocation13 + $0x238] sm:$0xff] }
 0x321   :  { %4344 = vmatpush1.bf16.msra.mxu0 %v5867_v51  ;;  %4426 = vmatpush1.bf16.msra.mxu1 %v5869_v52  ;;  %v2729_v51 = vld [vmem:[#allocation13 + $0xd8] sm:$0xff] }
 0x322   :  { %4345 = vmatprep.subr.bf16.mxu0 %v5876_v53  ;;  %4427 = vmatprep.subr.bf16.mxu1 %v5878_v54  ;;  %v2733_v52 = vld [vmem:[#allocation13 + $0xf8] sm:$0xff]  ;;  %v5671_v53 = vcombine.low %v2720_v41, %v2724_v42  ;;  %v5673_v54 = vcombine.low %v2721_v43, %v2725_v44  ;;  %v2776_v41 = vld [vmem:[#allocation13 + $0x250] sm:$0xff] }
 0x323   :  { %v5682_v56 = vcombine.high %v2729_v51, %v2733_v52  ;;  %v2780_v42 = vld [vmem:[#allocation13 + $0x270] sm:$0xff]  ;;  %v2777_v43 = vld [vmem:[#allocation13 + $0x258] sm:$0xff] }
 0x324   :  { %v2781_v44 = vld [vmem:[#allocation13 + $0x278] sm:$0xff] }
 0x325   :  { %4346 = vmatpush1.bf16.msra.mxu0 %v5875_v59  ;;  %4428 = vmatpush1.bf16.msra.mxu1 %v5877_v60  ;;  %v2737_v59 = vld [vmem:[#allocation13 + $0x118] sm:$0xff] }
 0x326   :  { %4347 = vmatprep.subr.bf16.mxu0 %v5884_v61  ;;  %4429 = vmatprep.subr.bf16.mxu1 %v5886_v62  ;;  %v2741_v60 = vld [vmem:[#allocation13 + $0x138] sm:$0xff]  ;;  %v5679_v61 = vcombine.low %v2728_v49, %v2732_v50  ;;  %v5681_v62 = vcombine.low %v2729_v51, %v2733_v52  ;;  %v2784_v49 = vld [vmem:[#allocation13 + $0x290] sm:$0xff] }
 0x327   :  { %v2788_v50 = vld [vmem:[#allocation13 + $0x2b0] sm:$0xff]  ;;  %v2785_v51 = vld [vmem:[#allocation13 + $0x298] sm:$0xff] }
 0x328   :  { %v2789_v52 = vld [vmem:[#allocation13 + $0x2b8] sm:$0xff] }
 0x329   :  { %4348 = vmatpush1.bf16.msra.mxu0 %v5883_v3  ;;  %4430 = vmatpush1.bf16.msra.mxu1 %v5885_v4  ;;  %v2749_v3 = vld [vmem:[#allocation13 + $0x178] sm:$0xff]  ;;  %v5687_v4 = vcombine.low %v2736_v57, %v2740_v58  ;;  %v2792_v57 = vld [vmem:[#allocation13 + $0x2d0] sm:$0xff] }
 0x32a   :  { %4349 = vmatprep.subr.bf16.mxu0 %v5892_v6  ;;  %4431 = vmatprep.subr.bf16.mxu1 %v5894_v7  ;;  %v5689_v6 = vcombine.low %v2737_v59, %v2741_v60  ;;  %v5696_v7 = vcombine.high %v2744_v0, %v2748_v1  ;;  %v5698_v8 = vcombine.high %v2745_v2, %v2749_v3  ;;  %v2796_v58 = vld [vmem:[#allocation13 + $0x2f0] sm:$0xff] }
 0x32d   :  { %4350 = vmatpush1.bf16.msra.mxu0 %v5891_v13  ;;  %4432 = vmatpush1.bf16.msra.mxu1 %v5893_v14  ;;  %v2757_v13 = vld [vmem:[#allocation13 + $0x1b8] sm:$0xff]  ;;  %v5695_v14 = vcombine.low %v2744_v0, %v2748_v1  ;;  %v2800_v0 = vld [vmem:[#allocation13 + $0x310] sm:$0xff] }
 0x32e   :  { %4351 = vmatprep.subr.bf16.mxu0 %v5900_v15  ;;  %4433 = vmatprep.subr.bf16.mxu1 %v5902_v16  ;;  %v5697_v15 = vcombine.low %v2745_v2, %v2749_v3  ;;  %v5704_v16 = vcombine.high %v2752_v9, %v2756_v10  ;;  %v5706_v17 = vcombine.high %v2753_v12, %v2757_v13  ;;  %v2804_v1 = vld [vmem:[#allocation13 + $0x330] sm:$0xff]  ;;  %v2801_v2 = vld [vmem:[#allocation13 + $0x318] sm:$0xff] }
 0x32f   :  { %v5705_v24 = vcombine.low %v2753_v12, %v2757_v13  ;;  %v2805_v3 = vld [vmem:[#allocation13 + $0x338] sm:$0xff] }
 0x330   :  { %v2809_v12 = vld [vmem:[#allocation13 + $0x358] sm:$0xff] }
 0x331   :  { %4352 = vmatpush1.bf16.msra.mxu0 %v5899_v22  ;;  %4434 = vmatpush1.bf16.msra.mxu1 %v5901_v23  ;;  %v2765_v22 = vld [vmem:[#allocation13 + $0x1f8] sm:$0xff]  ;;  %v5703_v23 = vcombine.low %v2752_v9, %v2756_v10  ;;  %v2808_v9 = vld [vmem:[#allocation13 + $0x350] sm:$0xff] }
 0x332   :  { %4444 = vmatprep.subr.bf16.mxu0 %v5656_v25  ;;  %4526 = vmatprep.subr.bf16.mxu1 %v5658_v26  ;;  %v5712_v25 = vcombine.high %v2760_v18, %v2764_v19  ;;  %v5714_v26 = vcombine.high %v2761_v20, %v2765_v22  ;;  %v2812_v10 = vld [vmem:[#allocation13 + $0x370] sm:$0xff]  ;;  %v2813_v13 = vld [vmem:[#allocation13 + $0x378] sm:$0xff] }
 0x334   :  { %4354 = vmatmul.mubr.bf16.vlgmr.msra.gmra.mrb[8].mxu0 %v7229_v36  ;;  %4436 = vmatmul.mubr.bf16.vlgmr.msra.gmra.mrb[8].mxu1 %v7229_v36 }
 0x335   :  { %4445 = vmatpush1.bf16.msra.mxu0 %v5655_v37  ;;  %4527 = vmatpush1.bf16.msra.mxu1 %v5657_v38  ;;  %v5711_v37 = vcombine.low %v2760_v18, %v2764_v19  ;;  %v5713_v38 = vcombine.low %v2761_v20, %v2765_v22  ;;  %v2816_v18 = vld [vmem:[#allocation13 + $0x390] sm:$0xff]  ;;  %v2817_v20 = vld [vmem:[#allocation13 + $0x398] sm:$0xff] }
 0x336   :  { %4446 = vmatprep.subr.bf16.mxu0 %v5664_v39  ;;  %4528 = vmatprep.subr.bf16.mxu1 %v5666_v40  ;;  %v5720_v39 = vcombine.high %v2768_v27, %v2772_v31  ;;  %v5722_v40 = vcombine.high %v2769_v34, %v2773_v35  ;;  %v2820_v19 = vld [vmem:[#allocation13 + $0x3b0] sm:$0xff]  ;;  %v2821_v22 = vld [vmem:[#allocation13 + $0x3b8] sm:$0xff] }
 0x337   :  { %4476 = vmatprep.mubr.bf16.mxu0 %v7217_v5  ;;  %4558 = vmatprep.mubr.bf16.mxu1 %v7217_v5  ;;  %v5690_v5 = vcombine.high %v2737_v59, %v2741_v60  ;;  %v2793_v59 = vld [vmem:[#allocation13 + $0x2d8] sm:$0xff] }
 0x338   :  { %v2797_v60 = vld [vmem:[#allocation13 + $0x2f8] sm:$0xff] }
 0x339   :  { %4447 = vmatpush1.bf16.msra.mxu0 %v5663_v45  ;;  %4529 = vmatpush1.bf16.msra.mxu1 %v5665_v46  ;;  %v5719_v45 = vcombine.low %v2768_v27, %v2772_v31  ;;  %v5721_v46 = vcombine.low %v2769_v34, %v2773_v35  ;;  %v2824_v27 = vld [vmem:[#allocation13 + $0x3d0] sm:$0xff]  ;;  %v2825_v34 = vld [vmem:[#allocation13 + $0x3d8] sm:$0xff] }
 0x33a   :  { %4448 = vmatprep.subr.bf16.mxu0 %v5672_v47  ;;  %4530 = vmatprep.subr.bf16.mxu1 %v5674_v48  ;;  %v5728_v47 = vcombine.high %v2776_v41, %v2780_v42  ;;  %v5730_v48 = vcombine.high %v2777_v43, %v2781_v44  ;;  %v2828_v31 = vld [vmem:[#allocation13 + $0x3f0] sm:$0xff]  ;;  %v2829_v35 = vld [vmem:[#allocation13 + $0x3f8] sm:$0xff] }
 0x33d   :  { %4449 = vmatpush1.bf16.msra.mxu0 %v5671_v53  ;;  %4531 = vmatpush1.bf16.msra.mxu1 %v5673_v54  ;;  %v5727_v53 = vcombine.low %v2776_v41, %v2780_v42  ;;  %v5729_v54 = vcombine.low %v2777_v43, %v2781_v44  ;;  %v2832_v41 = vld [vmem:[#allocation13 + $0x410] sm:$0xff]  ;;  %v2833_v43 = vld [vmem:[#allocation13 + $0x418] sm:$0xff] }
 0x33e   :  { %4450 = vmatprep.subr.bf16.mxu0 %v5680_v55  ;;  %4532 = vmatprep.subr.bf16.mxu1 %v5682_v56  ;;  %v5736_v55 = vcombine.high %v2784_v49, %v2788_v50  ;;  %v5738_v56 = vcombine.high %v2785_v51, %v2789_v52  ;;  %v2836_v42 = vld [vmem:[#allocation13 + $0x430] sm:$0xff]  ;;  %v2837_v44 = vld [vmem:[#allocation13 + $0x438] sm:$0xff] }
 0x341   :  { %4451 = vmatpush1.bf16.msra.mxu0 %v5679_v61  ;;  %4533 = vmatpush1.bf16.msra.mxu1 %v5681_v62  ;;  %v5735_v61 = vcombine.low %v2784_v49, %v2788_v50  ;;  %v5737_v62 = vcombine.low %v2785_v51, %v2789_v52  ;;  %v2840_v49 = vld [vmem:[#allocation13 + $0x450] sm:$0xff]  ;;  %v2841_v51 = vld [vmem:[#allocation13 + $0x458] sm:$0xff] }
 0x342   :  { %4452 = vmatprep.subr.bf16.mxu0 %v5688_v63  ;;  %4534 = vmatprep.subr.bf16.mxu1 %v5690_v5  ;;  %v5744_v63 = vcombine.high %v2792_v57, %v2796_v58  ;;  %v5746_v5 = vcombine.high %v2793_v59, %v2797_v60  ;;  %v2844_v50 = vld [vmem:[#allocation13 + $0x470] sm:$0xff]  ;;  %v2845_v52 = vld [vmem:[#allocation13 + $0x478] sm:$0xff] }
 0x345   :  { %4453 = vmatpush1.bf16.msra.mxu0 %v5687_v4  ;;  %4535 = vmatpush1.bf16.msra.mxu1 %v5689_v6  ;;  %v5743_v4 = vcombine.low %v2792_v57, %v2796_v58  ;;  %v5745_v6 = vcombine.low %v2793_v59, %v2797_v60  ;;  %v2848_v57 = vld [vmem:[#allocation13 + $0x490] sm:$0xff]  ;;  %v2849_v59 = vld [vmem:[#allocation13 + $0x498] sm:$0xff] }
 0x346   :  { %4454 = vmatprep.subr.bf16.mxu0 %v5696_v7  ;;  %4536 = vmatprep.subr.bf16.mxu1 %v5698_v8  ;;  %v5752_v7 = vcombine.high %v2800_v0, %v2804_v1  ;;  %v5754_v8 = vcombine.high %v2801_v2, %v2805_v3  ;;  %v2852_v58 = vld [vmem:[#allocation13 + $0x4b0] sm:$0xff]  ;;  %v2853_v60 = vld [vmem:[#allocation13 + $0x4b8] sm:$0xff] }
 0x349   :  { %4455 = vmatpush1.bf16.msra.mxu0 %v5695_v14  ;;  %4537 = vmatpush1.bf16.msra.mxu1 %v5697_v15  ;;  %v5751_v14 = vcombine.low %v2800_v0, %v2804_v1  ;;  %v5753_v15 = vcombine.low %v2801_v2, %v2805_v3  ;;  %v2856_v0 = vld [vmem:[#allocation13 + $0x4d0] sm:$0xff]  ;;  %v2857_v2 = vld [vmem:[#allocation13 + $0x4d8] sm:$0xff] }
 0x34a   :  { %4456 = vmatprep.subr.bf16.mxu0 %v5704_v16  ;;  %4538 = vmatprep.subr.bf16.mxu1 %v5706_v17  ;;  %v5760_v16 = vcombine.high %v2808_v9, %v2812_v10  ;;  %v5762_v17 = vcombine.high %v2809_v12, %v2813_v13  ;;  %v2860_v1 = vld [vmem:[#allocation13 + $0x4f0] sm:$0xff]  ;;  %v2861_v3 = vld [vmem:[#allocation13 + $0x4f8] sm:$0xff] }
 0x34d   :  { %4457 = vmatpush1.bf16.msra.mxu0 %v5703_v23  ;;  %4539 = vmatpush1.bf16.msra.mxu1 %v5705_v24  ;;  %v5759_v23 = vcombine.low %v2808_v9, %v2812_v10  ;;  %v5761_v24 = vcombine.low %v2809_v12, %v2813_v13  ;;  %v2868_v9 = vld [vmem:[#allocation13 + $0x530] sm:$0xff]  ;;  %v2865_v10 = vld [vmem:[#allocation13 + $0x518] sm:$0xff]  ;;  %v5807_v13 = vcombine.low %v2856_v0, %v2860_v1 }
 0x34e   :  { %4458 = vmatprep.subr.bf16.mxu0 %v5712_v25  ;;  %4540 = vmatprep.subr.bf16.mxu1 %v5714_v26  ;;  %v5768_v25 = vcombine.high %v2816_v18, %v2820_v19  ;;  %v5770_v26 = vcombine.high %v2817_v20, %v2821_v22  ;;  %v2869_v12 = vld [vmem:[#allocation13 + $0x538] sm:$0xff] }
 0x351   :  { %4459 = vmatpush1.bf16.msra.mxu0 %v5711_v37  ;;  %4541 = vmatpush1.bf16.msra.mxu1 %v5713_v38  ;;  %v5767_v37 = vcombine.low %v2816_v18, %v2820_v19  ;;  %v5769_v38 = vcombine.low %v2817_v20, %v2821_v22  ;;  %v2873_v18 = vld [vmem:[#allocation13 + $0x558] sm:$0xff]  ;;  %v5817_v22 = vcombine.low %v2865_v10, %v2869_v12 }
 0x352   :  { %4460 = vmatprep.subr.bf16.mxu0 %v5720_v39  ;;  %4542 = vmatprep.subr.bf16.mxu1 %v5722_v40  ;;  %v5776_v39 = vcombine.high %v2824_v27, %v2828_v31  ;;  %v5778_v40 = vcombine.high %v2825_v34, %v2829_v35  ;;  %v2877_v19 = vld [vmem:[#allocation13 + $0x578] sm:$0xff] }
 0x355   :  { %4461 = vmatpush1.bf16.msra.mxu0 %v5719_v45  ;;  %4543 = vmatpush1.bf16.msra.mxu1 %v5721_v46  ;;  %v5775_v45 = vcombine.low %v2824_v27, %v2828_v31  ;;  %v5777_v46 = vcombine.low %v2825_v34, %v2829_v35  ;;  %v2881_v27 = vld [vmem:[#allocation13 + $0x598] sm:$0xff]  ;;  %v5825_v35 = vcombine.low %v2873_v18, %v2877_v19 }
 0x356   :  { %4462 = vmatprep.subr.bf16.mxu0 %v5728_v47  ;;  %4544 = vmatprep.subr.bf16.mxu1 %v5730_v48  ;;  %v5784_v47 = vcombine.high %v2832_v41, %v2836_v42  ;;  %v5786_v48 = vcombine.high %v2833_v43, %v2837_v44  ;;  %v2885_v31 = vld [vmem:[#allocation13 + $0x5b8] sm:$0xff] }
 0x359   :  { %4463 = vmatpush1.bf16.msra.mxu0 %v5727_v53  ;;  %4545 = vmatpush1.bf16.msra.mxu1 %v5729_v54  ;;  %v5783_v53 = vcombine.low %v2832_v41, %v2836_v42  ;;  %v5785_v54 = vcombine.low %v2833_v43, %v2837_v44  ;;  %v2892_v42 = vld [vmem:[#allocation13 + $0x5f0] sm:$0xff]  ;;  %v2889_v43 = vld [vmem:[#allocation13 + $0x5d8] sm:$0xff] }
 0x35a   :  { %4464 = vmatprep.subr.bf16.mxu0 %v5736_v55  ;;  %4546 = vmatprep.subr.bf16.mxu1 %v5738_v56  ;;  %v5792_v55 = vcombine.high %v2840_v49, %v2844_v50  ;;  %v5794_v56 = vcombine.high %v2841_v51, %v2845_v52  ;;  %v2893_v44 = vld [vmem:[#allocation13 + $0x5f8] sm:$0xff] }
 0x35d   :  { %4465 = vmatpush1.bf16.msra.mxu0 %v5735_v61  ;;  %4547 = vmatpush1.bf16.msra.mxu1 %v5737_v62  ;;  %v5791_v61 = vcombine.low %v2840_v49, %v2844_v50  ;;  %v5793_v62 = vcombine.low %v2841_v51, %v2845_v52 }
 0x35e   :  { %4466 = vmatprep.subr.bf16.mxu0 %v5744_v63  ;;  %4548 = vmatprep.subr.bf16.mxu1 %v5746_v5  ;;  %v5800_v63 = vcombine.high %v2848_v57, %v2852_v58  ;;  %v5802_v5 = vcombine.high %v2849_v59, %v2853_v60 }
 0x361   :  { %4467 = vmatpush1.bf16.msra.mxu0 %v5743_v4  ;;  %4549 = vmatpush1.bf16.msra.mxu1 %v5745_v6  ;;  %v5799_v4 = vcombine.low %v2848_v57, %v2852_v58  ;;  %v5808_v6 = vcombine.high %v2856_v0, %v2860_v1  ;;  %v5842_v57 = vcombine.high %v2889_v43, %v2893_v44  ;;  %v2896_v58 = vld [vmem:[#allocation13 + $0x610] sm:$0xff] }
 0x362   :  { %4468 = vmatprep.subr.bf16.mxu0 %v5752_v7  ;;  %4550 = vmatprep.subr.bf16.mxu1 %v5754_v8  ;;  %v5810_v7 = vcombine.high %v2857_v2, %v2861_v3  ;;  %v2864_v8 = vld [vmem:[#allocation13 + $0x510] sm:$0xff]  ;;  %v5841_v0 = vcombine.low %v2889_v43, %v2893_v44  ;;  %v2937_v44 = vld [vmem:[#allocation13 + $0x758] sm:$0xff] }
 0x363   :  { %v5815_v20 = vcombine.low %v2864_v8, %v2868_v9  ;;  %v2940_v43 = vld [vmem:[#allocation13 + $0x770] sm:$0xff] }
 0x365   :  { %4469 = vmatpush1.bf16.msra.mxu0 %v5751_v14  ;;  %4551 = vmatpush1.bf16.msra.mxu1 %v5753_v15  ;;  %v5809_v14 = vcombine.low %v2857_v2, %v2861_v3  ;;  %v5816_v15 = vcombine.high %v2864_v8, %v2868_v9  ;;  %v2904_v3 = vld [vmem:[#allocation13 + $0x650] sm:$0xff] }
 0x366   :  { %4470 = vmatprep.subr.bf16.mxu0 %v5760_v16  ;;  %4552 = vmatprep.subr.bf16.mxu1 %v5762_v17  ;;  %v2872_v16 = vld [vmem:[#allocation13 + $0x550] sm:$0xff] }
 0x367   :  { %v2876_v17 = vld [vmem:[#allocation13 + $0x570] sm:$0xff] }
 0x368   :  { %v5823_v34 = vcombine.low %v2872_v16, %v2876_v17 }
 0x369   :  { %4471 = vmatpush1.bf16.msra.mxu0 %v5759_v23  ;;  %4553 = vmatpush1.bf16.msra.mxu1 %v5761_v24  ;;  %v5824_v23 = vcombine.high %v2872_v16, %v2876_v17  ;;  %v5826_v24 = vcombine.high %v2873_v18, %v2877_v19  ;;  %v2920_v19 = vld [vmem:[#allocation13 + $0x6d0] sm:$0xff] }
 0x36a   :  { %4472 = vmatprep.subr.bf16.mxu0 %v5768_v25  ;;  %4554 = vmatprep.subr.bf16.mxu1 %v5770_v26  ;;  %v2880_v25 = vld [vmem:[#allocation13 + $0x590] sm:$0xff] }
 0x36b   :  { %v2884_v26 = vld [vmem:[#allocation13 + $0x5b0] sm:$0xff] }
 0x36d   :  { %4473 = vmatpush1.bf16.msra.mxu0 %v5767_v37  ;;  %4555 = vmatpush1.bf16.msra.mxu1 %v5769_v38  ;;  %v5832_v37 = vcombine.high %v2880_v25, %v2884_v26  ;;  %v5834_v38 = vcombine.high %v2881_v27, %v2885_v31 }
 0x36e   :  { %4474 = vmatprep.subr.bf16.mxu0 %v5776_v39  ;;  %4556 = vmatprep.subr.bf16.mxu1 %v5778_v40  ;;  %v2888_v39 = vld [vmem:[#allocation13 + $0x5d0] sm:$0xff] }
 0x371   :  { %4475 = vmatpush1.bf16.msra.mxu0 %v5775_v45  ;;  %4557 = vmatpush1.bf16.msra.mxu1 %v5777_v46  ;;  %v5618_v45 = vld [vmem:[#allocation11] ss:$0 sm:$0xff] }
 0x372   :  { %4485 = vmatprep.subr.bf16.mxu0 %v5784_v47  ;;  %4567 = vmatprep.subr.bf16.mxu1 %v5786_v48  ;;  %v5831_v48 = vcombine.low %v2880_v25, %v2884_v26 }
 0x374   :  { %4477 = vmatmul.mubr.bf16.vlgmr.msra.gmra.mrb[12].mxu0 %v7221_v11  ;;  %4559 = vmatmul.mubr.bf16.vlgmr.msra.gmra.mrb[12].mxu1 %v7221_v11  ;;  %v5801_v11 = vcombine.low %v2849_v59, %v2853_v60  ;;  %v2900_v60 = vld [vmem:[#allocation13 + $0x630] sm:$0xff] }
 0x375   :  { %4486 = vmatpush1.bf16.msra.mxu0 %v5783_v53  ;;  %4568 = vmatpush1.bf16.msra.mxu1 %v5785_v54  ;;  %v5833_v53 = vcombine.low %v2881_v27, %v2885_v31  ;;  %v5848_v1 = vcombine.high %v2896_v58, %v2900_v60  ;;  %v2928_v31 = vld [vmem:[#allocation13 + $0x710] sm:$0xff] }
 0x376   :  { %4487 = vmatprep.subr.bf16.mxu0 %v5792_v55  ;;  %4569 = vmatprep.subr.bf16.mxu1 %v5794_v56  ;;  %v5840_v56 = vcombine.high %v2888_v39, %v2892_v42 }
 0x377   :  { %4517 = vmatprep.mubr.bf16.mxu0 %v7223_v21  ;;  %4599 = vmatprep.mubr.bf16.mxu1 %v7223_v21  ;;  %v5818_v21 = vcombine.high %v2865_v10, %v2869_v12  ;;  %v2912_v12 = vld [vmem:[#allocation13 + $0x690] sm:$0xff] }
 0x379   :  { %4488 = vmatpush1.bf16.msra.mxu0 %v5791_v61  ;;  %4570 = vmatpush1.bf16.msra.mxu1 %v5793_v62  ;;  %v2897_v61 = vld [vmem:[#allocation13 + $0x618] sm:$0xff] }
 0x37a   :  { %4489 = vmatprep.subr.bf16.mxu0 %v5800_v63  ;;  %4571 = vmatprep.subr.bf16.mxu1 %v5802_v5  ;;  %v2901_v62 = vld [vmem:[#allocation13 + $0x638] sm:$0xff]  ;;  %v5839_v5 = vcombine.low %v2888_v39, %v2892_v42  ;;  %v2936_v42 = vld [vmem:[#allocation13 + $0x750] sm:$0xff] }
 0x37b   :  { %v5850_v2 = vcombine.high %v2897_v61, %v2901_v62  ;;  %v5849_v8 = vcombine.low %v2897_v61, %v2901_v62  ;;  %v2957_v61 = vld [vmem:[#allocation13 + $0x7f8] sm:$0xff] }
 0x37d   :  { %4490 = vmatpush1.bf16.msra.mxu0 %v5799_v4  ;;  %4572 = vmatpush1.bf16.msra.mxu1 %v5801_v11  ;;  %v2908_v4 = vld [vmem:[#allocation13 + $0x670] sm:$0xff]  ;;  %v2905_v11 = vld [vmem:[#allocation13 + $0x658] sm:$0xff] }
 0x37e   :  { %4491 = vmatprep.subr.bf16.mxu0 %v5808_v6  ;;  %4573 = vmatprep.subr.bf16.mxu1 %v5810_v7  ;;  %v2909_v6 = vld [vmem:[#allocation13 + $0x678] sm:$0xff]  ;;  %v5847_v7 = vcombine.low %v2896_v58, %v2900_v60  ;;  %v5856_v9 = vcombine.high %v2904_v3, %v2908_v4  ;;  %v2952_v58 = vld [vmem:[#allocation13 + $0x7d0] sm:$0xff] }
 0x37f   :  { %v5858_v10 = vcombine.high %v2905_v11, %v2909_v6  ;;  %v5857_v16 = vcombine.low %v2905_v11, %v2909_v6  ;;  %v2953_v60 = vld [vmem:[#allocation13 + $0x7d8] sm:$0xff]  ;;  %v6649_v11 = vld [vmem:[#allocation16] sm:$0xff]  }
 0x380   :  { %v6650_v6 = vld [vmem:[#allocation16 + $0x80] sm:$0xff]  }
 0x381   :  { %4492 = vmatpush1.bf16.msra.mxu0 %v5807_v13  ;;  %4574 = vmatpush1.bf16.msra.mxu1 %v5809_v14  ;;  %v2916_v13 = vld [vmem:[#allocation13 + $0x6b0] sm:$0xff]  ;;  %v2913_v14 = vld [vmem:[#allocation13 + $0x698] sm:$0xff] }
 0x382   :  { %4493 = vmatprep.subr.bf16.mxu0 %v5816_v15  ;;  %4575 = vmatprep.subr.bf16.mxu1 %v5818_v21  ;;  %v2917_v15 = vld [vmem:[#allocation13 + $0x6b8] sm:$0xff]  ;;  %v5855_v21 = vcombine.low %v2904_v3, %v2908_v4  ;;  %v5864_v17 = vcombine.high %v2912_v12, %v2916_v13  ;;  %v6647_v3 = vld [vmem:[#allocation16 + $0x40] sm:$0xff]  }
 0x383   :  { %v5866_v18 = vcombine.high %v2913_v14, %v2917_v15  ;;  %v5865_v25 = vcombine.low %v2913_v14, %v2917_v15  ;;  %v6648_v4 = vld [vmem:[#allocation16 + $0xc0] sm:$0xff]   ;;  %v6657_v14 = vld [vmem:[#allocation16 + $0x10] sm:$0xff]  }
 0x384   :  { %v6658_v15 = vld [vmem:[#allocation16 + $0x90] sm:$0xff]  }
 0x385   :  { %4494 = vmatpush1.bf16.msra.mxu0 %v5815_v20  ;;  %4576 = vmatpush1.bf16.msra.mxu1 %v5817_v22  ;;  %v2924_v20 = vld [vmem:[#allocation13 + $0x6f0] sm:$0xff]  ;;  %v2921_v22 = vld [vmem:[#allocation13 + $0x6d8] sm:$0xff] }
 0x386   :  { %4495 = vmatprep.subr.bf16.mxu0 %v5824_v23  ;;  %4577 = vmatprep.subr.bf16.mxu1 %v5826_v24  ;;  %v2925_v23 = vld [vmem:[#allocation13 + $0x6f8] sm:$0xff]  ;;  %v5863_v24 = vcombine.low %v2912_v12, %v2916_v13  ;;  %v5872_v26 = vcombine.high %v2920_v19, %v2924_v20 }
 0x387   :  { %v5988_v40 = vpop.f32.mrb[4].mxu0  ;;  %v6010_v41 = vpop.f32.mrb[4].mxu1  ;;  %v5874_v27 = vcombine.high %v2921_v22, %v2925_v23  ;;  %v5873_v39 = vcombine.low %v2921_v22, %v2925_v23  ;;  %v6655_v12 = vld [vmem:[#allocation16 + $0x50] sm:$0xff]   ;;  %v6666_v22 = vld [vmem:[#allocation16 + $0xa0] sm:$0xff]   ;;  %v6667_v23 = vld [vmem:[#allocation16 + $0x68] sm:$0xff]  }
 0x388   :  { %v5989_v46 = vpop.f32.mrb[5].mxu0  ;;  %v6011_v47 = vpop.f32.mrb[5].mxu1  ;;  %v6656_v13 = vld [vmem:[#allocation16 + $0xd0] sm:$0xff]  }
 0x389   :  { %v5990_v49 = vadd.f32 %v5989_v46, %v5988_v40  ;;  %v6012_v50 = vadd.f32 %v6011_v47, %v6010_v41  ;;  %4496 = vmatpush1.bf16.msra.mxu0 %v5823_v34  ;;  %4578 = vmatpush1.bf16.msra.mxu1 %v5825_v35  ;;  %v5991_v51 = vpop.f32.mrb[6].mxu0  ;;  %v6013_v52 = vpop.f32.mrb[6].mxu1  ;;  %v2932_v34 = vld [vmem:[#allocation13 + $0x730] sm:$0xff]  ;;  %v2929_v35 = vld [vmem:[#allocation13 + $0x718] sm:$0xff] }
 0x38a   :  { %v5992_v54 = vpop.f32.mrb[7].mxu0  ;;  %v6014_v55 = vpop.f32.mrb[7].mxu1  ;;  %4497 = vmatprep.subr.bf16.mxu0 %v5832_v37  ;;  %4579 = vmatprep.subr.bf16.mxu1 %v5834_v38  ;;  %v2933_v37 = vld [vmem:[#allocation13 + $0x738] sm:$0xff]  ;;  %v5871_v38 = vcombine.low %v2920_v19, %v2924_v20  ;;  %v5880_v40 = vcombine.high %v2928_v31, %v2932_v34  ;;  %v5879_v46 = vcombine.low %v2928_v31, %v2932_v34  ;;  %v2948_v51 = vld [vmem:[#allocation13 + $0x7b0] sm:$0xff]  ;;  %v6664_v19 = vld [vmem:[#allocation16 + $0xe0] sm:$0xff]  }
 0x38b   :  { %v2648_v59 = vadd.f32 %v5990_v49, %v5618_v45  ;;  %v5882_v41 = vcombine.high %v2929_v35, %v2933_v37  ;;  %v2941_v45 = vld [vmem:[#allocation13 + $0x778] sm:$0xff]  ;;  %v5881_v47 = vcombine.low %v2929_v35, %v2933_v37  ;;  %v5887_v54 = vcombine.low %v2936_v42, %v2940_v43  ;;  %v6665_v20 = vld [vmem:[#allocation16 + $0x20] sm:$0xff]   ;;  %v6675_v37 = vld [vmem:[#allocation16 + $0x78] sm:$0xff]  }
 0x38c   :  { %v5890_v49 = vcombine.high %v2937_v44, %v2941_v45  ;;  %v2945_v52 = vld [vmem:[#allocation13 + $0x798] sm:$0xff]  ;;  %v5889_v55 = vcombine.low %v2937_v44, %v2941_v45 }
 0x38d   :  { %v2688_v63 = vadd.f32 %v6012_v50, %v2648_v59  ;;  %4498 = vmatpush1.bf16.msra.mxu0 %v5831_v48  ;;  %4580 = vmatpush1.bf16.msra.mxu1 %v5833_v53  ;;  %v5888_v48 = vcombine.high %v2936_v42, %v2940_v43  ;;  %v2944_v50 = vld [vmem:[#allocation13 + $0x790] sm:$0xff]  ;;  %v2949_v53 = vld [vmem:[#allocation13 + $0x7b8] sm:$0xff]  ;;  %v6680_v42 = vld [vmem:[#allocation16 + $0x1c0] sm:$0xff]  }
 0x38e   :  { %4499 = vmatprep.subr.bf16.mxu0 %v5840_v56  ;;  %4581 = vmatprep.subr.bf16.mxu1 %v5842_v57  ;;  %v5896_v56 = vcombine.high %v2944_v50, %v2948_v51  ;;  %v5898_v57 = vcombine.high %v2945_v52, %v2949_v53  ;;  %v2956_v59 = vld [vmem:[#allocation13 + $0x7f0] sm:$0xff]  ;;  %v5895_v62 = vcombine.low %v2944_v50, %v2948_v51  ;;  %v6672_v31 = vld [vmem:[#allocation16 + $0xf0] sm:$0xff]   ;;  %v7241_v43 = vld [vmem:[#allocation14] sm:$0xff] }
 0x38f   :  { %2693 = vst [vmem:[#allocation19] sm:$0xff] %v2688_v63  ;;  %v5897_v63 = vcombine.low %v2945_v52, %v2949_v53  ;;  %v6673_v34 = vld [vmem:[#allocation16 + $0x30] sm:$0xff]   ;;  %v2963_v44 = vrot.slane %v7241_v43, %v474_v29  ;;  %v2971_v45 = vrot.slane %v7241_v43, %v482_v30 }
 0x390   :  { %v6674_v35 = vld [vmem:[#allocation16 + $0xb0] sm:$0xff]  }
 0x391   :  { %4500 = vmatpush1.bf16.msra.mxu0 %v5839_v5  ;;  %4582 = vmatpush1.bf16.msra.mxu1 %v5841_v0  ;;  %v5904_v5 = vcombine.high %v2952_v58, %v2956_v59  ;;  %v5906_v0 = vcombine.high %v2953_v60, %v2957_v61 }
 0x392   :  { %4501 = vmatprep.subr.bf16.mxu0 %v5848_v1  ;;  %4583 = vmatprep.subr.bf16.mxu1 %v5850_v2  ;;  %v5903_v1 = vcombine.low %v2952_v58, %v2956_v59  ;;  %v5905_v2 = vcombine.low %v2953_v60, %v2957_v61  ;;  %v6681_v60 = vld [vmem:[#allocation16 + $0x100] sm:$0xff]  }
 0x395   :  { %4502 = vmatpush1.bf16.msra.mxu0 %v5847_v7  ;;  %4584 = vmatpush1.bf16.msra.mxu1 %v5849_v8  ;;  %v6651_v7 = vld [vmem:[#allocation16 + $0x48] sm:$0xff]  }
 0x396   :  { %4503 = vmatprep.subr.bf16.mxu0 %v5856_v9  ;;  %4585 = vmatprep.subr.bf16.mxu1 %v5858_v10  ;;  %v6652_v8 = vld [vmem:[#allocation16 + $0xc8] sm:$0xff]  }
 0x397   :  { %v6653_v9 = vld [vmem:[#allocation16 + $0x8] sm:$0xff]  }
 0x398   :  { %v6654_v10 = vld [vmem:[#allocation16 + $0x88] sm:$0xff]  }
 0x399   :  { %4504 = vmatpush1.bf16.msra.mxu0 %v5855_v21  ;;  %4586 = vmatpush1.bf16.msra.mxu1 %v5857_v16  ;;  %v6659_v21 = vld [vmem:[#allocation16 + $0x58] sm:$0xff]  }
 0x39a   :  { %4505 = vmatprep.subr.bf16.mxu0 %v5864_v17  ;;  %4587 = vmatprep.subr.bf16.mxu1 %v5866_v18  ;;  %v6660_v16 = vld [vmem:[#allocation16 + $0xd8] sm:$0xff]   ;;  %v6663_v18 = vld [vmem:[#allocation16 + $0x60] sm:$0xff]  }
 0x39b   :  { %v6661_v17 = vld [vmem:[#allocation16 + $0x18] sm:$0xff]  }
 0x39d   :  { %4506 = vmatpush1.bf16.msra.mxu0 %v5863_v24  ;;  %4588 = vmatpush1.bf16.msra.mxu1 %v5865_v25  ;;  %v6668_v24 = vld [vmem:[#allocation16 + $0xe8] sm:$0xff]  }
 0x39e   :  { %4507 = vmatprep.subr.bf16.mxu0 %v5872_v26  ;;  %4589 = vmatprep.subr.bf16.mxu1 %v5874_v27  ;;  %v6669_v25 = vld [vmem:[#allocation16 + $0x28] sm:$0xff]   ;;  %v6671_v27 = vld [vmem:[#allocation16 + $0x70] sm:$0xff]  }
 0x39f   :  { %v6670_v26 = vld [vmem:[#allocation16 + $0xa8] sm:$0xff]  }
 0x3a1   :  { %4508 = vmatpush1.bf16.msra.mxu0 %v5871_v38  ;;  %4590 = vmatpush1.bf16.msra.mxu1 %v5873_v39  ;;  %v6676_v38 = vld [vmem:[#allocation16 + $0xf8] sm:$0xff]  }
 0x3a2   :  { %4509 = vmatprep.subr.bf16.mxu0 %v5880_v40  ;;  %4591 = vmatprep.subr.bf16.mxu1 %v5882_v41  ;;  %v6677_v39 = vld [vmem:[#allocation16 + $0x38] sm:$0xff]   ;;  %v6679_v41 = vld [vmem:[#allocation16 + $0x140] sm:$0xff]  }
 0x3a3   :  { %v6678_v40 = vld [vmem:[#allocation16 + $0xb8] sm:$0xff]  }
 0x3a5   :  { %4510 = vmatpush1.bf16.msra.mxu0 %v5879_v46  ;;  %4592 = vmatpush1.bf16.msra.mxu1 %v5881_v47  ;;  %v2967_v46 = vrot.slane %v7241_v43, %v478_v32  ;;  %v2975_v47 = vrot.slane %v7241_v43, %v486_v33  ;;  %v6682_v32 = vld [vmem:[#allocation16 + $0x180] sm:$0xff]   ;;  %v6684_v33 = vld [vmem:[#allocation16 + $0x1c8] sm:$0xff]  }
 0x3a6   :  { %4511 = vmatprep.subr.bf16.mxu0 %v5888_v48  ;;  %4593 = vmatprep.subr.bf16.mxu1 %v5890_v49 }
 0x3a9   :  { %4512 = vmatpush1.bf16.msra.mxu0 %v5887_v54  ;;  %4594 = vmatpush1.bf16.msra.mxu1 %v5889_v55 }
 0x3aa   :  { %4513 = vmatprep.subr.bf16.mxu0 %v5896_v56  ;;  %4595 = vmatprep.subr.bf16.mxu1 %v5898_v57 }
 0x3ad   :  { %4514 = vmatpush1.bf16.msra.mxu0 %v5895_v62  ;;  %4596 = vmatpush1.bf16.msra.mxu1 %v5897_v63  ;;  %v6683_v63 = vld [vmem:[#allocation16 + $0x148] sm:$0xff]  }
 0x3ae   :  { %4515 = vmatprep.subr.bf16.mxu0 %v5904_v5  ;;  %4597 = vmatprep.subr.bf16.mxu1 %v5906_v0  ;;  %v6685_v5 = vld [vmem:[#allocation16 + $0x108] sm:$0xff]  }
 0x3af   :  { %v6686_v0 = vld [vmem:[#allocation16 + $0x188] sm:$0xff]  }
 0x3b1   :  { %4516 = vmatpush1.bf16.msra.mxu0 %v5903_v1  ;;  %4598 = vmatpush1.bf16.msra.mxu1 %v5905_v2  ;;  %v6687_v1 = vld [vmem:[#allocation16 + $0x150] sm:$0xff]  }
 0x3b2   :  { %6016 = vmatprep.subr.bf16.mxu0 %v6647_v3  ;;  %6038 = vmatprep.subr.bf16.mxu1 %v6648_v4  ;;  %v6688_v2 = vld [vmem:[#allocation16 + $0x1d0] sm:$0xff]  }
 0x3b3   :  { %v6689_v3 = vld [vmem:[#allocation16 + $0x110] sm:$0xff]  }
 0x3b4   :  { %4518 = vmatmul.mubr.bf16.vlgmr.msra.gmra.mrb[12].mxu0 %v7229_v36  ;;  %4600 = vmatmul.mubr.bf16.vlgmr.msra.gmra.mrb[12].mxu1 %v7229_v36  ;;  %v6662_v36 = vld [vmem:[#allocation16 + $0x98] sm:$0xff]   ;;  %v6690_v4 = vld [vmem:[#allocation16 + $0x190] sm:$0xff]  }
 0x3b5   :  { %6017 = vmatpush3.bf16.msra.mxu0 %v6649_v11  ;;  %6039 = vmatpush3.bf16.msra.mxu1 %v6650_v6  ;;  %v6691_v11 = vld [vmem:[#allocation16 + $0x158] sm:$0xff]  }
 0x3b6   :  { %6018 = vmatprep.subr.bf16.mxu0 %v6651_v7  ;;  %6040 = vmatprep.subr.bf16.mxu1 %v6652_v8  ;;  %v6692_v6 = vld [vmem:[#allocation16 + $0x1d8] sm:$0xff]  }
 0x3b7   :  { %v6693_v7 = vld [vmem:[#allocation16 + $0x118] sm:$0xff]  }
 0x3b8   :  { %v6694_v8 = vld [vmem:[#allocation16 + $0x198] sm:$0xff]  }
 0x3b9   :  { %6019 = vmatpush3.bf16.msra.mxu0 %v6653_v9  ;;  %6041 = vmatpush3.bf16.msra.mxu1 %v6654_v10  ;;  %v6695_v9 = vld [vmem:[#allocation16 + $0x160] sm:$0xff]  }
 0x3ba   :  { %6020 = vmatprep.subr.bf16.mxu0 %v6655_v12  ;;  %6042 = vmatprep.subr.bf16.mxu1 %v6656_v13  ;;  %v6696_v10 = vld [vmem:[#allocation16 + $0x1e0] sm:$0xff]  }
 0x3bb   :  { %v6697_v12 = vld [vmem:[#allocation16 + $0x120] sm:$0xff]  }
 0x3bc   :  { %v6698_v13 = vld [vmem:[#allocation16 + $0x1a0] sm:$0xff]  }
 0x3bd   :  { %6021 = vmatpush3.bf16.msra.mxu0 %v6657_v14  ;;  %6043 = vmatpush3.bf16.msra.mxu1 %v6658_v15  ;;  %v6699_v14 = vld [vmem:[#allocation16 + $0x168] sm:$0xff]  }
 0x3be   :  { %6022 = vmatprep.subr.bf16.mxu0 %v6659_v21  ;;  %6044 = vmatprep.subr.bf16.mxu1 %v6660_v16  ;;  %v6700_v15 = vld [vmem:[#allocation16 + $0x1e8] sm:$0xff]  }
 0x3bf   :  { %v6701_v21 = vld [vmem:[#allocation16 + $0x128] sm:$0xff]  }
 0x3c0   :  { %v6702_v16 = vld [vmem:[#allocation16 + $0x1a8] sm:$0xff]  }
 0x3c1   :  { %6023 = vmatpush3.bf16.msra.mxu0 %v6661_v17  ;;  %6045 = vmatpush3.bf16.msra.mxu1 %v6662_v36  ;;  %v6703_v17 = vld [vmem:[#allocation16 + $0x170] sm:$0xff]  }
 0x3c2   :  { %6024 = vmatprep.subr.bf16.mxu0 %v6663_v18  ;;  %6046 = vmatprep.subr.bf16.mxu1 %v6664_v19  ;;  %v6704_v36 = vld [vmem:[#allocation16 + $0x1f0] sm:$0xff]  }
 0x3c3   :  { %v6705_v18 = vld [vmem:[#allocation16 + $0x130] sm:$0xff]  }
 0x3c4   :  { %v6706_v19 = vld [vmem:[#allocation16 + $0x1b0] sm:$0xff]  }
 0x3c5   :  { %6025 = vmatpush3.bf16.msra.mxu0 %v6665_v20  ;;  %6047 = vmatpush3.bf16.msra.mxu1 %v6666_v22  ;;  %v6707_v20 = vld [vmem:[#allocation16 + $0x178] sm:$0xff]  }
 0x3c6   :  { %6026 = vmatprep.subr.bf16.mxu0 %v6667_v23  ;;  %6048 = vmatprep.subr.bf16.mxu1 %v6668_v24  ;;  %v6708_v22 = vld [vmem:[#allocation16 + $0x1f8] sm:$0xff]  }
 0x3c7   :  { %v6709_v23 = vld [vmem:[#allocation16 + $0x138] sm:$0xff]  }
 0x3c8   :  { %v6710_v24 = vld [vmem:[#allocation16 + $0x1b8] sm:$0xff]  }
 0x3c9   :  { %6027 = vmatpush3.bf16.msra.mxu0 %v6669_v25  ;;  %6049 = vmatpush3.bf16.msra.mxu1 %v6670_v26  ;;  %v2978_v25 = vsub.s32 4, %v7203_v28  ;;  %v2986_v26 = vsub.s32 6, %v7203_v28 }
 0x3ca   :  { %6028 = vmatprep.subr.bf16.mxu0 %v6671_v27  ;;  %6050 = vmatprep.subr.bf16.mxu1 %v6672_v31  ;;  %v2982_v27 = vsub.s32 5, %v7203_v28  ;;  %v2990_v31 = vsub.s32 7, %v7203_v28 }
 0x3cd   :  { %6029 = vmatpush3.bf16.msra.mxu0 %v6673_v34  ;;  %6051 = vmatpush3.bf16.msra.mxu1 %v6674_v35  ;;  %v2979_v34 = vrot.slane %v7241_v43, %v2978_v25  ;;  %v2987_v35 = vrot.slane %v7241_v43, %v2986_v26 }
 0x3ce   :  { %6030 = vmatprep.subr.bf16.mxu0 %v6675_v37  ;;  %6052 = vmatprep.subr.bf16.mxu1 %v6676_v38  ;;  %v2983_v37 = vrot.slane %v7241_v43, %v2982_v27  ;;  %v2991_v38 = vrot.slane %v7241_v43, %v2990_v31 }
 0x3d1   :  { %6031 = vmatpush3.bf16.msra.mxu0 %v6677_v39  ;;  %6053 = vmatpush3.bf16.msra.mxu1 %v6678_v40 }
 0x3d2   :  { %6060 = vmatprep.subr.bf16.mxu0 %v6679_v41  ;;  %6082 = vmatprep.subr.bf16.mxu1 %v6680_v42 }
 0x407   :  { %v4355_v48 = vpop.f32.mrb[8].mxu0  ;;  %v4437_v49 = vpop.f32.mrb[8].mxu1 }
 0x408   :  { %v6108_v50 = vadd.f32 %v4355_v48, %v2963_v44  ;;  %v6110_v51 = vadd.f32 %v4437_v49, %v2971_v45  ;;  %v4357_v52 = vpop.f32.mrb[9].mxu0  ;;  %v4439_v53 = vpop.f32.mrb[9].mxu1 }
 0x409   :  { %v6109_v54 = vadd.f32 %v4357_v52, %v2967_v46  ;;  %v6111_v29 = vadd.f32 %v4439_v53, %v2975_v47  ;;  %v4359_v55 = vpop.f32.mrb[10].mxu0  ;;  %v4441_v56 = vpop.f32.mrb[10].mxu1 }
 0x40a   :  { %v4360_v57 = vpop.f32.mrb[11].mxu0  ;;  %v4442_v30 = vpop.f32.mrb[11].mxu1  ;;  %v4608_v61 = vpack.c.bf16 %v6108_v50, %v6108_v50  ;;  %v4610_v62 = vpack.c.bf16 %v6110_v51, %v6110_v51  ;;  %v5907_v55 = vld [vmem:[#allocation17] ss:$0 sm:$0xff] }
 0x40b   :  { %v4609_v58 = vpack.c.bf16 %v6109_v54, %v6109_v54  ;;  %v4611_v59 = vpack.c.bf16 %v6111_v29, %v6111_v29 }
 0x40d   :  { %5167 = vmatprep.mubr.bf16.mxu0 %v4609_v58  ;;  %5207 = vmatprep.mubr.bf16.mxu1 %v4611_v59 }
 0x40e   :  { %5168 = vmatmul.mubr.bf16.vlgmr.msra.gmra.mrb[16].mxu0 %v4608_v61  ;;  %5208 = vmatmul.mubr.bf16.vlgmr.msra.gmra.mrb[16].mxu1 %v4610_v62 }
 0x40f   :  { %6061 = vmatpush3.bf16.msra.mxu0 %v6681_v60  ;;  %6083 = vmatpush3.bf16.msra.mxu1 %v6682_v32 }
 0x410   :  { %6062 = vmatprep.subr.bf16.mxu0 %v6683_v63  ;;  %6084 = vmatprep.subr.bf16.mxu1 %v6684_v33 }
 0x413   :  { %6063 = vmatpush3.bf16.msra.mxu0 %v6685_v5  ;;  %6085 = vmatpush3.bf16.msra.mxu1 %v6686_v0 }
 0x414   :  { %6064 = vmatprep.subr.bf16.mxu0 %v6687_v1  ;;  %6086 = vmatprep.subr.bf16.mxu1 %v6688_v2 }
 0x417   :  { %6065 = vmatpush3.bf16.msra.mxu0 %v6689_v3  ;;  %6087 = vmatpush3.bf16.msra.mxu1 %v6690_v4 }
 0x418   :  { %6066 = vmatprep.subr.bf16.mxu0 %v6691_v11  ;;  %6088 = vmatprep.subr.bf16.mxu1 %v6692_v6 }
 0x41b   :  { %6067 = vmatpush3.bf16.msra.mxu0 %v6693_v7  ;;  %6089 = vmatpush3.bf16.msra.mxu1 %v6694_v8 }
 0x41c   :  { %6068 = vmatprep.subr.bf16.mxu0 %v6695_v9  ;;  %6090 = vmatprep.subr.bf16.mxu1 %v6696_v10 }
 0x41f   :  { %6069 = vmatpush3.bf16.msra.mxu0 %v6697_v12  ;;  %6091 = vmatpush3.bf16.msra.mxu1 %v6698_v13 }
 0x420   :  { %6070 = vmatprep.subr.bf16.mxu0 %v6699_v14  ;;  %6092 = vmatprep.subr.bf16.mxu1 %v6700_v15 }
 0x423   :  { %6071 = vmatpush3.bf16.msra.mxu0 %v6701_v21  ;;  %6093 = vmatpush3.bf16.msra.mxu1 %v6702_v16 }
 0x424   :  { %6072 = vmatprep.subr.bf16.mxu0 %v6703_v17  ;;  %6094 = vmatprep.subr.bf16.mxu1 %v6704_v36 }
 0x427   :  { %6073 = vmatpush3.bf16.msra.mxu0 %v6705_v18  ;;  %6095 = vmatpush3.bf16.msra.mxu1 %v6706_v19 }
 0x428   :  { %6074 = vmatprep.subr.bf16.mxu0 %v6707_v20  ;;  %6096 = vmatprep.subr.bf16.mxu1 %v6708_v22 }
 0x42b   :  { %6075 = vmatpush3.bf16.msra.mxu0 %v6709_v23  ;;  %6097 = vmatpush3.bf16.msra.mxu1 %v6710_v24 }
 0x487   :  { %v4519_v39 = vpop.f32.mrb[12].mxu0  ;;  %v4601_v40 = vpop.f32.mrb[12].mxu1 }
 0x488   :  { %v6112_v41 = vadd.f32 %v4519_v39, %v2979_v34  ;;  %v6114_v42 = vadd.f32 %v4601_v40, %v2987_v35  ;;  %v4521_v44 = vpop.f32.mrb[13].mxu0  ;;  %v4603_v45 = vpop.f32.mrb[13].mxu1 }
 0x489   :  { %v6113_v46 = vadd.f32 %v4521_v44, %v2983_v37  ;;  %v6115_v47 = vadd.f32 %v4603_v45, %v2991_v38  ;;  %v4523_v48 = vpop.f32.mrb[14].mxu0  ;;  %v4605_v49 = vpop.f32.mrb[14].mxu1 }
 0x48a   :  { %v4524_v50 = vpop.f32.mrb[15].mxu0  ;;  %v4606_v28 = vpop.f32.mrb[15].mxu1  ;;  %v4612_v53 = vpack.c.bf16 %v6112_v41, %v6112_v41  ;;  %v4614_v54 = vpack.c.bf16 %v6114_v42, %v6114_v42 }
 0x48b   :  { %v4613_v51 = vpack.c.bf16 %v6113_v46, %v6113_v46  ;;  %v4615_v52 = vpack.c.bf16 %v6115_v47, %v6115_v47 }
 0x48d   :  { %5247 = vmatprep.mubr.bf16.mxu0 %v4613_v51  ;;  %5287 = vmatprep.mubr.bf16.mxu1 %v4615_v52 }
 0x48e   :  { %5248 = vmatmul.mubr.bf16.vlgmr.msra.gmra.mrb[20].mxu0 %v4612_v53  ;;  %5288 = vmatmul.mubr.bf16.vlgmr.msra.gmra.mrb[20].mxu1 %v4614_v54 }
 0x4e1   :  { %v6032_v43 = vpop.f32.mrb[16].mxu0  ;;  %v6054_v29 = vpop.f32.mrb[16].mxu1 }
 0x4e2   :  { %v6033_v56 = vpop.f32.mrb[17].mxu0  ;;  %v6055_v57 = vpop.f32.mrb[17].mxu1 }
 0x4e3   :  { %v6034_v30 = vadd.f32 %v6033_v56, %v6032_v43  ;;  %v6056_v58 = vadd.f32 %v6055_v57, %v6054_v29  ;;  %v6035_v59 = vpop.f32.mrb[18].mxu0  ;;  %v6057_v60 = vpop.f32.mrb[18].mxu1 }
 0x4e4   :  { %v6036_v32 = vpop.f32.mrb[19].mxu0  ;;  %v6058_v61 = vpop.f32.mrb[19].mxu1 }
 0x4e5   :  { %v5170_v62 = vadd.f32 %v6034_v30, %v5907_v55 }
 0x4e7   :  { %v5210_v63 = vadd.f32 %v6056_v58, %v5170_v62 }
 0x4e8   :  { %6942 = shalt.err (!%p6939_p0)
}
 0x4e9   :  { %s6943_s13 = scalar_lea.hbm %s7297_s10, 128 }
 0x4ea   :  { %p6944_p1 = scmp.ne.s32.totalorder %s7297_s10, %s6943_s13  ;;  %p6947_p2 = scmp.lt.u32.totalorder %s6943_s13, %s7297_s10 }
 0x4ec   :  { %p6949_p3 = pnand %p6947_p2, %p6944_p1 }
 0x4ee   :  { %6952 = shalt.err (!%p6949_p3)
}
 0x4ef   :  { %5305 = dma.vmem_to_hbm [thread:$0]  %s5303_s29, 128, %s7297_s10, [#allocation4]  }
 0x4f0   :  { %s7009_s16 = smov [#allocation20]  }
 0x4f1   :  { %s5312_s17 = sshll.u32 %s7009_s16, 4  ;;  %s5313_s17 = int_to_ptr.vmem [resolvable:$true] %s5312_s17 }
 0x4f2   :  { %s6953_s19 = scalar_lea.vmem %s5313_s17, 128  ;;  %p6958_p5 = scmp.lt.s32.totalorder %s5313_s17, %s5313_s17 }
 0x4f3   :  { %p6954_p4 = scmp.ne.s32.totalorder %s5313_s17, %s6953_s19  ;;  %p6959_p6 = scmp.lt.s32.totalorder %s6953_s19, %s6953_s19 }
 0x4f5   :  { %p6960_p7 = por %p6959_p6, %p6958_p5 }
 0x4f7   :  { %p6961_p8 = pnand %p6960_p7, %p6954_p4 }
 0x561   :  { %v6076_v33 = vpop.f32.mrb[20].mxu0  ;;  %v6098_v5 = vpop.f32.mrb[20].mxu1 }
 0x562   :  { %v6077_v0 = vpop.f32.mrb[21].mxu0  ;;  %v6099_v1 = vpop.f32.mrb[21].mxu1 }
 0x563   :  { %v6078_v2 = vadd.f32 %v6077_v0, %v6076_v33  ;;  %v6100_v3 = vadd.f32 %v6099_v1, %v6098_v5  ;;  %v6079_v4 = vpop.f32.mrb[22].mxu0  ;;  %v6101_v11 = vpop.f32.mrb[22].mxu1 }
 0x564   :  { %v6080_v6 = vpop.f32.mrb[23].mxu0  ;;  %v6102_v7 = vpop.f32.mrb[23].mxu1 }
 0x565   :  { %v5250_v8 = vadd.f32 %v6078_v2, %v5210_v63 }
 0x567   :  { %v5290_v9 = vadd.f32 %v6100_v3, %v5250_v8 }
 0x569   :  { %5295 = vst [vmem:[#allocation20] sm:$0xff] %v5290_v9 }
 0x56a   :  { %6964 = shalt.err (!%p6961_p8)
}
 0x56b   :  { %s6965_s21 = scalar_lea.hbm %s7298_s11, 128 }
 0x56c   :  { %p6966_p9 = scmp.ne.s32.totalorder %s7298_s11, %s6965_s21  ;;  %p6969_p10 = scmp.lt.u32.totalorder %s6965_s21, %s7298_s11 }
 0x56e   :  { %p6971_p11 = pnand %p6969_p10, %p6966_p9 }
 0x570   :  { %6974 = shalt.err (!%p6971_p11)
}
 0x571   :  { %5315 = dma.vmem_to_hbm [thread:$0]  %s5313_s17, 128, %s7298_s11, [#allocation21]  }
 0x572   :  { %6987 = dma.done.wait [#allocation4], 128  }
 0x573   :  { %6988 = vsyncadd [#allocation4], 4294967168 }
 0x574   :  { %6989 = dma.done.wait [#allocation21], 128  }
 0x575   :  { %6990 = vsyncadd [#allocation21], 4294967168 }
 0x576   :  { %5322 = vsyncpa [#allocation3], 1 }
 0x577   :  { %5323 = vsyncpa [#allocation6], 1 }
 0x578   :  { %5324 = vsyncpa [#allocation9], 1 }
 0x579   :  { %5325 = vsyncpa [#allocation12], 1 }
 0x57a   :  { %5326 = vsyncpa [#allocation15], 1 }
 0x57b   :  { %5327 = vsyncpa [#allocation18], 1 }
 0x57c   :  { %5328 = vsyncpa [#allocation4], 1 }
 0x57d   :  { %5329 = vsyncpa [#allocation21], 1 }

</bundles_post_ra>
